<compile_context>
chip_gen: v7x
topology: tpu7x:2x2x1
jax: 0.10.0
libtpu: 0.0.40
codegen_flags: <defaults>
</compile_context>

<pallas_src>
import functools

import jax
import jax.numpy as jnp
from jax.experimental import pallas as pl
from jax.experimental.pallas import tpu as pltpu


LANE_CHUNK = 512            # one chunk: h1 is (64,512) f32 = 32 vregs, no spill
MAX_CHUNKS_PER_STEP = 4     # up to 2048 lanes per grid step (amortize overhead)
PALLAS_MIN_BATCH = 2048     # below this a fused XLA forward beats a custom call
MM_PREC = jax.lax.Precision.HIGHEST  # exact f32 matmuls (parity with reference)


def _emotion_mlp_kernel(x_ref, w1_ref, b1_ref, w2_ref, b2_ref, w3_ref, b3_ref,
                        o_ref, *, n_chunks):
    """Fused 3-layer MLP on one (5, n_chunks*512) feature-major batch block."""
    # Hoist loop-invariant weight loads / bias broadcasts out of the chunk loop.
    w1 = w1_ref[...]                                                 # (64, 5)
    w2 = w2_ref[...]                                                 # (32, 64)
    w3 = w3_ref[...]                                                 # (1, 32)
    b1 = jnp.broadcast_to(b1_ref[...], (w1.shape[0], LANE_CHUNK))    # (64, 512)
    b2 = jnp.broadcast_to(b2_ref[...], (w2.shape[0], LANE_CHUNK))    # (32, 512)
    b3 = jnp.broadcast_to(b3_ref[...], (w3.shape[0], LANE_CHUNK))    # (1, 512)

    # Static (unrolled) loop over 512-lane chunks; slices are compile-time
    # constants so every load/store is a full-width, aligned access.
    for c in range(n_chunks):
        sl = pl.ds(c * LANE_CHUNK, LANE_CHUNK)
        x = x_ref[:, sl]                                             # (5, 512)

        # fc1 + relu : (64,5) @ (5,512) -> (64,512)
        h1 = jnp.dot(w1, x, preferred_element_type=jnp.float32,
                     precision=MM_PREC)
        h1 = jnp.maximum(h1 + b1, 0.0)

        # fc2 + relu : (32,64) @ (64,512) -> (32,512)
        h2 = jnp.dot(w2, h1, preferred_element_type=jnp.float32,
                     precision=MM_PREC)
        h2 = jnp.maximum(h2 + b2, 0.0)

        # fc3 + sigmoid : (1,32) @ (32,512) -> (1,512), lane-dense store.
        z = jnp.dot(w3, h2, preferred_element_type=jnp.float32,
                    precision=MM_PREC) + b3
        # Exact, numerically stable sigmoid via one EUP tanh.
        o_ref[:, sl] = 0.5 * (jnp.tanh(0.5 * z) + 1.0)


def emotion_mlp_pallas_feature_major(xt, w1, b1, w2, b2, w3, b3):
    """Feature-major entry point.  xt: (5, B) f32.  Returns (1, B) f32.

    Weights are torch-native: w (out, in), b (out,).
    """
    F, B = xt.shape

    # Block sizing: fuse several 512-lane chunks per grid step to amortize the
    # fixed per-step pipeline overhead, but keep >= 2 grid steps whenever there
    # is enough work so v7x can shard the "parallel" batch axis over its 2 TCs.
    n_chunks_total = pl.cdiv(B, LANE_CHUNK)
    chunks_per_step = max(1, min(MAX_CHUNKS_PER_STEP,
                                 pl.cdiv(n_chunks_total, 2)))
    tb = chunks_per_step * LANE_CHUNK
    n_steps = pl.cdiv(B, tb)           # partial edge blocks handled by Pallas

    b1c = b1.reshape(-1, 1)                                          # (64, 1)
    b2c = b2.reshape(-1, 1)                                          # (32, 1)
    b3c = b3.reshape(-1, 1)                                          # (1, 1)

    const = lambda a: pl.BlockSpec(a.shape, lambda i: (0, 0))        # resident

    flops = 2 * B * (5 * 64 + 64 * 32 + 32 * 1)
    bytes_accessed = 4 * (xt.size + B + w1.size + w2.size + w3.size
                          + b1.size + b2.size + b3.size)

    kernel = functools.partial(_emotion_mlp_kernel, n_chunks=chunks_per_step)

    return pl.pallas_call(
        kernel,
        out_shape=jax.ShapeDtypeStruct((1, B), jnp.float32),
        grid_spec=pltpu.PrefetchScalarGridSpec(
            num_scalar_prefetch=0,
            grid=(n_steps,),
            in_specs=[
                pl.BlockSpec((F, tb), lambda i: (0, i)),             # x block
                const(w1), const(b1c),
                const(w2), const(b2c),
                const(w3), const(b3c),
            ],
            out_specs=pl.BlockSpec((1, tb), lambda i: (0, i)),
        ),
        compiler_params=pltpu.CompilerParams(
            dimension_semantics=("parallel",)),
        cost_estimate=pl.CostEstimate(flops=flops, transcendentals=B,
                                      bytes_accessed=bytes_accessed),
    )(xt, w1, b1c, w2, b2c, w3, b3c)


@jax.jit
def emotion_mlp_pallas(x, w1, b1, w2, b2, w3, b3):
    """Torch-layout entry point.  x: (B, 5) f32 -> (B, 1) f32."""
    B = x.shape[0]
    # TODO(synk): if the surrounding graph is already feature-major, call
    # emotion_mlp_pallas_feature_major directly and drop this transpose.
    out = emotion_mlp_pallas_feature_major(x.T, w1, b1, w2, b2, w3, b3)
    return out.reshape(B, 1)            # (1,B) -> (B,1): free (size-1 dim)


def emotion_mlp_ref(x, w1, b1, w2, b2, w3, b3):
    """Pure-JAX reference (same HIGHEST matmul precision as the kernel)."""
    h1 = jnp.maximum(jnp.dot(x, w1.T, precision=MM_PREC) + b1, 0.0)
    h2 = jnp.maximum(jnp.dot(h1, w2.T, precision=MM_PREC) + b2, 0.0)
    return jax.nn.sigmoid(jnp.dot(h2, w3.T, precision=MM_PREC) + b3)


def emotion_mlp(x, w1, b1, w2, b2, w3, b3):
    """Dispatcher: below the crossover a fused XLA forward beats a custom-call
    launch plus the wrapper layout op, so let XLA handle small batches."""
    if x.shape[0] < PALLAS_MIN_BATCH:
        return emotion_mlp_ref(x, w1, b1, w2, b2, w3, b3)
    return emotion_mlp_pallas(x, w1, b1, w2, b2, w3, b3)


def init_params(key):
    """PyTorch-default Linear init, torch-native shapes: w (out,in), b (out,)."""
    dims = [(5, 64), (64, 32), (32, 1)]
    params = []
    for i, (fan_in, fan_out) in enumerate(dims):
        kw, kb = jax.random.split(jax.random.fold_in(key, i))
        bound = 1.0 / jnp.sqrt(jnp.float32(fan_in))
        w = jax.random.uniform(kw, (fan_out, fan_in), jnp.float32,
                               minval=-bound, maxval=bound)
        b = jax.random.uniform(kb, (fan_out,), jnp.float32,
                               minval=-bound, maxval=bound)
        params += [w, b]
    return params


if __name__ == "__main__":
    key = jax.random.PRNGKey(0)
    kx, kp = jax.random.split(key)

    # batch=3000 exercises: 2 grid steps (v7x guard), 3-chunk inner loop per
    # step (1536-lane blocks), and a partial (masked) final block (3000<3072).
    batch = 3000
    x = jax.random.normal(kx, (batch, 5), dtype=jnp.float32)
    w1, b1, w2, b2, w3, b3 = init_params(kp)

    out = jax.block_until_ready(emotion_mlp_pallas(x, w1, b1, w2, b2, w3, b3))
    ref = emotion_mlp_ref(x, w1, b1, w2, b2, w3, b3)

    assert out.shape == (batch, 1), out.shape
    assert bool(jnp.all(jnp.isfinite(out))), "non-finite outputs"
    # Exact sigmoid + HIGHEST-precision matmuls on both sides -> ~1e-6 diff.
    assert jnp.allclose(out, ref, atol=2e-3, rtol=2e-3), (
        "kernel mismatch vs JAX reference")

    # Dispatcher small-batch path (pure-JAX, no Pallas launch).
    small = emotion_mlp(x[:8], w1, b1, w2, b2, w3, b3)
    assert small.shape == (8, 1)

    print("KERNEL_OK")
</pallas_src>

<mosaic_0001>
module attributes {stable_mosaic.version = 11 : i64} {
  func.func @_emotion_mlp_kernel(%arg0: i32, %arg1: memref<5x1536xf32, #tpu.memory_space<vmem>>, %arg2: memref<64x5xf32, #tpu.memory_space<vmem>>, %arg3: memref<64x1xf32, #tpu.memory_space<vmem>>, %arg4: memref<32x64xf32, #tpu.memory_space<vmem>>, %arg5: memref<32x1xf32, #tpu.memory_space<vmem>>, %arg6: memref<1x32xf32, #tpu.memory_space<vmem>>, %arg7: memref<1x1xf32, #tpu.memory_space<vmem>>, %arg8: memref<1x1536xf32, #tpu.memory_space<vmem>>) attributes {dimension_semantics = [#tpu.dimension_semantics<parallel>], iteration_bounds = array<i64: 2>, scalar_prefetch = 0 : i64, scratch_operands = 0 : i64, tpu.core_type = #tpu.core_type<tc>, window_params = [{transform_indices = @transform_0, window_bounds = array<i64: 5, 1536>}, {pipeline_mode = #tpu.pipeline_mode<synchronous>, transform_indices = @transform_1, window_bounds = array<i64: 64, 5>}, {pipeline_mode = #tpu.pipeline_mode<synchronous>, transform_indices = @transform_2, window_bounds = array<i64: 64, 1>}, {pipeline_mode = #tpu.pipeline_mode<synchronous>, transform_indices = @transform_3, window_bounds = array<i64: 32, 64>}, {pipeline_mode = #tpu.pipeline_mode<synchronous>, transform_indices = @transform_4, window_bounds = array<i64: 32, 1>}, {pipeline_mode = #tpu.pipeline_mode<synchronous>, transform_indices = @transform_5, window_bounds = array<i64: 1, 32>}, {pipeline_mode = #tpu.pipeline_mode<synchronous>, transform_indices = @transform_6, window_bounds = array<i64: 1, 1>}, {transform_indices = @transform_7, window_bounds = array<i64: 1, 1536>}]} {
    %c0 = arith.constant 0 : index
    %c0_0 = arith.constant 0 : index
    %0 = vector.load %arg2[%c0, %c0_0] : memref<64x5xf32, #tpu.memory_space<vmem>>, vector<64x5xf32>
    %c0_1 = arith.constant 0 : index
    %c0_2 = arith.constant 0 : index
    %1 = vector.load %arg4[%c0_1, %c0_2] : memref<32x64xf32, #tpu.memory_space<vmem>>, vector<32x64xf32>
    %c0_3 = arith.constant 0 : index
    %c0_4 = arith.constant 0 : index
    %2 = vector.load %arg6[%c0_3, %c0_4] : memref<1x32xf32, #tpu.memory_space<vmem>>, vector<1x32xf32>
    %c0_5 = arith.constant 0 : index
    %c0_6 = arith.constant 0 : index
    %3 = vector.load %arg3[%c0_5, %c0_6] : memref<64x1xf32, #tpu.memory_space<vmem>>, vector<64x1xf32>
    %4 = vector.shape_cast %3 : vector<64x1xf32> to vector<64x1xf32>
    %5 = vector.broadcast %4 : vector<64x1xf32> to vector<64x512xf32>
    %c0_7 = arith.constant 0 : index
    %c0_8 = arith.constant 0 : index
    %6 = vector.load %arg5[%c0_7, %c0_8] : memref<32x1xf32, #tpu.memory_space<vmem>>, vector<32x1xf32>
    %7 = vector.shape_cast %6 : vector<32x1xf32> to vector<32x1xf32>
    %8 = vector.broadcast %7 : vector<32x1xf32> to vector<32x512xf32>
    %c0_9 = arith.constant 0 : index
    %c0_10 = arith.constant 0 : index
    %9 = vector.load %arg7[%c0_9, %c0_10] : memref<1x1xf32, #tpu.memory_space<vmem>>, vector<1x1xf32>
    %10 = vector.shape_cast %9 : vector<1x1xf32> to vector<1x1xf32>
    %11 = vector.broadcast %10 : vector<1x1xf32> to vector<1x512xf32>
    %c0_11 = arith.constant 0 : index
    %c0_12 = arith.constant 0 : index
    %12 = vector.load %arg1[%c0_11, %c0_12] : memref<5x1536xf32, #tpu.memory_space<vmem>>, vector<5x512xf32>
    %cst = arith.constant dense<0.000000e+00> : vector<64x512xf32>
    %13 = tpu.matmul %0, %12, %cst {dimension_numbers = #tpu.dot_dimension_numbers<[1], [0], [0], [1], [0, 0, 1, 1], [], []>, precision = #tpu.contract_precision<fp32>} : vector<64x5xf32>, vector<5x512xf32>, vector<64x512xf32> -> vector<64x512xf32>
    %14 = arith.addf %13, %5 : vector<64x512xf32>
    %cst_13 = arith.constant 0.000000e+00 : f32
    %15 = vector.broadcast %cst_13 : f32 to vector<64x512xf32>
    %16 = arith.maximumf %14, %15 : vector<64x512xf32>
    %cst_14 = arith.constant dense<0.000000e+00> : vector<32x512xf32>
    %17 = tpu.matmul %1, %16, %cst_14 {dimension_numbers = #tpu.dot_dimension_numbers<[1], [0], [0], [1], [0, 0, 1, 1], [], []>, precision = #tpu.contract_precision<fp32>} : vector<32x64xf32>, vector<64x512xf32>, vector<32x512xf32> -> vector<32x512xf32>
    %18 = arith.addf %17, %8 : vector<32x512xf32>
    %cst_15 = arith.constant 0.000000e+00 : f32
    %19 = vector.broadcast %cst_15 : f32 to vector<32x512xf32>
    %20 = arith.maximumf %18, %19 : vector<32x512xf32>
    %cst_16 = arith.constant dense<0.000000e+00> : vector<1x512xf32>
    %21 = tpu.matmul %2, %20, %cst_16 {dimension_numbers = #tpu.dot_dimension_numbers<[1], [0], [0], [1], [0, 0, 1, 1], [], []>, precision = #tpu.contract_precision<fp32>} : vector<1x32xf32>, vector<32x512xf32>, vector<1x512xf32> -> vector<1x512xf32>
    %22 = arith.addf %21, %11 : vector<1x512xf32>
    %cst_17 = arith.constant 5.000000e-01 : f32
    %23 = vector.broadcast %cst_17 : f32 to vector<1x512xf32>
    %24 = arith.mulf %23, %22 : vector<1x512xf32>
    %25 = math.tanh %24 : vector<1x512xf32>
    %cst_18 = arith.constant 1.000000e+00 : f32
    %26 = vector.broadcast %cst_18 : f32 to vector<1x512xf32>
    %27 = arith.addf %25, %26 : vector<1x512xf32>
    %cst_19 = arith.constant 5.000000e-01 : f32
    %28 = vector.broadcast %cst_19 : f32 to vector<1x512xf32>
    %29 = arith.mulf %28, %27 : vector<1x512xf32>
    %c0_20 = arith.constant 0 : index
    %c0_21 = arith.constant 0 : index
    %30 = vector.load %arg8[%c0_20, %c0_21] : memref<1x1536xf32, #tpu.memory_space<vmem>>, vector<1x512xf32>
    tpu.vector_store %arg8[%c0_20, %c0_21], %29 {strides = array<i32>} : memref<1x1536xf32, #tpu.memory_space<vmem>>, vector<1x512xf32>,
    %c0_22 = arith.constant 0 : index
    %c512 = arith.constant 512 : index
    %31 = vector.load %arg1[%c0_22, %c512] : memref<5x1536xf32, #tpu.memory_space<vmem>>, vector<5x512xf32>
    %cst_23 = arith.constant dense<0.000000e+00> : vector<64x512xf32>
    %32 = tpu.matmul %0, %31, %cst_23 {dimension_numbers = #tpu.dot_dimension_numbers<[1], [0], [0], [1], [0, 0, 1, 1], [], []>, precision = #tpu.contract_precision<fp32>} : vector<64x5xf32>, vector<5x512xf32>, vector<64x512xf32> -> vector<64x512xf32>
    %33 = arith.addf %32, %5 : vector<64x512xf32>
    %cst_24 = arith.constant 0.000000e+00 : f32
    %34 = vector.broadcast %cst_24 : f32 to vector<64x512xf32>
    %35 = arith.maximumf %33, %34 : vector<64x512xf32>
    %cst_25 = arith.constant dense<0.000000e+00> : vector<32x512xf32>
    %36 = tpu.matmul %1, %35, %cst_25 {dimension_numbers = #tpu.dot_dimension_numbers<[1], [0], [0], [1], [0, 0, 1, 1], [], []>, precision = #tpu.contract_precision<fp32>} : vector<32x64xf32>, vector<64x512xf32>, vector<32x512xf32> -> vector<32x512xf32>
    %37 = arith.addf %36, %8 : vector<32x512xf32>
    %cst_26 = arith.constant 0.000000e+00 : f32
    %38 = vector.broadcast %cst_26 : f32 to vector<32x512xf32>
    %39 = arith.maximumf %37, %38 : vector<32x512xf32>
    %cst_27 = arith.constant dense<0.000000e+00> : vector<1x512xf32>
    %40 = tpu.matmul %2, %39, %cst_27 {dimension_numbers = #tpu.dot_dimension_numbers<[1], [0], [0], [1], [0, 0, 1, 1], [], []>, precision = #tpu.contract_precision<fp32>} : vector<1x32xf32>, vector<32x512xf32>, vector<1x512xf32> -> vector<1x512xf32>
    %41 = arith.addf %40, %11 : vector<1x512xf32>
    %cst_28 = arith.constant 5.000000e-01 : f32
    %42 = vector.broadcast %cst_28 : f32 to vector<1x512xf32>
    %43 = arith.mulf %42, %41 : vector<1x512xf32>
    %44 = math.tanh %43 : vector<1x512xf32>
    %cst_29 = arith.constant 1.000000e+00 : f32
    %45 = vector.broadcast %cst_29 : f32 to vector<1x512xf32>
    %46 = arith.addf %44, %45 : vector<1x512xf32>
    %cst_30 = arith.constant 5.000000e-01 : f32
    %47 = vector.broadcast %cst_30 : f32 to vector<1x512xf32>
    %48 = arith.mulf %47, %46 : vector<1x512xf32>
    %c0_31 = arith.constant 0 : index
    %c512_32 = arith.constant 512 : index
    %49 = vector.load %arg8[%c0_31, %c512_32] : memref<1x1536xf32, #tpu.memory_space<vmem>>, vector<1x512xf32>
    tpu.vector_store %arg8[%c0_31, %c512_32], %48 {strides = array<i32>} : memref<1x1536xf32, #tpu.memory_space<vmem>>, vector<1x512xf32>,
    %c0_33 = arith.constant 0 : index
    %c1024 = arith.constant 1024 : index
    %50 = vector.load %arg1[%c0_33, %c1024] : memref<5x1536xf32, #tpu.memory_space<vmem>>, vector<5x512xf32>
    %cst_34 = arith.constant dense<0.000000e+00> : vector<64x512xf32>
    %51 = tpu.matmul %0, %50, %cst_34 {dimension_numbers = #tpu.dot_dimension_numbers<[1], [0], [0], [1], [0, 0, 1, 1], [], []>, precision = #tpu.contract_precision<fp32>} : vector<64x5xf32>, vector<5x512xf32>, vector<64x512xf32> -> vector<64x512xf32>
    %52 = arith.addf %51, %5 : vector<64x512xf32>
    %cst_35 = arith.constant 0.000000e+00 : f32
    %53 = vector.broadcast %cst_35 : f32 to vector<64x512xf32>
    %54 = arith.maximumf %52, %53 : vector<64x512xf32>
    %cst_36 = arith.constant dense<0.000000e+00> : vector<32x512xf32>
    %55 = tpu.matmul %1, %54, %cst_36 {dimension_numbers = #tpu.dot_dimension_numbers<[1], [0], [0], [1], [0, 0, 1, 1], [], []>, precision = #tpu.contract_precision<fp32>} : vector<32x64xf32>, vector<64x512xf32>, vector<32x512xf32> -> vector<32x512xf32>
    %56 = arith.addf %55, %8 : vector<32x512xf32>
    %cst_37 = arith.constant 0.000000e+00 : f32
    %57 = vector.broadcast %cst_37 : f32 to vector<32x512xf32>
    %58 = arith.maximumf %56, %57 : vector<32x512xf32>
    %cst_38 = arith.constant dense<0.000000e+00> : vector<1x512xf32>
    %59 = tpu.matmul %2, %58, %cst_38 {dimension_numbers = #tpu.dot_dimension_numbers<[1], [0], [0], [1], [0, 0, 1, 1], [], []>, precision = #tpu.contract_precision<fp32>} : vector<1x32xf32>, vector<32x512xf32>, vector<1x512xf32> -> vector<1x512xf32>
    %60 = arith.addf %59, %11 : vector<1x512xf32>
    %cst_39 = arith.constant 5.000000e-01 : f32
    %61 = vector.broadcast %cst_39 : f32 to vector<1x512xf32>
    %62 = arith.mulf %61, %60 : vector<1x512xf32>
    %63 = math.tanh %62 : vector<1x512xf32>
    %cst_40 = arith.constant 1.000000e+00 : f32
    %64 = vector.broadcast %cst_40 : f32 to vector<1x512xf32>
    %65 = arith.addf %63, %64 : vector<1x512xf32>
    %cst_41 = arith.constant 5.000000e-01 : f32
    %66 = vector.broadcast %cst_41 : f32 to vector<1x512xf32>
    %67 = arith.mulf %66, %65 : vector<1x512xf32>
    %c0_42 = arith.constant 0 : index
    %c1024_43 = arith.constant 1024 : index
    %68 = vector.load %arg8[%c0_42, %c1024_43] : memref<1x1536xf32, #tpu.memory_space<vmem>>, vector<1x512xf32>
    tpu.vector_store %arg8[%c0_42, %c1024_43], %67 {strides = array<i32>} : memref<1x1536xf32, #tpu.memory_space<vmem>>, vector<1x512xf32>,
    return
  }
  func.func @transform_0(%arg0: i32) -> (i32, i32) {
    %c0_i32 = arith.constant 0 : i32
    %c0_i32_0 = arith.constant 0 : i32
    return %c0_i32, %arg0 : i32, i32
  }
  func.func @transform_1(%arg0: i32) -> (i32, i32) {
    %c0_i32 = arith.constant 0 : i32
    %c0_i32_0 = arith.constant 0 : i32
    %c0_i32_1 = arith.constant 0 : i32
    return %c0_i32, %c0_i32_0 : i32, i32
  }
  func.func @transform_2(%arg0: i32) -> (i32, i32) {
    %c0_i32 = arith.constant 0 : i32
    %c0_i32_0 = arith.constant 0 : i32
    %c0_i32_1 = arith.constant 0 : i32
    return %c0_i32, %c0_i32_0 : i32, i32
  }
  func.func @transform_3(%arg0: i32) -> (i32, i32) {
    %c0_i32 = arith.constant 0 : i32
    %c0_i32_0 = arith.constant 0 : i32
    %c0_i32_1 = arith.constant 0 : i32
    return %c0_i32, %c0_i32_0 : i32, i32
  }
  func.func @transform_4(%arg0: i32) -> (i32, i32) {
    %c0_i32 = arith.constant 0 : i32
    %c0_i32_0 = arith.constant 0 : i32
    %c0_i32_1 = arith.constant 0 : i32
    return %c0_i32, %c0_i32_0 : i32, i32
  }
  func.func @transform_5(%arg0: i32) -> (i32, i32) {
    %c0_i32 = arith.constant 0 : i32
    %c0_i32_0 = arith.constant 0 : i32
    %c0_i32_1 = arith.constant 0 : i32
    return %c0_i32, %c0_i32_0 : i32, i32
  }
  func.func @transform_6(%arg0: i32) -> (i32, i32) {
    %c0_i32 = arith.constant 0 : i32
    %c0_i32_0 = arith.constant 0 : i32
    %c0_i32_1 = arith.constant 0 : i32
    return %c0_i32, %c0_i32_0 : i32, i32
  }
  func.func @transform_7(%arg0: i32) -> (i32, i32) {
    %c0_i32 = arith.constant 0 : i32
    %c0_i32_0 = arith.constant 0 : i32
    return %c0_i32, %arg0 : i32, i32
  }
}

</mosaic_0001>

<bundles_post_ra>
// kernel: emotion_mlp_pallas.1
= control target key start
LH: loop header
LB: loop body
LE: loop exit
PB: predicated region body
PF: predicated region fallthrough
CT: control target
= control target key end

     0   :  { %s19799_s0 = inlined_call_operand.hbm [shape: f32[5,3000], index: 0, kind: input, shape index: {}]   ;;  %s19800_s1 = inlined_call_operand.vmem [shape: f32[64,5], index: 1, kind: input, shape index: {}]   ;;  %s19801_s2 = inlined_call_operand.vmem [shape: f32[64,1], index: 2, kind: input, shape index: {}]   ;;  %s19802_s3 = inlined_call_operand.vmem [shape: f32[32,64], index: 3, kind: input, shape index: {}]   ;;  %s19803_s4 = inlined_call_operand.vmem [shape: f32[32,1], index: 4, kind: input, shape index: {}]   ;;  %s19804_s5 = inlined_call_operand.vmem [shape: f32[1,32], index: 5, kind: input, shape index: {}]   ;;  %s19805_s6 = inlined_call_operand.<no memory space> [shape: f32[1,1], index: 6, kind: input, shape index: {}]   ;;  %s19806_s7 = inlined_call_operand.hbm [shape: f32[1,3000], index: 7, kind: output, shape index: {}]  }
   0x1   :  { %v12_v0 = vstv %s19805_s6 }
   0x2   :  { %13 = vst [vmem:[#allocation2] sm:$0x1] %v12_v0 }
   0x3   :  { %14 = vsyncpa [#allocation4], 0 }
   0x4   :  { %16 = vsyncpa [#allocation4 + $0x1], 0 }
   0x5   :  { %17 = vsyncpa [#allocation5], 0 }
   0x6   :  { %19 = vsyncpa [#allocation5 + $0x1], 0  ;;  %s15760_s26 = smov 0   ;;  %s15762_s27 = smov 0  }
   0x7   :  { %s15764_s28 = smov 0   ;;  %s15766_s29 = smov 0  }
   0x8 LB: > { %s15781_s6 = sadd.s32 4294967295, %s15710_s29   ;;  %s13726_s30 = sadd.s32 4294967294, %s15710_s29   ;;  %s15710_s29 = sphi %s15766_s29, %s20788_s29   ;;  %s15706_s28 = sphi %s15764_s28, %s20787_s28   ;;  %s15702_s27 = sphi %s15762_s27, %s20786_s27   ;;  %s15698_s26 = sphi %s15760_s26, %s20785_s26  }
   0x9   : > { %s15785_s8 = sadd.s32 1, %s15710_s29   ;;  %s32_s9 = sadd.s32 1, %s15706_s28 }
   0xa   : > { %s29_s10 = ssub.s32 %s15710_s29, %s15785_s8  ;;  %p39_p0 = scmp.ne.s32.totalorder %s15706_s28, %s15702_s27 }
   0xb   : > { %p30_p1 = scmp.eq.s32.totalorder %s29_s10, 0  ;;  %p40_p2 = scmp.eq.s32.totalorder %s15710_s29, 0 }
   0xc   : > { %p45_p3 = scmp.ne.s32.totalorder %s15702_s27, %s15698_s26  ;;  %p46_p4 = scmp.eq.s32.totalorder %s15781_s6, 0 }
   0xd   : > { %s15797_s11 = scalar_select %p30_p1, %s15706_s28, %s32_s9  }
   0xe   : > { %p41_p5 = por %p40_p2, %p39_p0  ;;  %p15799_p6 = por %p46_p4, %p45_p3 }
   0xf   : > { %p195_p7 = scmp.eq.s32.totalorder %s15781_s6, 1  ;;  %p201_p8 = scmp.eq.s32.totalorder %s13726_s30, 1 }
  0x10   : > { %p15551_p10 = scmp.lt.s32.totalorder %s15710_s29, 2  ;;  %s239_s15 = sand.u32 1, %s15706_s28  }
  0x11   : > { %p15806_p11 = por %p195_p7, %p39_p0  ;;  %p15810_p12 = por %p201_p8, %p45_p3 }
  0x12   : > { %s13734_s16 = smul.u32 1536, %s15710_s29  ;;  %p15821_p13 = pnand %p15551_p10, %p41_p5 }
  0x13   : > { %s20191_s13 = scalar_select %p15806_p11, 1, 0 }
  0x14   : > { %s20192_s14 = scalar_select %p15810_p12, 1, 0 }
  0x15   : > { %s15536_s17 = smul.u32 96, %s239_s15  ;;  %s15819_s20 = scalar_lea.hbm %s19799_s0, %s13734_s16 }
  0x16   : > { %s240_s24 = scalar_lea.sflag [#allocation4], %s239_s15  ;;  %s15614_s25 = scalar_lea.hbm %s15819_s20, 1536 }
  0x17   : > { %s243_s22 = scalar_lea.vmem [#allocation3], %s15536_s17  ;;  %p15615_p2 = scmp.ne.s32.totalorder %s15819_s20, %s15614_s25 }
  0x18   : > { %s251_s23 = sshll.u32 %s243_s22, 4  ;;  %p15616_p3 = pneg %p15821_p13  ;;  %s15826_s23 = int_to_ptr.vmem [resolvable:$true] %s251_s23 }
  0x19   : > { %s15619_s10 = scalar_lea.hbm %s19799_s0, 3072  ;;  %p15620_p7 = scmp.lt.u32.totalorder %s15819_s20, %s19799_s0 }
  0x1a   : > { %p15617_p4 = pnand %p15616_p3, %p15615_p2  ;;  %p15621_p8 = scmp.lt.u32.totalorder %s15619_s10, %s15614_s25 }
  0x1b   : > { %p15623_p9 = scmp.lt.u32.totalorder %s15614_s25, %s15819_s20 }
  0x1c   : > { %p15618_p5 = pneg %p15617_p4  ;;  %p15622_p10 = por %p15621_p8, %p15620_p7 }
  0x1e   : > { %p15624_p0 = por %p15623_p9, %p15622_p10 }
  0x20   : > { %p15625_p1 = pnand %p15624_p0, %p15618_p5 }
  0x22   : > { %15628 = shalt.err (!%p15625_p1)
}
  0x23   : > { %s15629_s15 = scalar_lea.vmem %s15826_s23, 1536  ;;  %s15712_s17 = smov [#allocation3]  }
  0x24   : > { %p15630_p2 = scmp.ne.s32.totalorder %s15826_s23, %s15629_s15  ;;  %s15634_s19 = sshll.u32 %s15712_s17, 4  ;;  %s15635_s19 = int_to_ptr.vmem [resolvable:$false] %s15634_s19 }
  0x25   : > { %s15636_s22 = scalar_lea.vmem %s15635_s19, 3072  ;;  %p15637_p11 = scmp.lt.s32.totalorder %s15826_s23, %s15635_s19 }
  0x26   : > { %p15632_p4 = pnand %p15630_p2, %p15616_p3  ;;  %p15638_p7 = scmp.lt.s32.totalorder %s15636_s22, %s15629_s15 }
  0x28   : > { %p15633_p12 = pneg %p15632_p4  ;;  %p15639_p8 = por %p15638_p7, %p15637_p11 }
  0x2a   : > { %p15640_p9 = pnand %p15639_p8, %p15633_p12 }
  0x2c   : > { %15643 = shalt.err (!%p15640_p9)
}
  0x2d   : > { %15546 = dma.hbm_to_vmem [thread:$0]  (!%p15821_p13), %s15819_s20, 1536, %s15826_s23, %s240_s24  }
  0x2e   : > { %p20194_p0 = scmp.lt.s32.totalorder %s15710_s29, 3  ;;  %p20195_p1 = scmp.ge.s32.totalorder %s15710_s29, 1 }
  0x30   : > { %p257_p3 = pnand %p20195_p1, %p20194_p0 }
  0x32   : > { %260 = sbr.rel (%p257_p3) target bundleno = 2739 (0xab3), region = 48 }
  0x39   : > { %s15859_s25 = sand.u32 1, %s15702_s27  }
  0x3a   : > { %s15537_s30 = smul.u32 96, %s15859_s25  ;;  %s263_s9 = scalar_lea.sflag [#allocation4], %s15859_s25 }
  0x3c   : > { %s15863_s10 = scalar_lea.vmem [#allocation3], %s15537_s30 }
  0x3d   : > { %15689 = dma.done.wait (%p15799_p6), %s263_s9, 1536  }
  0x3e   : > { %15691 = vsyncadd (%p15799_p6), %s263_s9, 4294965760  ;;  %v19808_v1 = vmov 0.0   ;;  %vm423_vm0 = vcmask 1044480   ;;  %vm398_vm1 = vcmask 39936   ;;  %v395_v2 = vld [vmem:[%s15863_s10 + $0x8] sm:$0x1f] }
  0x3f   : > { %502 = vmatprep.mubr.f32.mxu0 %v19808_v1  ;;  %1310 = vmatprep.mubr.f32.mxu1 %v19808_v1  ;;  %v397_v3 = vld [vmem:[%s15863_s10 + $0x18] sm:$0x1f]  ;;  %v394_v4 = vld [vmem:[%s15863_s10] sm:$0x1f]  ;;  %v428_v5 = vsel %vm423_vm0, %v395_v2, 0  ;;  %v300_v14 = vld [vmem:[%s19800_s1 + $0x8] sm:$0xff] }
  0x40   : > { %v434_v6 = vsel %vm423_vm0, %v397_v3, 0  ;;  %v425_v7 = vsel %vm423_vm0, %v394_v4, 0  ;;  %v396_v8 = vld [vmem:[%s15863_s10 + $0x10] sm:$0x1f]  ;;  %v299_v9 = vld [vmem:[%s19800_s1] sm:$0xff]  ;;  %v15881_v10 = vand.u32 4294901760, %v428_v5 }
  0x41   : > { %v15883_v11 = vand.u32 4294901760, %v434_v6  ;;  %v15885_v12 = vand.u32 4294901760, %v425_v7  ;;  %v431_v13 = vsel %vm423_vm0, %v396_v8, 0  ;;  %v301_v15 = vld [vmem:[%s19800_s1 + $0x10] sm:$0xff]  ;;  %v400_v17 = vsel %vm398_vm1, %v299_v9, 0  ;;  %v302_v20 = vld [vmem:[%s19800_s1 + $0x18] sm:$0xff] }
  0x42   : > { %v15894_v16 = vand.u32 4294901760, %v431_v13  ;;  %v403_v18 = vsel %vm398_vm1, %v300_v14, 0  ;;  %v406_v19 = vsel %vm398_vm1, %v301_v15, 0  ;;  %437 = vmatprep.subr.mxu0 %v15881_v10  ;;  %v15907_v22 = vand.u32 4294901760, %v400_v17  ;;  %v303_v44 = vld [vmem:[%s19800_s1 + $0x20] sm:$0xff]  ;;  %v304_v45 = vld [vmem:[%s19800_s1 + $0x28] sm:$0xff] }
  0x43   : > { %1245 = vmatprep.subr.mxu1 %v15883_v11  ;;  %v15905_v21 = vsub.f32 %v425_v7, %v15885_v12  ;;  %v15909_v23 = vand.u32 4294901760, %v403_v18  ;;  %v15912_v24 = vsub.f32 %v428_v5, %v15881_v10  ;;  %439 = vmatpush1.msra.mxu0 %v15885_v12  ;;  %v15920_v26 = vsub.f32 %v434_v6, %v15883_v11  ;;  %v305_v56 = vld [vmem:[%s19800_s1 + $0x30] sm:$0xff]  ;;  %v306_v0 = vld [vmem:[%s19800_s1 + $0x38] sm:$0xff]  ;;  %s15538_s30 = smul.u32 12, %s15859_s25  ;;  %s13642_s24 = scalar_lea.sflag [#allocation5], %s15859_s25 }
  0x44   : > { %20196 = vst [vmem:[#allocation9_spill] sm:$0xff] %v15907_v22  ;;  %1247 = vmatpush1.msra.mxu1 %v15894_v16  ;;  %v15917_v25 = vsub.f32 %v431_v13, %v15894_v16  ;;  %v15922_v27 = vand.u32 4294901760, %v406_v19  ;;  %v409_v28 = vsel %vm398_vm1, %v302_v20, 0  ;;  %v15926_v29 = vsub.f32 %v400_v17, %v15907_v22  ;;  %p20782_p11 = scmp.ne.s32.totalorder %s20191_s13, 0 }
  0x45   : > { %20197 = vst [vmem:[#allocation10_spill] sm:$0xff] %v15909_v23  ;;  %v15929_v30 = vsub.f32 %v403_v18, %v15909_v23  ;;  %v593_v31 = vand.u32 4294901760, %v15912_v24  ;;  %v599_v32 = vand.u32 4294901760, %v15905_v21  ;;  %v1401_v33 = vand.u32 4294901760, %v15920_v26  ;;  %s17611_s9 = scalar_lea.vmem [#allocation6], %s15538_s30 }
  0x46   : > { %20198 = vst [vmem:[#allocation11_spill] sm:$0xff] %v15922_v27  ;;  %20199 = vst [vmem:[#allocation12_spill] sm:$0xff] %v15926_v29  ;;  %v1407_v34 = vand.u32 4294901760, %v15917_v25  ;;  %v15936_v35 = vsub.f32 %v406_v19, %v15922_v27  ;;  %v15938_v36 = vand.u32 4294901760, %v409_v28  ;;  %v15941_v37 = vand.u32 4294901760, %v15926_v29  ;;  %s13656_s12 = sshll.u32 %s17611_s9, 4  ;;  %s19754_s12 = int_to_ptr.vmem [resolvable:$true] %s13656_s12 }
  0x47   : > { %20200 = vst [vmem:[#allocation13_spill] sm:$0xff] %v15929_v30  ;;  %v15944_v38 = vand.u32 4294901760, %v15929_v30  ;;  %v594_v39 = vsub.f32 %v15912_v24, %v593_v31  ;;  %v600_v40 = vsub.f32 %v15905_v21, %v599_v32  ;;  %v1402_v41 = vsub.f32 %v15920_v26, %v1401_v33  ;;  %s15644_s16 = scalar_lea.vmem %s19754_s12, 192 }
  0x48   : > { %20201 = vst [vmem:[#allocation14_spill] sm:$0xff] %v15936_v35  ;;  %20202 = vst [vmem:[#allocation15_spill] sm:$0xff] %v15938_v36  ;;  %v1408_v42 = vsub.f32 %v15917_v25, %v1407_v34  ;;  %v15959_v43 = vsub.f32 %v409_v28, %v15938_v36  ;;  %v506_v46 = vsub.f32 %v15926_v29, %v15941_v37  ;;  %v15972_v49 = vand.u32 4294901760, %v15936_v35  ;;  %p15645_p6 = scmp.ne.s32.totalorder %s19754_s12, %s15644_s16 }
  0x49   : > { %20203 = vst [vmem:[#allocation16_spill] sm:$0xff] %v15941_v37  ;;  %20204 = vst [vmem:[#allocation17_spill] sm:$0xff] %v15944_v38  ;;  %v517_v47 = vsub.f32 %v15929_v30, %v15944_v38  ;;  %v595_v48 = vand.u32 4294901760, %v594_v39  ;;  %v1403_v50 = vand.u32 4294901760, %v1402_v41  ;;  %v601_v51 = vand.u32 4294901760, %v600_v40 }
  0x4a   : > { %20205 = vst [vmem:[#allocation18_spill] sm:$0xff] %v15959_v43  ;;  %20206 = vst [vmem:[#allocation19_spill] sm:$0xff] %v15972_v49  ;;  %v15974_v52 = vand.u32 4294901760, %v506_v46  ;;  %v1409_v53 = vand.u32 4294901760, %v1408_v42  ;;  %v412_v54 = vsel %vm398_vm1, %v303_v44, 0  ;;  %v415_v55 = vsel %vm398_vm1, %v304_v45, 0  ;;  %p15646_p12 = pnand %p15645_p6, %p20782_p11 }
  0x4b   : > { %596 = vmatprep.subr.mxu0 %v595_v48  ;;  %1404 = vmatprep.subr.mxu1 %v1403_v50  ;;  %v15982_v57 = vand.u32 4294901760, %v15959_v43  ;;  %v15984_v58 = vand.u32 4294901760, %v412_v54  ;;  %v15988_v59 = vand.u32 4294901760, %v517_v47  ;;  %v528_v60 = vsub.f32 %v15936_v35, %v15972_v49  ;;  %v312_v45 = vld [vmem:[%s19801_s2] sm:$0xff]  ;;  %v314_v46 = vld [vmem:[%s19801_s2 + $0x10] sm:$0xff]  ;;  %v313_v48 = vld [vmem:[%s19801_s2 + $0x8] sm:$0xff] }
  0x4c   : > { %20207 = vst [vmem:[#allocation20_spill] sm:$0xff] %v15974_v52  ;;  %508 = vmatmul.mubr.f32.vlgmr.msra.gmra.mrb[0].mxu0 %v15974_v52  ;;  %1316 = vmatmul.mubr.f32.vlgmr.msra.gmra.mrb[0].mxu1 %v15974_v52  ;;  %v15992_v61 = vand.u32 4294901760, %v415_v55  ;;  %v418_v63 = vsel %vm398_vm1, %v305_v56, 0  ;;  %v421_v7 = vsel %vm398_vm1, %v306_v0, 0  ;;  %v15714_v47 = vmov 0   ;;  %v315_v50 = vld [vmem:[%s19801_s2 + $0x18] sm:$0xff]  ;;  %p15647_p13 = pneg %p15646_p12 }
  0x4d   : > { %20208 = vst [vmem:[#allocation21_spill] sm:$0xff] %v15982_v57  ;;  %20209 = vst [vmem:[#allocation22_spill] sm:$0xff] %v15984_v58  ;;  %513 = vmatprep.mubr.f32.mxu0 %v19808_v1  ;;  %1321 = vmatprep.mubr.f32.mxu1 %v19808_v1  ;;  %v15997_v62 = vsub.f32 %v412_v54, %v15984_v58  ;;  %v539_v2 = vsub.f32 %v15959_v43, %v15982_v57  ;;  %v16009_v3 = vand.u32 4294901760, %v528_v60  ;;  %v362_v54 = vld [vmem:[%s19803_s4 + $0x10] sm:$0xff]  ;;  %v384_v56 = vld [vmem:[#allocation2] sm:$0x1] }
  0x4e   : > { %20210 = vst [vmem:[#allocation23_spill] sm:$0xff] %v15988_v59  ;;  %20211 = vst [vmem:[#allocation24_spill] sm:$0xff] %v15992_v61  ;;  %602 = vmatpush1.msra.mxu0 %v601_v51  ;;  %1410 = vmatpush1.msra.mxu1 %v1409_v53  ;;  %v16015_v5 = vsub.f32 %v415_v55, %v15992_v61  ;;  %v16017_v6 = vand.u32 4294901760, %v418_v63  ;;  %v16034_v15 = vand.u32 4294901760, %v421_v7  ;;  %v360_v51 = vld [vmem:[%s19803_s4] sm:$0xff]  ;;  %v361_v53 = vld [vmem:[%s19803_s4 + $0x8] sm:$0xff] }
  0x4f   : > { %20212 = vst [vmem:[#allocation25_spill] sm:$0xff] %v15997_v62  ;;  %724 = vmatprep.subr.mxu0 %v15912_v24  ;;  %1532 = vmatprep.subr.mxu1 %v15920_v26  ;;  %20213 = vst [vmem:[#allocation26_spill] sm:$0xff] %v16009_v3  ;;  %v16012_v4 = vand.u32 4294901760, %v15997_v62  ;;  %v16022_v8 = vand.u32 4294901760, %v539_v2  ;;  %v316_v24 = vld [vmem:[%s19801_s2 + $0x20] sm:$0xff]  ;;  %v317_v26 = vld [vmem:[%s19801_s2 + $0x28] sm:$0xff] }
  0x50   : > { %519 = vmatmul.mubr.f32.gmra.mrb[2].mxu0 %v15988_v59  ;;  %1327 = vmatmul.mubr.f32.gmra.mrb[2].mxu1 %v15988_v59  ;;  %20215 = vst [vmem:[#allocation28_spill] sm:$0xff] %v16015_v5  ;;  %20216 = vst [vmem:[#allocation29_spill] sm:$0xff] %v16017_v6  ;;  %v16029_v13 = vand.u32 4294901760, %v16015_v5  ;;  %v16032_v14 = vsub.f32 %v418_v63, %v16017_v6  ;;  %v16048_v20 = vsub.f32 %v421_v7, %v16034_v15  ;;  %v363_v55 = vld [vmem:[%s19803_s4 + $0x18] sm:$0xff]  ;;  %vm2084_vm2 = vcmask 523264  }
  0x51   : > { %20214 = vst [vmem:[#allocation27_spill] sm:$0xff] %v16012_v4  ;;  %524 = vmatprep.mubr.f32.mxu0 %v19808_v1  ;;  %1332 = vmatprep.mubr.f32.mxu1 %v19808_v1  ;;  %20217 = vst [vmem:[#allocation30_spill] sm:$0xff] %v16022_v8  ;;  %v550_v9 = vsub.f32 %v15997_v62, %v16012_v4  ;;  %vm3701_vm3 = vcmask 261120  }
  0x52   : > { %20218 = vst [vmem:[#allocation31_spill] sm:$0xff] %v16029_v13  ;;  %20219 = vst [vmem:[#allocation32_spill] sm:$0xff] %v16032_v14  ;;  %v561_v18 = vsub.f32 %v16015_v5, %v16029_v13  ;;  %v16045_v19 = vand.u32 4294901760, %v16032_v14  ;;  %v16059_v40 = vand.u32 4294901760, %v16048_v20  ;;  %15588 = vset.pattern.permute.xlu0 %v15714_v47  ;;  %15589 = vset.pattern.permute.xlu1 %v15714_v47 }
  0x53   : > { %20220 = vst [vmem:[#allocation33_spill] sm:$0xff] %v16034_v15  ;;  %v16040_v17 = vand.u32 4294901760, %v550_v9  ;;  %20223 = vst [vmem:[#allocation36_spill] sm:$0xff] %v16048_v20  ;;  %322 = vperm.xlu0 %15588, %v312_v45   ;;  %332 = vperm.xlu1 %15589, %v314_v46  }
  0x54   : > { %530 = vmatmul.mubr.f32.gmra.mrb[4].mxu0 %v16009_v3  ;;  %1338 = vmatmul.mubr.f32.gmra.mrb[4].mxu1 %v16009_v3  ;;  %20222 = vst [vmem:[#allocation35_spill] sm:$0xff] %v16045_v19  ;;  %v16054_v28 = vand.u32 4294901760, %v561_v18  ;;  %v572_v39 = vsub.f32 %v16032_v14, %v16045_v19  ;;  %20225 = vst [vmem:[#allocation38_spill] sm:$0xff] %v16059_v40  ;;  %v583_v42 = vsub.f32 %v16048_v20, %v16059_v40 }
  0x55   : > { %535 = vmatprep.mubr.f32.mxu0 %v19808_v1  ;;  %1343 = vmatprep.mubr.f32.mxu1 %v19808_v1  ;;  %20221 = vst [vmem:[#allocation34_spill] sm:$0xff] %v16040_v17 }
  0x56   : > { %20224 = vst [vmem:[#allocation37_spill] sm:$0xff] %v16054_v28  ;;  %v16065_v41 = vand.u32 4294901760, %v572_v39  ;;  %v16073_v44 = vand.u32 4294901760, %v583_v42 }
  0x57   : > { %327 = vperm.xlu0 %15588, %v313_v48   ;;  %337 = vperm.xlu1 %15589, %v315_v50  }
  0x58   : > { %541 = vmatmul.mubr.f32.gmra.mrb[6].mxu0 %v16022_v8  ;;  %1349 = vmatmul.mubr.f32.gmra.mrb[6].mxu1 %v16022_v8  ;;  %20226 = vst [vmem:[#allocation39_spill] sm:$0xff] %v16065_v41  ;;  %20227 = vst [vmem:[#allocation40_spill] sm:$0xff] %v16073_v44 }
  0x59   : > { %546 = vmatprep.mubr.f32.mxu0 %v19808_v1  ;;  %1354 = vmatprep.mubr.f32.mxu1 %v19808_v1 }
  0x5b   : > { %342 = vperm.xlu0 %15588, %v316_v24   ;;  %347 = vperm.xlu1 %15589, %v317_v26  }
  0x5c   : > { %552 = vmatmul.mubr.f32.gmra.mrb[8].mxu0 %v16040_v17  ;;  %1360 = vmatmul.mubr.f32.gmra.mrb[8].mxu1 %v16040_v17 }
  0x5d   : > { %557 = vmatprep.mubr.f32.mxu0 %v19808_v1  ;;  %1365 = vmatprep.mubr.f32.mxu1 %v19808_v1 }
  0x60   : > { %563 = vmatmul.mubr.f32.gmra.mrb[10].mxu0 %v16054_v28  ;;  %1371 = vmatmul.mubr.f32.gmra.mrb[10].mxu1 %v16054_v28 }
  0x61   : > { %568 = vmatprep.mubr.f32.mxu0 %v19808_v1  ;;  %1376 = vmatprep.mubr.f32.mxu1 %v19808_v1 }
  0x64   : > { %574 = vmatmul.mubr.f32.gmra.mrb[12].mxu0 %v16065_v41  ;;  %1382 = vmatmul.mubr.f32.gmra.mrb[12].mxu1 %v16065_v41 }
  0x65   : > { %579 = vmatprep.mubr.f32.mxu0 %v19808_v1  ;;  %1387 = vmatprep.mubr.f32.mxu1 %v19808_v1 }
  0x68   : > { %585 = vmatmul.mubr.f32.gmra.mrb[14].mxu0 %v16073_v44  ;;  %1393 = vmatmul.mubr.f32.gmra.mrb[14].mxu1 %v16073_v44 }
  0x69   : > { %665 = vmatprep.mubr.f32.mxu0 %v19808_v1  ;;  %1473 = vmatprep.mubr.f32.mxu1 %v19808_v1 }
  0x6c   : > { %667 = vmatmul.mubr.f32.vlgmr.msra.gmra.mrb[0].mxu0 %v15907_v22  ;;  %1475 = vmatmul.mubr.f32.vlgmr.msra.gmra.mrb[0].mxu1 %v15907_v22 }
  0x6d   : > { %672 = vmatprep.mubr.f32.mxu0 %v19808_v1  ;;  %1480 = vmatprep.mubr.f32.mxu1 %v19808_v1 }
  0x6e   : > { %727 = vmatpush1.msra.mxu0 %v15905_v21  ;;  %1535 = vmatpush1.msra.mxu1 %v15917_v25 }
  0x6f   : > { %856 = vmatprep.subr.mxu0 %v15881_v10  ;;  %1664 = vmatprep.subr.mxu1 %v15883_v11 }
  0x70   : > { %674 = vmatmul.mubr.f32.gmra.mrb[2].mxu0 %v15909_v23  ;;  %1482 = vmatmul.mubr.f32.gmra.mrb[2].mxu1 %v15909_v23 }
  0x71   : > { %679 = vmatprep.mubr.f32.mxu0 %v19808_v1  ;;  %1487 = vmatprep.mubr.f32.mxu1 %v19808_v1 }
  0x74   : > { %681 = vmatmul.mubr.f32.gmra.mrb[4].mxu0 %v15922_v27  ;;  %1489 = vmatmul.mubr.f32.gmra.mrb[4].mxu1 %v15922_v27 }
  0x75   : > { %686 = vmatprep.mubr.f32.mxu0 %v19808_v1  ;;  %1494 = vmatprep.mubr.f32.mxu1 %v19808_v1 }
  0x78   : > { %688 = vmatmul.mubr.f32.gmra.mrb[6].mxu0 %v15938_v36  ;;  %1496 = vmatmul.mubr.f32.gmra.mrb[6].mxu1 %v15938_v36 }
  0x79   : > { %693 = vmatprep.mubr.f32.mxu0 %v19808_v1  ;;  %1501 = vmatprep.mubr.f32.mxu1 %v19808_v1 }
  0x7c   : > { %695 = vmatmul.mubr.f32.gmra.mrb[8].mxu0 %v15984_v58  ;;  %1503 = vmatmul.mubr.f32.gmra.mrb[8].mxu1 %v15984_v58 }
  0x7d   : > { %700 = vmatprep.mubr.f32.mxu0 %v19808_v1  ;;  %1508 = vmatprep.mubr.f32.mxu1 %v19808_v1 }
  0x80   : > { %702 = vmatmul.mubr.f32.gmra.mrb[10].mxu0 %v15992_v61  ;;  %1510 = vmatmul.mubr.f32.gmra.mrb[10].mxu1 %v15992_v61 }
  0x81   : > { %707 = vmatprep.mubr.f32.mxu0 %v19808_v1  ;;  %1515 = vmatprep.mubr.f32.mxu1 %v19808_v1 }
  0x84   : > { %709 = vmatmul.mubr.f32.gmra.mrb[12].mxu0 %v16017_v6  ;;  %1517 = vmatmul.mubr.f32.gmra.mrb[12].mxu1 %v16017_v6 }
  0x85   : > { %714 = vmatprep.mubr.f32.mxu0 %v19808_v1  ;;  %1522 = vmatprep.mubr.f32.mxu1 %v19808_v1 }
  0x88   : > { %716 = vmatmul.mubr.f32.gmra.mrb[14].mxu0 %v16034_v15  ;;  %1524 = vmatmul.mubr.f32.gmra.mrb[14].mxu1 %v16034_v15 }
  0x89   : > { %790 = vmatprep.mubr.f32.mxu0 %v19808_v1  ;;  %1598 = vmatprep.mubr.f32.mxu1 %v19808_v1 }
  0x8c   : > { %793 = vmatmul.mubr.f32.vlgmr.msra.gmra.mrb[0].mxu0 %v15926_v29  ;;  %1601 = vmatmul.mubr.f32.vlgmr.msra.gmra.mrb[0].mxu1 %v15926_v29 }
  0x8d   : > { %798 = vmatprep.mubr.f32.mxu0 %v19808_v1  ;;  %1606 = vmatprep.mubr.f32.mxu1 %v19808_v1 }
  0x8e   : > { %858 = vmatpush1.msra.mxu0 %v15885_v12  ;;  %1666 = vmatpush1.msra.mxu1 %v15894_v16 }
  0x8f   : > { %997 = vmatprep.subr.mxu0 %v593_v31  ;;  %1805 = vmatprep.subr.mxu1 %v1401_v33  ;;  %v318_v31 = vld [vmem:[%s19801_s2 + $0x30] sm:$0xff]  ;;  %v319_v33 = vld [vmem:[%s19801_s2 + $0x38] sm:$0xff] }
  0x90   : > { %801 = vmatmul.mubr.f32.gmra.mrb[2].mxu0 %v15929_v30  ;;  %1609 = vmatmul.mubr.f32.gmra.mrb[2].mxu1 %v15929_v30 }
  0x91   : > { %806 = vmatprep.mubr.f32.mxu0 %v19808_v1  ;;  %1614 = vmatprep.mubr.f32.mxu1 %v19808_v1 }
  0x92   : > { %352 = vperm.xlu0 %15588, %v318_v31   ;;  %357 = vperm.xlu1 %15589, %v319_v33  }
  0x94   : > { %809 = vmatmul.mubr.f32.gmra.mrb[4].mxu0 %v15936_v35  ;;  %1617 = vmatmul.mubr.f32.gmra.mrb[4].mxu1 %v15936_v35 }
  0x95   : > { %814 = vmatprep.mubr.f32.mxu0 %v19808_v1  ;;  %1622 = vmatprep.mubr.f32.mxu1 %v19808_v1 }
  0x96   : > { %366 = vperm.xlu0 %15588, %v360_v51   ;;  %371 = vperm.xlu1 %15589, %v361_v53  }
  0x98   : > { %817 = vmatmul.mubr.f32.gmra.mrb[6].mxu0 %v15959_v43  ;;  %1625 = vmatmul.mubr.f32.gmra.mrb[6].mxu1 %v15959_v43 }
  0x99   : > { %822 = vmatprep.mubr.f32.mxu0 %v19808_v1  ;;  %1630 = vmatprep.mubr.f32.mxu1 %v19808_v1 }
  0x9a   : > { %376 = vperm.xlu0 %15588, %v362_v54   ;;  %381 = vperm.xlu1 %15589, %v363_v55  }
  0x9c   : > { %825 = vmatmul.mubr.f32.gmra.mrb[8].mxu0 %v15997_v62  ;;  %1633 = vmatmul.mubr.f32.gmra.mrb[8].mxu1 %v15997_v62 }
  0x9d   : > { %830 = vmatprep.mubr.f32.mxu0 %v19808_v1  ;;  %1638 = vmatprep.mubr.f32.mxu1 %v19808_v1 }
  0x9e   : > { %387 = vperm.xlu0 %15588, %v384_v56  }
  0xa0   : > { %833 = vmatmul.mubr.f32.gmra.mrb[10].mxu0 %v16015_v5  ;;  %1641 = vmatmul.mubr.f32.gmra.mrb[10].mxu1 %v16015_v5 }
  0xa1   : > { %838 = vmatprep.mubr.f32.mxu0 %v19808_v1  ;;  %1646 = vmatprep.mubr.f32.mxu1 %v19808_v1 }
  0xa4   : > { %841 = vmatmul.mubr.f32.gmra.mrb[12].mxu0 %v16032_v14  ;;  %1649 = vmatmul.mubr.f32.gmra.mrb[12].mxu1 %v16032_v14 }
  0xa5   : > { %846 = vmatprep.mubr.f32.mxu0 %v19808_v1  ;;  %1654 = vmatprep.mubr.f32.mxu1 %v19808_v1 }
  0xa8   : > { %849 = vmatmul.mubr.f32.gmra.mrb[14].mxu0 %v16048_v20  ;;  %1657 = vmatmul.mubr.f32.gmra.mrb[14].mxu1 %v16048_v20 }
  0xa9   : > { %921 = vmatprep.mubr.f32.mxu0 %v19808_v1  ;;  %1729 = vmatprep.mubr.f32.mxu1 %v19808_v1 }
  0xac   : > { %925 = vmatmul.mubr.f32.vlgmr.msra.gmra.mrb[0].mxu0 %v15941_v37  ;;  %1733 = vmatmul.mubr.f32.vlgmr.msra.gmra.mrb[0].mxu1 %v15941_v37 }
  0xad   : > { %930 = vmatprep.mubr.f32.mxu0 %v19808_v1  ;;  %1738 = vmatprep.mubr.f32.mxu1 %v19808_v1 }
  0xae   : > { %1001 = vmatpush1.msra.mxu0 %v599_v32  ;;  %1809 = vmatpush1.msra.mxu1 %v1407_v34  ;;  %v310_v32 = vld [vmem:[%s19802_s3 + $0x18] sm:$0xff] }
  0xaf   : > { %1122 = vmatprep.subr.mxu0 %v15881_v10  ;;  %1930 = vmatprep.subr.mxu1 %v15883_v11  ;;  %v307_v10 = vld [vmem:[%s19802_s3] sm:$0xff]  ;;  %v308_v11 = vld [vmem:[%s19802_s3 + $0x8] sm:$0xff]  ;;  %v2095_v0 = vsel %vm2084_vm2, %v310_v32, 0 }
  0xb0   : > { %934 = vmatmul.mubr.f32.gmra.mrb[2].mxu0 %v15944_v38  ;;  %1742 = vmatmul.mubr.f32.gmra.mrb[2].mxu1 %v15944_v38  ;;  %v2089_v21 = vsel %vm2084_vm2, %v308_v11, 0  ;;  %v16322_v18 = vand.u32 4294901760, %v2095_v0 }
  0xb1   : > { %939 = vmatprep.mubr.f32.mxu0 %v19808_v1  ;;  %1747 = vmatprep.mubr.f32.mxu1 %v19808_v1  ;;  %v16309_v60 = vand.u32 4294901760, %v2089_v21 }
  0xb2   : > { %20234 = vst [vmem:[#allocation47_spill] sm:$0xff] %v16322_v18  ;;  %v16336_v50 = vsub.f32 %v2095_v0, %v16322_v18 }
  0xb3   : > { %20229 = vst [vmem:[#allocation42_spill] sm:$0xff] %v16309_v60  ;;  %v16317_v7 = vsub.f32 %v2089_v21, %v16309_v60 }
  0xb4   : > { %943 = vmatmul.mubr.f32.gmra.mrb[4].mxu0 %v15972_v49  ;;  %1751 = vmatmul.mubr.f32.gmra.mrb[4].mxu1 %v15972_v49  ;;  %20239 = vst [vmem:[#allocation52_spill] sm:$0xff] %v16336_v50  ;;  %v16351_v0 = vand.u32 4294901760, %v16336_v50 }
  0xb5   : > { %948 = vmatprep.mubr.f32.mxu0 %v19808_v1  ;;  %1756 = vmatprep.mubr.f32.mxu1 %v19808_v1  ;;  %20232 = vst [vmem:[#allocation45_spill] sm:$0xff] %v16317_v7  ;;  %v16330_v45 = vand.u32 4294901760, %v16317_v7 }
  0xb6   : > { %20241 = vst [vmem:[#allocation54_spill] sm:$0xff] %v16351_v0 }
  0xb7   : > { %20237 = vst [vmem:[#allocation50_spill] sm:$0xff] %v16330_v45  ;;  %v2192_v11 = vsub.f32 %v16317_v7, %v16330_v45 }
  0xb8   : > { %952 = vmatmul.mubr.f32.gmra.mrb[6].mxu0 %v15982_v57  ;;  %1760 = vmatmul.mubr.f32.gmra.mrb[6].mxu1 %v15982_v57 }
  0xb9   : > { %957 = vmatprep.mubr.f32.mxu0 %v19808_v1  ;;  %1765 = vmatprep.mubr.f32.mxu1 %v19808_v1 }
  0xbc   : > { %961 = vmatmul.mubr.f32.gmra.mrb[8].mxu0 %v16012_v4  ;;  %1769 = vmatmul.mubr.f32.gmra.mrb[8].mxu1 %v16012_v4 }
  0xbd   : > { %966 = vmatprep.mubr.f32.mxu0 %v19808_v1  ;;  %1774 = vmatprep.mubr.f32.mxu1 %v19808_v1 }
  0xc0   : > { %970 = vmatmul.mubr.f32.gmra.mrb[10].mxu0 %v16029_v13  ;;  %1778 = vmatmul.mubr.f32.gmra.mrb[10].mxu1 %v16029_v13 }
  0xc1   : > { %975 = vmatprep.mubr.f32.mxu0 %v19808_v1  ;;  %1783 = vmatprep.mubr.f32.mxu1 %v19808_v1 }
  0xc4   : > { %979 = vmatmul.mubr.f32.gmra.mrb[12].mxu0 %v16045_v19  ;;  %1787 = vmatmul.mubr.f32.gmra.mrb[12].mxu1 %v16045_v19 }
  0xc5   : > { %984 = vmatprep.mubr.f32.mxu0 %v19808_v1  ;;  %1792 = vmatprep.mubr.f32.mxu1 %v19808_v1 }
  0xc8   : > { %988 = vmatmul.mubr.f32.gmra.mrb[14].mxu0 %v16059_v40  ;;  %1796 = vmatmul.mubr.f32.gmra.mrb[14].mxu1 %v16059_v40 }
  0xc9   : > { %1064 = vmatprep.mubr.f32.mxu0 %v19808_v1  ;;  %1872 = vmatprep.mubr.f32.mxu1 %v19808_v1 }
  0xcc   : > { %1066 = vmatmul.mubr.f32.vlgmr.msra.gmra.mrb[0].mxu0 %v15907_v22  ;;  %1874 = vmatmul.mubr.f32.vlgmr.msra.gmra.mrb[0].mxu1 %v15907_v22 }
  0xcd   : > { %1071 = vmatprep.mubr.f32.mxu0 %v19808_v1  ;;  %1879 = vmatprep.mubr.f32.mxu1 %v19808_v1 }
  0xce   : > { %1124 = vmatpush1.msra.mxu0 %v15885_v12  ;;  %1932 = vmatpush1.msra.mxu1 %v15894_v16  ;;  %v309_v12 = vld [vmem:[%s19802_s3 + $0x10] sm:$0xff]  ;;  %v2086_v16 = vsel %vm2084_vm2, %v307_v10, 0 }
  0xcf   : > { %v2092_v25 = vsel %vm2084_vm2, %v309_v12, 0  ;;  %v16307_v34 = vand.u32 4294901760, %v2086_v16 }
  0xd0   : > { %1073 = vmatmul.mubr.f32.gmra.mrb[2].mxu0 %v15909_v23  ;;  %1881 = vmatmul.mubr.f32.gmra.mrb[2].mxu1 %v15909_v23  ;;  %v16311_v63 = vand.u32 4294901760, %v2092_v25 }
  0xd1   : > { %1078 = vmatprep.mubr.f32.mxu0 %v19808_v1  ;;  %1886 = vmatprep.mubr.f32.mxu1 %v19808_v1  ;;  %20228 = vst [vmem:[#allocation41_spill] sm:$0xff] %v16307_v34  ;;  %v16314_v2 = vsub.f32 %v2086_v16, %v16307_v34 }
  0xd2   : > { %20230 = vst [vmem:[#allocation43_spill] sm:$0xff] %v16311_v63  ;;  %v16320_v9 = vsub.f32 %v2092_v25, %v16311_v63  ;;  %v16324_v39 = vpop.permute.xlu0 %322  ;;  %v16361_v40 = vpop.permute.xlu1 %332 }
  0xd3   : > { %20231 = vst [vmem:[#allocation44_spill] sm:$0xff] %v16314_v2  ;;  %20235 = vst [vmem:[#allocation48_spill] sm:$0xff] %v16324_v39  ;;  %v16327_v42 = vand.u32 4294901760, %v16314_v2 }
  0xd4   : > { %1080 = vmatmul.mubr.f32.gmra.mrb[4].mxu0 %v15922_v27  ;;  %1888 = vmatmul.mubr.f32.gmra.mrb[4].mxu1 %v15922_v27  ;;  %20233 = vst [vmem:[#allocation46_spill] sm:$0xff] %v16320_v9  ;;  %v16333_v48 = vand.u32 4294901760, %v16320_v9  ;;  %20242 = vst [vmem:[#allocation55_spill] sm:$0xff] %v16361_v40 }
  0xd5   : > { %1085 = vmatprep.mubr.f32.mxu0 %v19808_v1  ;;  %1893 = vmatprep.mubr.f32.mxu1 %v19808_v1  ;;  %20236 = vst [vmem:[#allocation49_spill] sm:$0xff] %v16327_v42  ;;  %v2181_v10 = vsub.f32 %v16314_v2, %v16327_v42 }
  0xd6   : > { %20238 = vst [vmem:[#allocation51_spill] sm:$0xff] %v16333_v48  ;;  %v16342_v54 = vpop.permute.xlu0 %327  ;;  %v2203_v32 = vsub.f32 %v16320_v9, %v16333_v48 }
  0xd7   : > { %20240 = vst [vmem:[#allocation53_spill] sm:$0xff] %v16342_v54 }
  0xd8   : > { %1087 = vmatmul.mubr.f32.gmra.mrb[6].mxu0 %v15938_v36  ;;  %1895 = vmatmul.mubr.f32.gmra.mrb[6].mxu1 %v15938_v36  ;;  %v16399_v30 = vand.u32 4294901760, %v2203_v32 }
  0xd9   : > { %1092 = vmatprep.mubr.f32.mxu0 %v19808_v1  ;;  %1900 = vmatprep.mubr.f32.mxu1 %v19808_v1 }
  0xda   : > { %20248 = vst [vmem:[#allocation60_spill] sm:$0xff] %v16399_v30 }
  0xdc   : > { %1094 = vmatmul.mubr.f32.gmra.mrb[8].mxu0 %v15984_v58  ;;  %1902 = vmatmul.mubr.f32.gmra.mrb[8].mxu1 %v15984_v58 }
  0xdd   : > { %1099 = vmatprep.mubr.f32.mxu0 %v19808_v1  ;;  %1907 = vmatprep.mubr.f32.mxu1 %v19808_v1 }
  0xe0   : > { %1101 = vmatmul.mubr.f32.gmra.mrb[10].mxu0 %v15992_v61  ;;  %1909 = vmatmul.mubr.f32.gmra.mrb[10].mxu1 %v15992_v61 }
  0xe1   : > { %1106 = vmatprep.mubr.f32.mxu0 %v19808_v1  ;;  %1914 = vmatprep.mubr.f32.mxu1 %v19808_v1 }
  0xe4   : > { %1108 = vmatmul.mubr.f32.gmra.mrb[12].mxu0 %v16017_v6  ;;  %1916 = vmatmul.mubr.f32.gmra.mrb[12].mxu1 %v16017_v6 }
  0xe5   : > { %1113 = vmatprep.mubr.f32.mxu0 %v19808_v1  ;;  %1921 = vmatprep.mubr.f32.mxu1 %v19808_v1 }
  0xe8   : > { %1115 = vmatmul.mubr.f32.gmra.mrb[14].mxu0 %v16034_v15  ;;  %1923 = vmatmul.mubr.f32.gmra.mrb[14].mxu1 %v16034_v15 }
  0xe9   : > { %1187 = vmatprep.mubr.f32.mxu0 %v19808_v1  ;;  %1995 = vmatprep.mubr.f32.mxu1 %v19808_v1 }
  0xec   : > { %1189 = vmatmul.mubr.f32.vlgmr.msra.gmra.mrb[0].mxu0 %v15907_v22  ;;  %1997 = vmatmul.mubr.f32.vlgmr.msra.gmra.mrb[0].mxu1 %v15907_v22 }
  0xed   : > { %1194 = vmatprep.mubr.f32.mxu0 %v19808_v1  ;;  %2002 = vmatprep.mubr.f32.mxu1 %v19808_v1 }
  0xf0   : > { %1196 = vmatmul.mubr.f32.gmra.mrb[2].mxu0 %v15909_v23  ;;  %2004 = vmatmul.mubr.f32.gmra.mrb[2].mxu1 %v15909_v23 }
  0xf1   : > { %1201 = vmatprep.mubr.f32.mxu0 %v19808_v1  ;;  %2009 = vmatprep.mubr.f32.mxu1 %v19808_v1 }
  0xf4   : > { %1203 = vmatmul.mubr.f32.gmra.mrb[4].mxu0 %v15922_v27  ;;  %2011 = vmatmul.mubr.f32.gmra.mrb[4].mxu1 %v15922_v27 }
  0xf5   : > { %1208 = vmatprep.mubr.f32.mxu0 %v19808_v1  ;;  %2016 = vmatprep.mubr.f32.mxu1 %v19808_v1 }
  0xf8   : > { %1210 = vmatmul.mubr.f32.gmra.mrb[6].mxu0 %v15938_v36  ;;  %2018 = vmatmul.mubr.f32.gmra.mrb[6].mxu1 %v15938_v36 }
  0xf9   : > { %1215 = vmatprep.mubr.f32.mxu0 %v19808_v1  ;;  %2023 = vmatprep.mubr.f32.mxu1 %v19808_v1 }
  0xfc   : > { %1217 = vmatmul.mubr.f32.gmra.mrb[8].mxu0 %v15984_v58  ;;  %2025 = vmatmul.mubr.f32.gmra.mrb[8].mxu1 %v15984_v58 }
  0xfd   : > { %1222 = vmatprep.mubr.f32.mxu0 %v19808_v1  ;;  %2030 = vmatprep.mubr.f32.mxu1 %v19808_v1 }
 0x100   : > { %1224 = vmatmul.mubr.f32.gmra.mrb[10].mxu0 %v15992_v61  ;;  %2032 = vmatmul.mubr.f32.gmra.mrb[10].mxu1 %v15992_v61 }
 0x101   : > { %1229 = vmatprep.mubr.f32.mxu0 %v19808_v1  ;;  %2037 = vmatprep.mubr.f32.mxu1 %v19808_v1 }
 0x104   : > { %1231 = vmatmul.mubr.f32.gmra.mrb[12].mxu0 %v16017_v6  ;;  %2039 = vmatmul.mubr.f32.gmra.mrb[12].mxu1 %v16017_v6  ;;  %v16416_v6 = vpop.permute.xlu1 %337 }
 0x105   : > { %1236 = vmatprep.mubr.f32.mxu0 %v19808_v1  ;;  %2044 = vmatprep.mubr.f32.mxu1 %v19808_v1  ;;  %20249 = vst [vmem:[#allocation61_spill] sm:$0xff] %v16416_v6 }
 0x108   : > { %1238 = vmatmul.mubr.f32.gmra.mrb[14].mxu0 %v16034_v15  ;;  %2046 = vmatmul.mubr.f32.gmra.mrb[14].mxu1 %v16034_v15 }
 0x109   : > { %2177 = vmatprep.mubr.f32.mxu0 %v19808_v1  ;;  %2971 = vmatprep.mubr.f32.mxu1 %v19808_v1 }
 0x1bf   : > { %v1190_v46 = vpop.f32.mrb[0].mxu0  ;;  %v1998_v47 = vpop.f32.mrb[0].mxu1 }
 0x1c0   : > { %v14600_v24 = vadd.f32 %v1190_v46, %v16324_v39  ;;  %v14616_v26 = vadd.f32 %v1998_v47, %v16324_v39  ;;  %v1192_v31 = vpop.f32.mrb[1].mxu0  ;;  %v2000_v33 = vpop.f32.mrb[1].mxu1 }
 0x1c1   : > { %v14601_v51 = vadd.f32 %v1192_v31, %v16324_v39  ;;  %v14617_v53 = vadd.f32 %v2000_v33, %v16324_v39 }
 0x1c2   : > { %v2052_v55 = vmax.f32 %v14600_v24, 0.0  ;;  %v2054_v56 = vmax.f32 %v14616_v26, 0.0 }
 0x1c3   : > { %v2053_v12 = vmax.f32 %v14601_v51, 0.0  ;;  %v2055_v16 = vmax.f32 %v14617_v53, 0.0  ;;  %v1197_v21 = vpop.f32.mrb[2].mxu0  ;;  %v2005_v25 = vpop.f32.mrb[2].mxu1 }
 0x1c4   : > { %v2099_v46 = vand.u32 4294901760, %v2052_v55  ;;  %v2893_v47 = vand.u32 4294901760, %v2054_v56  ;;  %v14602_v24 = vadd.f32 %v1197_v21, %v16342_v54  ;;  %v14618_v26 = vadd.f32 %v2005_v25, %v16342_v54  ;;  %v1199_v31 = vpop.f32.mrb[3].mxu0  ;;  %v2007_v33 = vpop.f32.mrb[3].mxu1 }
 0x1c5   : > { %v16355_v1 = vand.u32 4294901760, %v2053_v12  ;;  %v16357_v51 = vand.u32 4294901760, %v2055_v16  ;;  %v14603_v53 = vadd.f32 %v1199_v31, %v16342_v54  ;;  %v14619_v39 = vadd.f32 %v2007_v33, %v16342_v54 }
 0x1c6   : > { %v16363_v19 = vsub.f32 %v2052_v55, %v2099_v46  ;;  %v16365_v13 = vsub.f32 %v2054_v56, %v2893_v47  ;;  %v2056_v4 = vmax.f32 %v14602_v24, 0.0  ;;  %v2058_v21 = vmax.f32 %v14618_v26, 0.0 }
 0x1c7   : > { %v16368_v25 = vsub.f32 %v2053_v12, %v16355_v1  ;;  %v16371_v57 = vsub.f32 %v2055_v16, %v16357_v51  ;;  %v2057_v49 = vmax.f32 %v14603_v53, 0.0  ;;  %v2059_v38 = vmax.f32 %v14619_v39, 0.0  ;;  %v1204_v37 = vpop.f32.mrb[4].mxu0  ;;  %v2012_v31 = vpop.f32.mrb[4].mxu1 }
 0x1c8   : > { %v19844_v33 = vand.u32 4294901760, %v16363_v19  ;;  %v2103_v55 = vand.u32 4294901760, %v2056_v4  ;;  %v2897_v20 = vand.u32 4294901760, %v2058_v21  ;;  %v1206_v56 = vpop.f32.mrb[5].mxu0  ;;  %v2014_v14 = vpop.f32.mrb[5].mxu1  ;;  %v16379_v12 = vand.u32 4294901760, %v2181_v10 }
 0x1c9   : > { %v16375_v24 = vand.u32 4294901760, %v2057_v49  ;;  %v16377_v26 = vand.u32 4294901760, %v2059_v38  ;;  %v16390_v54 = vand.u32 4294901760, %v2192_v11  ;;  %v20246_v5 = vand.u32 4294901760, %v16365_v13 }
 0x1ca   : > { %20243 = vst [vmem:[#allocation56_spill] sm:$0xff] %v16379_v12  ;;  %v16384_v39 = vsub.f32 %v16363_v19, %v19844_v33  ;;  %v16386_v16 = vpack.c.bf16 %v2103_v55, %v2099_v46  ;;  %v16388_v53 = vsub.f32 %v2056_v4, %v2103_v55  ;;  %v16397_v43 = vpack.c.bf16 %v2897_v20, %v2893_v47 }
 0x1cb   : > { %20245 = vst [vmem:[#allocation58_spill] sm:$0xff] %v16390_v54  ;;  %v16395_v62 = vsub.f32 %v16365_v13, %v20246_v5  ;;  %v1211_v10 = vpop.f32.mrb[6].mxu0  ;;  %v2019_v35 = vpop.f32.mrb[6].mxu1  ;;  %v16405_v11 = vsub.f32 %v2058_v21, %v2897_v20  ;;  %v14604_v55 = vadd.f32 %v1204_v37, %v16361_v40  ;;  %v16410_v15 = vsub.f32 %v2057_v49, %v16375_v24 }
 0x1cc   : > { %20244 = vst [vmem:[#allocation57_spill] sm:$0xff] %v16386_v16  ;;  %20247 = vst [vmem:[#allocation59_spill] sm:$0xff] %v16397_v43  ;;  %v1213_v29 = vpop.f32.mrb[7].mxu0  ;;  %v2021_v5 = vpop.f32.mrb[7].mxu1  ;;  %v16413_v32 = vsub.f32 %v2059_v38, %v16377_v26  ;;  %v14620_v33 = vadd.f32 %v2012_v31, %v16361_v40  ;;  %v14605_v21 = vadd.f32 %v1206_v56, %v16361_v40  ;;  %v20250_v56 = vand.u32 4294901760, %v16388_v53 }
 0x1cd   : > { %v2060_v20 = vmax.f32 %v14604_v55, 0.0  ;;  %v14621_v37 = vadd.f32 %v2014_v14, %v16361_v40  ;;  %v14606_v49 = vadd.f32 %v1211_v10, %v16416_v6  ;;  %v14622_v61 = vadd.f32 %v2019_v35, %v16416_v6 }
 0x1ce   : > { %v2062_v47 = vmax.f32 %v14620_v33, 0.0  ;;  %v2061_v27 = vmax.f32 %v14605_v21, 0.0  ;;  %v16430_v14 = vsub.f32 %v16388_v53, %v20250_v56  ;;  %v14607_v21 = vadd.f32 %v1213_v29, %v16416_v6 }
 0x1cf   : > { %v1218_v38 = vpop.f32.mrb[8].mxu0  ;;  %v2026_v58 = vpop.f32.mrb[8].mxu1  ;;  %v2107_v36 = vand.u32 4294901760, %v2060_v20  ;;  %v2063_v23 = vmax.f32 %v14621_v37, 0.0  ;;  %v2064_v46 = vmax.f32 %v14606_v49, 0.0  ;;  %v2066_v10 = vmax.f32 %v14622_v61, 0.0 }
 0x1d0   : > { %v1220_v4 = vpop.f32.mrb[9].mxu0  ;;  %v16425_v55 = vpop.f32.mrb[9].mxu1  ;;  %v2901_v33 = vand.u32 4294901760, %v2062_v47  ;;  %v16434_v35 = vand.u32 4294901760, %v2061_v27  ;;  %v16442_v41 = vadd.f32 %v2021_v5, %v16416_v6  ;;  %v20253_v49 = vand.u32 4294901760, %v16405_v11 }
 0x1d1   : > { %v16432_v40 = vsub.f32 %v2060_v20, %v2107_v36  ;;  %v16436_v22 = vand.u32 4294901760, %v2063_v23  ;;  %v2111_v31 = vand.u32 4294901760, %v2064_v46  ;;  %v2905_v44 = vand.u32 4294901760, %v2066_v10 }
 0x1d2   : > { %v16439_v37 = vsub.f32 %v2062_v47, %v2901_v33  ;;  %v16447_v61 = vsub.f32 %v16405_v11, %v20253_v49  ;;  %v16451_v17 = vsub.f32 %v2061_v27, %v16434_v35  ;;  %v2065_v29 = vmax.f32 %v14607_v21, 0.0 }
 0x1d3   : > { %20251 = vst [vmem:[#allocation62_spill] sm:$0xff] %v16432_v40  ;;  %v1225_v56 = vpop.f32.mrb[10].mxu0  ;;  %v2033_v28 = vpop.f32.mrb[10].mxu1  ;;  %v19883_v20 = vand.u32 4294901760, %v16432_v40  ;;  %v16454_v59 = vpack.c.bf16 %v2111_v31, %v2107_v36  ;;  %v16456_v5 = vsub.f32 %v2064_v46, %v2111_v31  ;;  %v16458_v6 = vpack.c.bf16 %v2905_v44, %v2901_v33 }
 0x1d4   : > { %20252 = vst [vmem:[#allocation63_spill] sm:$0xff] %v16439_v37  ;;  %v1227_v47 = vpop.f32.mrb[11].mxu0  ;;  %v2035_v8 = vpop.f32.mrb[11].mxu1  ;;  %v19884_v3 = vand.u32 4294901760, %v16439_v37  ;;  %v16467_v27 = vsub.f32 %v2063_v23, %v16436_v22  ;;  %v16469_v21 = vsub.f32 %v2066_v10, %v2905_v44  ;;  %v16477_v31 = vand.u32 4294901760, %v2065_v29 }
 0x1d5   : > { %20254 = vst [vmem:[#allocation64_spill] sm:$0xff] %v16454_v59  ;;  %20255 = vst [vmem:[#allocation65_spill] sm:$0xff] %v16456_v5  ;;  %v16464_v49 = vsub.f32 %v16432_v40, %v19883_v20  ;;  %v2067_v33 = vmax.f32 %v16442_v41, 0.0  ;;  %v16488_v10 = vpack.c.bf16 %v16375_v24, %v16355_v1  ;;  %v16498_v41 = vpop.permute.xlu0 %342  ;;  %v20261_v42 = vand.u32 4294901760, %v16456_v5  ;;  %v16508_v24 = vpop.permute.xlu1 %347 }
 0x1d6   : > { %20256 = vst [vmem:[#allocation66_spill] sm:$0xff] %v16458_v6  ;;  %20257 = vst [vmem:[#allocation67_spill] sm:$0xff] %v16469_v21  ;;  %v16474_v36 = vsub.f32 %v16439_v37, %v19884_v3  ;;  %v16492_v3 = vpack.c.bf16 %v16377_v26, %v16357_v51  ;;  %v14608_v45 = vadd.f32 %v1218_v38, %v16498_v41  ;;  %v20263_v38 = vand.u32 4294901760, %v16469_v21 }
 0x1d7   : > { %v16480_v52 = vpop.f32.mrb[12].mxu0  ;;  %v16482_v20 = vpop.f32.mrb[12].mxu1  ;;  %20258 = vst [vmem:[#allocation68_spill] sm:$0xff] %v16488_v10  ;;  %20260 = vst [vmem:[#allocation70_spill] sm:$0xff] %v16498_v41  ;;  %v16506_v1 = vsub.f32 %v16456_v5, %v20261_v42  ;;  %13737 = vmatprep.subr.bf16.mxu0 %v16488_v10  ;;  %v14624_v23 = vadd.f32 %v2026_v58, %v16498_v41  ;;  %v16518_v9 = vsub.f32 %v2065_v29, %v16477_v31 }
 0x1d8   : > { %20259 = vst [vmem:[#allocation69_spill] sm:$0xff] %v16492_v3  ;;  %v16494_v46 = vpop.f32.mrb[13].mxu0  ;;  %v16496_v48 = vpop.f32.mrb[13].mxu1  ;;  %20262 = vst [vmem:[#allocation71_spill] sm:$0xff] %v16508_v24  ;;  %13833 = vmatprep.subr.bf16.mxu1 %v16492_v3  ;;  %v2903_v42 = vand.u32 4294901760, %v2067_v33  ;;  %13739 = vmatpush1.bf16.msra.mxu0 %v16386_v16  ;;  %v14609_v51 = vadd.f32 %v1220_v4, %v16498_v41  ;;  %v16530_v58 = vsub.f32 %v16469_v21, %v20263_v38 }
 0x1d9   : > { %13835 = vmatpush1.bf16.msra.mxu1 %v16397_v43  ;;  %v2068_v44 = vmax.f32 %v14608_v45, 0.0  ;;  %v2070_v2 = vmax.f32 %v14624_v23, 0.0  ;;  %v14625_v29 = vadd.f32 %v16425_v55, %v16498_v41  ;;  %v14610_v10 = vadd.f32 %v1225_v56, %v16508_v24 }
 0x1da   : > { %v2069_v43 = vmax.f32 %v14609_v51, 0.0  ;;  %v14626_v18 = vadd.f32 %v2033_v28, %v16508_v24  ;;  %v14611_v45 = vadd.f32 %v1227_v47, %v16508_v24  ;;  %v14627_v41 = vadd.f32 %v2035_v8, %v16508_v24 }
 0x1db   : > { %v16523_v26 = vpop.f32.mrb[14].mxu0  ;;  %v16525_v7 = vpop.f32.mrb[14].mxu1  ;;  %v2115_v63 = vand.u32 4294901760, %v2068_v44  ;;  %v2909_v60 = vand.u32 4294901760, %v2070_v2  ;;  %v2071_v38 = vmax.f32 %v14625_v29, 0.0  ;;  %v2072_v34 = vmax.f32 %v14610_v10, 0.0 }
 0x1dc   : > { %v16534_v3 = vpop.f32.mrb[15].mxu0  ;;  %v16536_v16 = vpop.f32.mrb[15].mxu1  ;;  %v16542_v23 = vand.u32 4294901760, %v2069_v43  ;;  %v2074_v55 = vmax.f32 %v14626_v18, 0.0  ;;  %v2073_v56 = vmax.f32 %v14611_v45, 0.0  ;;  %v16551_v4 = vsub.f32 %v2067_v33, %v2903_v42 }
 0x1dd   : > { %v16545_v21 = vsub.f32 %v2068_v44, %v2115_v63  ;;  %v16547_v37 = vsub.f32 %v2070_v2, %v2909_v60  ;;  %v16549_v51 = vand.u32 4294901760, %v2071_v38  ;;  %v2119_v28 = vand.u32 4294901760, %v2072_v34 }
 0x1de   : > { %v2913_v5 = vand.u32 4294901760, %v2074_v55  ;;  %v2075_v29 = vmax.f32 %v14627_v41, 0.0  ;;  %v16556_v18 = vsub.f32 %v2069_v43, %v16542_v23  ;;  %v16558_v8 = vand.u32 4294901760, %v2073_v56 }
 0x1df   : > { %20264 = vst [vmem:[#allocation72_spill] sm:$0xff] %v16545_v21  ;;  %20265 = vst [vmem:[#allocation73_spill] sm:$0xff] %v16547_v37  ;;  %v19923_v47 = vand.u32 4294901760, %v16545_v21  ;;  %v19924_v40 = vand.u32 4294901760, %v16547_v37  ;;  %v16561_v2 = vsub.f32 %v2071_v38, %v16549_v51  ;;  %v16563_v44 = vpack.c.bf16 %v2119_v28, %v2115_v63 }
 0x1e0   : > { %v16565_v10 = vsub.f32 %v2072_v34, %v2119_v28  ;;  %v16567_v33 = vpack.c.bf16 %v2913_v5, %v2909_v60  ;;  %v16580_v38 = vsub.f32 %v2074_v55, %v2913_v5  ;;  %v16584_v34 = vsub.f32 %v2073_v56, %v16558_v8  ;;  %v16618_v56 = vpop.permute.xlu1 %357 }
 0x1e1   : > { %20266 = vst [vmem:[#allocation74_spill] sm:$0xff] %v16563_v44  ;;  %v16573_v45 = vsub.f32 %v16545_v21, %v19923_v47  ;;  %v16578_v43 = vsub.f32 %v16547_v37, %v19924_v40  ;;  %v16586_v60 = vand.u32 4294901760, %v2075_v29  ;;  %v16590_v28 = vpack.c.bf16 %v16477_v31, %v16434_v35  ;;  %v16592_v47 = vpop.permute.xlu0 %352  ;;  %20274 = vst [vmem:[#allocation81_spill] sm:$0xff] %v16618_v56 }
 0x1e2   : > { %20267 = vst [vmem:[#allocation75_spill] sm:$0xff] %v16565_v10  ;;  %20268 = vst [vmem:[#allocation76_spill] sm:$0xff] %v16567_v33  ;;  %v19935_v5 = vand.u32 4294901760, %v16580_v38  ;;  %v16598_v55 = vpack.c.bf16 %v2903_v42, %v16436_v22  ;;  %v14612_v35 = vadd.f32 %v16480_v52, %v16592_v47  ;;  %v20273_v41 = vand.u32 4294901760, %v16565_v10 }
 0x1e3   : > { %20269 = vst [vmem:[#allocation77_spill] sm:$0xff] %v16580_v38  ;;  %20270 = vst [vmem:[#allocation78_spill] sm:$0xff] %v16590_v28  ;;  %13741 = vmatprep.subr.bf16.mxu0 %v16590_v28  ;;  %v14628_v22 = vadd.f32 %v16482_v20, %v16592_v47  ;;  %v14613_v42 = vadd.f32 %v16494_v46, %v16592_v47  ;;  %v16622_v31 = vsub.f32 %v2075_v29, %v16586_v60 }
 0x1e4   : > { %20271 = vst [vmem:[#allocation79_spill] sm:$0xff] %v16592_v47  ;;  %20272 = vst [vmem:[#allocation80_spill] sm:$0xff] %v16598_v55  ;;  %v16610_v40 = vsub.f32 %v16565_v10, %v20273_v41  ;;  %13837 = vmatprep.subr.bf16.mxu1 %v16598_v55  ;;  %13743 = vmatpush1.bf16.msra.mxu0 %v16454_v59  ;;  %v2076_v41 = vmax.f32 %v14612_v35, 0.0  ;;  %v14629_v24 = vadd.f32 %v16496_v48, %v16592_v47 }
 0x1e5   : > { %13839 = vmatpush1.bf16.msra.mxu1 %v16458_v6  ;;  %v16630_v20 = vsub.f32 %v16580_v38, %v19935_v5  ;;  %v2078_v63 = vmax.f32 %v14628_v22, 0.0  ;;  %v2077_v46 = vmax.f32 %v14613_v42, 0.0  ;;  %v14614_v59 = vadd.f32 %v16523_v26, %v16618_v56 }
 0x1e6   : > { %v2123_v52 = vand.u32 4294901760, %v2076_v41  ;;  %v2079_v55 = vmax.f32 %v14629_v24, 0.0  ;;  %v14630_v29 = vadd.f32 %v16525_v7, %v16618_v56  ;;  %v14615_v35 = vadd.f32 %v16534_v3, %v16618_v56 }
 0x1e7   : > { %v2917_v6 = vand.u32 4294901760, %v2078_v63  ;;  %v2121_v48 = vand.u32 4294901760, %v2077_v46  ;;  %v2080_v47 = vmax.f32 %v14614_v59, 0.0  ;;  %v14631_v5 = vadd.f32 %v16536_v16, %v16618_v56 }
 0x1e8   : > { %v16640_v28 = vsub.f32 %v2076_v41, %v2123_v52  ;;  %v2915_v22 = vand.u32 4294901760, %v2079_v55  ;;  %v2082_v42 = vmax.f32 %v14630_v29, 0.0  ;;  %v2081_v38 = vmax.f32 %v14615_v35, 0.0 }
 0x1e9   : > { %v16643_v24 = vsub.f32 %v2078_v63, %v2917_v6  ;;  %v2127_v37 = vand.u32 4294901760, %v2080_v47  ;;  %v2083_v7 = vmax.f32 %v14631_v5, 0.0  ;;  %v16646_v3 = vsub.f32 %v2077_v46, %v2121_v48 }
 0x1ea   : > { %v19948_v10 = vand.u32 4294901760, %v16640_v28  ;;  %v2921_v21 = vand.u32 4294901760, %v2082_v42  ;;  %v2125_v59 = vand.u32 4294901760, %v2081_v38  ;;  %v16649_v16 = vsub.f32 %v2079_v55, %v2915_v22 }
 0x1eb   : > { %v16651_v41 = vpack.c.bf16 %v2127_v37, %v2123_v52  ;;  %v16653_v29 = vsub.f32 %v2080_v47, %v2127_v37  ;;  %v2919_v52 = vand.u32 4294901760, %v2083_v7  ;;  %v16673_v35 = vpack.c.bf16 %v16558_v8, %v16542_v23 }
 0x1ec   : > { %v16659_v63 = vsub.f32 %v16640_v28, %v19948_v10  ;;  %v16661_v5 = vpack.c.bf16 %v2921_v21, %v2917_v6  ;;  %v16663_v46 = vsub.f32 %v2082_v42, %v2921_v21  ;;  %v16667_v0 = vsub.f32 %v2081_v38, %v2125_v59 }
 0x1ed   : > { %20275 = vst [vmem:[#allocation82_spill] sm:$0xff] %v16651_v41  ;;  %v19949_v55 = vand.u32 4294901760, %v16653_v29  ;;  %v16677_v6 = vpack.c.bf16 %v16586_v60, %v16549_v51  ;;  %v20277_v21 = vand.u32 4294901760, %v16643_v24  ;;  %v16690_v37 = vsub.f32 %v2083_v7, %v2919_v52  ;;  %13745 = vmatprep.subr.bf16.mxu0 %v16673_v35 }
 0x1ee   : > { %v19950_v47 = vand.u32 4294901760, %v16663_v46  ;;  %v16696_v51 = vpack.c.bf16 %v2125_v59, %v2121_v48  ;;  %v16698_v60 = vpack.c.bf16 %v2919_v52, %v2915_v22  ;;  %13747 = vmatpush1.bf16.msra.mxu0 %v16563_v44  ;;  %v20280_v7 = vand.u32 4294901760, %v16368_v25 }
 0x1ef   : > { %20276 = vst [vmem:[#allocation83_spill] sm:$0xff] %v16677_v6  ;;  %v16682_v42 = vsub.f32 %v16643_v24, %v20277_v21  ;;  %v16688_v10 = vsub.f32 %v16653_v29, %v19949_v55  ;;  %13841 = vmatprep.subr.bf16.mxu1 %v16677_v6  ;;  %v20281_v48 = vand.u32 4294901760, %v16410_v15  ;;  %v20282_v52 = vand.u32 4294901760, %v16371_v57 }
 0x1f0   : > { %20278 = vst [vmem:[#allocation84_spill] sm:$0xff] %v16696_v51  ;;  %20279 = vst [vmem:[#allocation85_spill] sm:$0xff] %v16698_v60  ;;  %v16704_v55 = vsub.f32 %v16663_v46, %v19950_v47  ;;  %13843 = vmatpush1.bf16.msra.mxu1 %v16567_v33  ;;  %v2225_v23 = vsub.f32 %v16368_v25, %v20280_v7  ;;  %13749 = vmatprep.subr.bf16.mxu0 %v16696_v51  ;;  %v20283_v21 = vand.u32 4294901760, %v16413_v32 }
 0x1f1   : > { %v2237_v22 = vsub.f32 %v16410_v15, %v20281_v48  ;;  %13845 = vmatprep.subr.bf16.mxu1 %v16698_v60  ;;  %v3019_v47 = vsub.f32 %v16371_v57, %v20282_v52  ;;  %v20284_v7 = vand.u32 4294901760, %v16384_v39  ;;  %v20285_v8 = vand.u32 4294901760, %v16430_v14 }
 0x1f2   : > { %v3031_v38 = vsub.f32 %v16413_v32, %v20283_v21  ;;  %v2226_v48 = vand.u32 4294901760, %v2225_v23  ;;  %v20286_v59 = vand.u32 4294901760, %v16395_v62  ;;  %v20287_v51 = vand.u32 4294901760, %v16447_v61  ;;  %13751 = vmatpush1.bf16.msra.mxu0 %v16651_v41 }
 0x1f3   : > { %v13754_v26 = vpack.c.bf16 %v20285_v8, %v20284_v7  ;;  %v2238_v56 = vand.u32 4294901760, %v2237_v22  ;;  %v20288_v33 = vand.u32 4294901760, %v16451_v17  ;;  %v3020_v44 = vand.u32 4294901760, %v3019_v47 }
 0x1f4   : > { %v13850_v60 = vpack.c.bf16 %v20287_v51, %v20286_v59  ;;  %v3032_v6 = vand.u32 4294901760, %v3031_v38  ;;  %v20289_v21 = vand.u32 4294901760, %v16518_v9  ;;  %v20290_v14 = vand.u32 4294901760, %v16467_v27  ;;  %13847 = vmatpush1.bf16.msra.mxu1 %v16661_v5 }
 0x1f5   : > { %v2249_v52 = vsub.f32 %v16451_v17, %v20288_v33  ;;  %v13752_v62 = vpack.c.bf16 %v2238_v56, %v2226_v48  ;;  %v20291_v8 = vand.u32 4294901760, %v16551_v4  ;;  %v20292_v47 = vand.u32 4294901760, %v16464_v49  ;;  %2183 = vmatmul.mubr.f32.vlgmr.msra.gmra.mrb[16].mxu0 %v16379_v12 }
 0x1f6   : > { %v2261_v39 = vsub.f32 %v16518_v9, %v20289_v21  ;;  %v3043_v23 = vsub.f32 %v16467_v27, %v20290_v14  ;;  %v20293_v38 = vand.u32 4294901760, %v16506_v1  ;;  %v13848_v22 = vpack.c.bf16 %v3032_v6, %v3020_v44 }
 0x1f7   : > { %v2250_v61 = vand.u32 4294901760, %v2249_v52  ;;  %v3055_v33 = vsub.f32 %v16551_v4, %v20291_v8  ;;  %v20294_v21 = vand.u32 4294901760, %v16474_v36  ;;  %v20295_v14 = vand.u32 4294901760, %v16530_v58  ;;  %13753 = vmatprep.subr.bf16.mxu0 %v13752_v62  ;;  %2977 = vmatmul.mubr.f32.vlgmr.msra.gmra.mrb[16].mxu1 %v16379_v12 }
 0x1f8   : > { %v13758_v51 = vpack.c.bf16 %v20293_v38, %v20292_v47  ;;  %v2262_v59 = vand.u32 4294901760, %v2261_v39  ;;  %v3044_v7 = vand.u32 4294901760, %v3043_v23  ;;  %v20296_v48 = vand.u32 4294901760, %v16556_v18  ;;  %13849 = vmatprep.subr.bf16.mxu1 %v13848_v22  ;;  %13755 = vmatpush1.bf16.msra.mxu0 %v13754_v26 }
 0x1f9   : > { %v13854_v41 = vpack.c.bf16 %v20295_v14, %v20294_v21  ;;  %v3056_v56 = vand.u32 4294901760, %v3055_v33  ;;  %v20297_v8 = vand.u32 4294901760, %v16584_v34  ;;  %v20298_v1 = vand.u32 4294901760, %v16561_v2  ;;  %13851 = vmatpush1.bf16.msra.mxu1 %v13850_v60 }
 0x1fa   : > { %v2273_v52 = vsub.f32 %v16556_v18, %v20296_v48  ;;  %v3110_v6 = vand.u32 4294901760, %v16704_v55  ;;  %v13756_v36 = vpack.c.bf16 %v2262_v59, %v2250_v61  ;;  %v20299_v58 = vand.u32 4294901760, %v16622_v31 }
 0x1fb   : > { %v2285_v49 = vsub.f32 %v16584_v34, %v20297_v8  ;;  %v3067_v44 = vsub.f32 %v16561_v2, %v20298_v1  ;;  %v20300_v23 = vand.u32 4294901760, %v16573_v45  ;;  %v20301_v62 = vand.u32 4294901760, %v16610_v40 }
 0x1fc   : > { %v3079_v39 = vsub.f32 %v16622_v31, %v20299_v58  ;;  %v13852_v47 = vpack.c.bf16 %v3056_v56, %v3044_v7  ;;  %v2274_v38 = vand.u32 4294901760, %v2273_v52  ;;  %13757 = vmatprep.subr.bf16.mxu0 %v13756_v36  ;;  %v20302_v61 = vand.u32 4294901760, %v16578_v43 }
 0x1fd   : > { %v13762_v33 = vpack.c.bf16 %v20301_v62, %v20300_v23  ;;  %v2286_v21 = vand.u32 4294901760, %v2285_v49  ;;  %v3068_v55 = vand.u32 4294901760, %v3067_v44  ;;  %v20303_v59 = vand.u32 4294901760, %v16630_v20  ;;  %13759 = vmatpush1.bf16.msra.mxu0 %v13758_v51 }
 0x1fe   : > { %v3080_v22 = vand.u32 4294901760, %v3079_v39  ;;  %v20304_v45 = vand.u32 4294901760, %v16646_v3  ;;  %v20305_v48 = vand.u32 4294901760, %v16667_v0  ;;  %v3098_v7 = vand.u32 4294901760, %v16682_v42  ;;  %13853 = vmatprep.subr.bf16.mxu1 %v13852_v47 }
 0x1ff   : > { %v13858_v14 = vpack.c.bf16 %v20303_v59, %v20302_v61  ;;  %v20306_v56 = vmov 0.0   ;;  %v13760_v60 = vpack.c.bf16 %v2286_v21, %v2274_v38  ;;  %v20307_v52 = vand.u32 4294901760, %v16649_v16  ;;  %13855 = vmatpush1.bf16.msra.mxu1 %v13854_v41  ;;  %v20311_v41 = vld [vmem:[#allocation54_spill] sm:$0xff] }
 0x200   : > { %v2297_v40 = vsub.f32 %v16646_v3, %v20304_v45  ;;  %v2309_v26 = vsub.f32 %v16667_v0, %v20305_v48  ;;  %2188 = vmatprep.mubr.f32.mxu0 %v20306_v56  ;;  %v20308_v20 = vand.u32 4294901760, %v16690_v37  ;;  %2982 = vmatprep.mubr.f32.mxu1 %v20306_v56  ;;  %v13856_v49 = vpack.c.bf16 %v3080_v22, %v3068_v55  ;;  %v20314_v59 = vld [vmem:[#allocation62_spill] sm:$0xff]  ;;  %v20315_v45 = vld [vmem:[#allocation65_spill] sm:$0xff]  ;;  %v20316_v48 = vld [vmem:[#allocation63_spill] sm:$0xff] }
 0x201   : > { %v3091_v43 = vsub.f32 %v16649_v16, %v20307_v52  ;;  %2194 = vmatmul.mubr.f32.gmra.mrb[18].mxu0 %v16390_v54  ;;  %v20309_v42 = vand.u32 4294901760, %v16659_v63  ;;  %v20310_v36 = vand.u32 4294901760, %v16688_v10  ;;  %2988 = vmatmul.mubr.f32.gmra.mrb[18].mxu1 %v16390_v54  ;;  %v13862_v62 = vpack.c.bf16 %v3110_v6, %v3098_v7 }
 0x202   : > { %v3103_v8 = vsub.f32 %v16690_v37, %v20308_v20  ;;  %v2298_v1 = vand.u32 4294901760, %v2297_v40  ;;  %v2310_v44 = vand.u32 4294901760, %v2309_v26  ;;  %v13768_v47 = vpack.c.bf16 %v16410_v15, %v16368_v25  ;;  %13761 = vmatprep.subr.bf16.mxu0 %v13760_v60  ;;  %13857 = vmatprep.subr.bf16.mxu1 %v13856_v49  ;;  %v20317_v26 = vld [vmem:[#allocation67_spill] sm:$0xff]  ;;  %v20320_v49 = vld [vmem:[#allocation73_spill] sm:$0xff] }
 0x203   : > { %v13766_v58 = vpack.c.bf16 %v20310_v36, %v20309_v42  ;;  %v3092_v39 = vand.u32 4294901760, %v3091_v43  ;;  %v13864_v21 = vpack.c.bf16 %v16413_v32, %v16371_v57  ;;  %v13770_v63 = vpack.c.bf16 %v16388_v53, %v16363_v19  ;;  %2199 = vmatprep.mubr.f32.mxu0 %v20306_v56  ;;  %2993 = vmatprep.mubr.f32.mxu1 %v20306_v56  ;;  %v20318_v43 = vld [vmem:[#allocation72_spill] sm:$0xff]  ;;  %v20319_v20 = vld [vmem:[#allocation75_spill] sm:$0xff] }
 0x204   : > { %v3104_v23 = vand.u32 4294901760, %v3103_v8  ;;  %v13764_v38 = vpack.c.bf16 %v2310_v44, %v2298_v1  ;;  %v13866_v51 = vpack.c.bf16 %v16405_v11, %v16365_v13  ;;  %v13772_v6 = vpack.c.bf16 %v16518_v9, %v16451_v17  ;;  %13763 = vmatpush1.bf16.msra.mxu0 %v13762_v33  ;;  %13859 = vmatpush1.bf16.msra.mxu1 %v13858_v14  ;;  %v20321_v1 = vld [vmem:[#allocation77_spill] sm:$0xff] }
 0x205   : > { %2205 = vmatmul.mubr.f32.gmra.mrb[20].mxu0 %v16399_v30  ;;  %v20312_v55 = vsub.f32 %v16336_v50, %v20311_v41  ;;  %v13868_v61 = vpack.c.bf16 %v16551_v4, %v16467_v27  ;;  %v13774_v40 = vpack.c.bf16 %v20315_v45, %v20314_v59  ;;  %v13870_v7 = vpack.c.bf16 %v20317_v26, %v20316_v48 }
 0x206   : > { %v13860_v10 = vpack.c.bf16 %v3104_v23, %v3092_v39  ;;  %2999 = vmatmul.mubr.f32.gmra.mrb[20].mxu1 %v16399_v30  ;;  %v13776_v60 = vpack.c.bf16 %v16584_v34, %v16556_v18  ;;  %v13872_v52 = vpack.c.bf16 %v16622_v31, %v16561_v2  ;;  %v13778_v8 = vpack.c.bf16 %v20319_v20, %v20318_v43 }
 0x207   : > { %v16813_v22 = vand.u32 4294901760, %v20312_v55  ;;  %13765 = vmatprep.subr.bf16.mxu0 %v13764_v38  ;;  %v13874_v44 = vpack.c.bf16 %v20321_v1, %v20320_v49  ;;  %v13780_v42 = vpack.c.bf16 %v16667_v0, %v16646_v3  ;;  %v13876_v33 = vpack.c.bf16 %v16690_v37, %v16649_v16  ;;  %2210 = vmatprep.mubr.f32.mxu0 %v20306_v56 }
 0x208   : > { %13861 = vmatprep.subr.bf16.mxu1 %v13860_v10  ;;  %v13782_v36 = vpack.c.bf16 %v16653_v29, %v16640_v28  ;;  %v13878_v39 = vpack.c.bf16 %v16663_v46, %v16643_v24  ;;  %v20322_v14 = vand.u32 4294901760, %v16368_v25  ;;  %v20323_v23 = vand.u32 4294901760, %v16410_v15  ;;  %3004 = vmatprep.mubr.f32.mxu1 %v20306_v56 }
 0x209   : > { %20313 = vst [vmem:[#allocation86_spill] sm:$0xff] %v16813_v22  ;;  %2216 = vmatmul.mubr.f32.gmra.mrb[22].mxu0 %v16813_v22  ;;  %v20324_v10 = vand.u32 4294901760, %v16371_v57  ;;  %v20325_v55 = vand.u32 4294901760, %v16413_v32  ;;  %v20326_v54 = vand.u32 4294901760, %v16363_v19  ;;  %v20327_v12 = vand.u32 4294901760, %v16388_v53  ;;  %13863 = vmatpush1.bf16.msra.mxu1 %v13862_v62 }
 0x20a   : > { %v16843_v38 = vpack.c.bf16 %v20323_v23, %v20322_v14  ;;  %v20328_v15 = vand.u32 4294901760, %v16365_v13  ;;  %v20329_v25 = vand.u32 4294901760, %v16405_v11  ;;  %3010 = vmatmul.mubr.f32.gmra.mrb[22].mxu1 %v16813_v22  ;;  %13767 = vmatpush1.bf16.msra.mxu0 %v13766_v58  ;;  %v20330_v57 = vand.u32 4294901760, %v16451_v17 }
 0x20b   : > { %v16851_v30 = vpack.c.bf16 %v20325_v55, %v20324_v10  ;;  %v16857_v41 = vpack.c.bf16 %v20327_v12, %v20326_v54  ;;  %v20331_v32 = vand.u32 4294901760, %v16518_v9  ;;  %v20332_v19 = vand.u32 4294901760, %v16467_v27  ;;  %13769 = vmatprep.subr.bf16.mxu0 %v13768_v47  ;;  %13865 = vmatprep.subr.bf16.mxu1 %v13864_v21  ;;  %v20348_v21 = vld [vmem:[#allocation41_spill] sm:$0xff] }
 0x20c   : > { %v16863_v14 = vpack.c.bf16 %v20329_v25, %v20328_v15  ;;  %v20333_v54 = vand.u32 4294901760, %v16551_v4  ;;  %v20334_v13 = vand.u32 4294901760, %v20314_v59  ;;  %v20335_v53 = vand.u32 4294901760, %v20315_v45  ;;  %2366 = vmatprep.mubr.f32.mxu0 %v20306_v56  ;;  %3160 = vmatprep.mubr.f32.mxu1 %v20306_v56 }
 0x20d   : > { %v16870_v23 = vpack.c.bf16 %v20331_v32, %v20330_v57  ;;  %v20336_v17 = vand.u32 4294901760, %v20316_v48  ;;  %v20337_v9 = vand.u32 4294901760, %v20317_v26  ;;  %v20338_v27 = vand.u32 4294901760, %v16556_v18  ;;  %2368 = vmatmul.mubr.f32.vlgmr.msra.gmra.mrb[16].mxu0 %v20348_v21 }
 0x20e   : > { %v16876_v12 = vpack.c.bf16 %v20333_v54, %v20332_v19  ;;  %v16882_v11 = vpack.c.bf16 %v20335_v53, %v20334_v13  ;;  %v20339_v4 = vand.u32 4294901760, %v16584_v34  ;;  %v20340_v59 = vand.u32 4294901760, %v16561_v2  ;;  %3162 = vmatmul.mubr.f32.vlgmr.msra.gmra.mrb[16].mxu1 %v20348_v21  ;;  %13771 = vmatpush1.bf16.msra.mxu0 %v13770_v63  ;;  %v20361_v63 = vld [vmem:[#allocation57_spill] sm:$0xff]  ;;  %v17076_v54 = vpop.permute.xlu0 %366 }
 0x20f   : > { %v16888_v58 = vpack.c.bf16 %v20337_v9, %v20336_v17  ;;  %v20341_v45 = vand.u32 4294901760, %v16622_v31  ;;  %v20342_v62 = vand.u32 4294901760, %v20318_v43  ;;  %v20343_v47 = vand.u32 4294901760, %v20319_v20  ;;  %13867 = vmatpush1.bf16.msra.mxu1 %v13866_v51  ;;  %13773 = vmatprep.subr.bf16.mxu0 %v13772_v6  ;;  %v20362_v51 = vld [vmem:[#allocation59_spill] sm:$0xff]  ;;  %v20363_v6 = vld [vmem:[#allocation78_spill] sm:$0xff]  ;;  %v20375_v19 = vld [vmem:[#allocation49_spill] sm:$0xff] }
 0x210   : > { %v16894_v10 = vpack.c.bf16 %v20339_v4, %v20338_v27  ;;  %v20344_v18 = vand.u32 4294901760, %v20320_v49  ;;  %v20345_v34 = vand.u32 4294901760, %v20321_v1  ;;  %v20346_v2 = vand.u32 4294901760, %v16646_v3  ;;  %13869 = vmatprep.subr.bf16.mxu1 %v13868_v61  ;;  %2373 = vmatprep.mubr.f32.mxu0 %v20306_v56  ;;  %v20364_v61 = vld [vmem:[#allocation80_spill] sm:$0xff]  ;;  %20381 = vst [vmem:[#allocation63_spill] sm:$0xff] %v17076_v54 }
 0x211   : > { %v16900_v55 = vpack.c.bf16 %v20341_v45, %v20340_v59  ;;  %v16907_v48 = vpack.c.bf16 %v20343_v47, %v20342_v62  ;;  %v20347_v31 = vand.u32 4294901760, %v16667_v0  ;;  %v20349_v43 = vand.u32 4294901760, %v16649_v16  ;;  %3167 = vmatprep.mubr.f32.mxu1 %v20306_v56  ;;  %v20357_v16 = vld [vmem:[#allocation47_spill] sm:$0xff]  ;;  %v17085_v59 = vpop.permute.xlu1 %371 }
 0x212   : > { %v16913_v26 = vpack.c.bf16 %v20345_v34, %v20344_v18  ;;  %v20350_v20 = vand.u32 4294901760, %v16690_v37  ;;  %v20351_v49 = vand.u32 4294901760, %v16640_v28  ;;  %v20352_v1 = vand.u32 4294901760, %v16653_v29  ;;  %v20355_v28 = vld [vmem:[#allocation42_spill] sm:$0xff]  ;;  %13775 = vmatpush1.bf16.msra.mxu0 %v13774_v40  ;;  %v20358_v29 = vld [vmem:[#allocation68_spill] sm:$0xff]  ;;  %v20365_v40 = vld [vmem:[#allocation45_spill] sm:$0xff] }
 0x213   : > { %v16919_v15 = vpack.c.bf16 %v20347_v31, %v20346_v2  ;;  %v20353_v0 = vand.u32 4294901760, %v16643_v24  ;;  %v20354_v3 = vand.u32 4294901760, %v16663_v46  ;;  %2375 = vmatmul.mubr.f32.gmra.mrb[18].mxu0 %v20355_v28  ;;  %3169 = vmatmul.mubr.f32.gmra.mrb[18].mxu1 %v20355_v28  ;;  %v20356_v24 = vld [vmem:[#allocation43_spill] sm:$0xff]  ;;  %v20359_v46 = vld [vmem:[#allocation69_spill] sm:$0xff]  ;;  %v20360_v37 = vld [vmem:[#allocation44_spill] sm:$0xff]  ;;  %20383 = vst [vmem:[#allocation72_spill] sm:$0xff] %v17085_v59 }
 0x214   : > { %v16927_v25 = vpack.c.bf16 %v20350_v20, %v20349_v43  ;;  %v16933_v57 = vpack.c.bf16 %v20352_v1, %v20351_v49  ;;  %13871 = vmatpush1.bf16.msra.mxu1 %v13870_v7  ;;  %13777 = vmatprep.subr.bf16.mxu0 %v13776_v60  ;;  %v20366_v7 = vld [vmem:[#allocation64_spill] sm:$0xff]  ;;  %v20367_v60 = vld [vmem:[#allocation66_spill] sm:$0xff] }
 0x215   : > { %v16939_v32 = vpack.c.bf16 %v20354_v3, %v20353_v0  ;;  %13873 = vmatprep.subr.bf16.mxu1 %v13872_v52  ;;  %2380 = vmatprep.mubr.f32.mxu0 %v20306_v56  ;;  %v20368_v52 = vld [vmem:[#allocation83_spill] sm:$0xff] }
 0x216   : > { %3174 = vmatprep.mubr.f32.mxu1 %v20306_v56  ;;  %13779 = vmatpush1.bf16.msra.mxu0 %v13778_v8  ;;  %v20369_v8 = vld [vmem:[#allocation46_spill] sm:$0xff] }
 0x217   : > { %2382 = vmatmul.mubr.f32.gmra.mrb[20].mxu0 %v20356_v24  ;;  %3176 = vmatmul.mubr.f32.gmra.mrb[20].mxu1 %v20356_v24 }
 0x218   : > { %13875 = vmatpush1.bf16.msra.mxu1 %v13874_v44  ;;  %13781 = vmatprep.subr.bf16.mxu0 %v13780_v42  ;;  %v20370_v44 = vld [vmem:[#allocation74_spill] sm:$0xff]  ;;  %v20371_v42 = vld [vmem:[#allocation76_spill] sm:$0xff] }
 0x219   : > { %13877 = vmatprep.subr.bf16.mxu1 %v13876_v33  ;;  %2387 = vmatprep.mubr.f32.mxu0 %v20306_v56  ;;  %v20372_v33 = vld [vmem:[#allocation84_spill] sm:$0xff] }
 0x21a   : > { %3181 = vmatprep.mubr.f32.mxu1 %v20306_v56  ;;  %13783 = vmatpush1.bf16.msra.mxu0 %v13782_v36  ;;  %v20373_v36 = vld [vmem:[#allocation85_spill] sm:$0xff] }
 0x21b   : > { %2389 = vmatmul.mubr.f32.gmra.mrb[22].mxu0 %v20357_v16  ;;  %3183 = vmatmul.mubr.f32.gmra.mrb[22].mxu1 %v20357_v16 }
 0x21c   : > { %13879 = vmatpush1.bf16.msra.mxu1 %v13878_v39  ;;  %13785 = vmatprep.subr.bf16.mxu0 %v20358_v29  ;;  %v20374_v39 = vld [vmem:[#allocation82_spill] sm:$0xff] }
 0x21d   : > { %13881 = vmatprep.subr.bf16.mxu1 %v20359_v46  ;;  %2491 = vmatprep.mubr.f32.mxu0 %v20306_v56 }
 0x21e   : > { %3285 = vmatprep.mubr.f32.mxu1 %v20306_v56 }
 0x21f   : > { %2494 = vmatmul.mubr.f32.vlgmr.msra.gmra.mrb[16].mxu0 %v20360_v37  ;;  %3288 = vmatmul.mubr.f32.vlgmr.msra.gmra.mrb[16].mxu1 %v20360_v37 }
 0x220   : > { %13787 = vmatpush1.bf16.msra.mxu0 %v20361_v63  ;;  %13883 = vmatpush1.bf16.msra.mxu1 %v20362_v51 }
 0x221   : > { %13789 = vmatprep.subr.bf16.mxu0 %v20363_v6  ;;  %13885 = vmatprep.subr.bf16.mxu1 %v20364_v61 }
 0x222   : > { %2499 = vmatprep.mubr.f32.mxu0 %v20306_v56  ;;  %3293 = vmatprep.mubr.f32.mxu1 %v20306_v56 }
 0x223   : > { %2502 = vmatmul.mubr.f32.gmra.mrb[18].mxu0 %v20365_v40  ;;  %3296 = vmatmul.mubr.f32.gmra.mrb[18].mxu1 %v20365_v40 }
 0x224   : > { %13791 = vmatpush1.bf16.msra.mxu0 %v20366_v7  ;;  %13887 = vmatpush1.bf16.msra.mxu1 %v20367_v60 }
 0x225   : > { %13793 = vmatprep.subr.bf16.mxu0 %v16673_v35  ;;  %13889 = vmatprep.subr.bf16.mxu1 %v20368_v52 }
 0x226   : > { %2507 = vmatprep.mubr.f32.mxu0 %v20306_v56  ;;  %3301 = vmatprep.mubr.f32.mxu1 %v20306_v56 }
 0x227   : > { %2510 = vmatmul.mubr.f32.gmra.mrb[20].mxu0 %v20369_v8  ;;  %3304 = vmatmul.mubr.f32.gmra.mrb[20].mxu1 %v20369_v8 }
 0x228   : > { %13795 = vmatpush1.bf16.msra.mxu0 %v20370_v44  ;;  %13891 = vmatpush1.bf16.msra.mxu1 %v20371_v42 }
 0x229   : > { %13797 = vmatprep.subr.bf16.mxu0 %v20372_v33  ;;  %13893 = vmatprep.subr.bf16.mxu1 %v20373_v36 }
 0x22a   : > { %2515 = vmatprep.mubr.f32.mxu0 %v20306_v56  ;;  %3309 = vmatprep.mubr.f32.mxu1 %v20306_v56 }
 0x22b   : > { %2518 = vmatmul.mubr.f32.gmra.mrb[22].mxu0 %v16336_v50  ;;  %3312 = vmatmul.mubr.f32.gmra.mrb[22].mxu1 %v16336_v50 }
 0x22c   : > { %13799 = vmatpush1.bf16.msra.mxu0 %v20374_v39  ;;  %13895 = vmatpush1.bf16.msra.mxu1 %v16661_v5 }
 0x22d   : > { %13801 = vmatprep.subr.bf16.mxu0 %v16843_v38  ;;  %13897 = vmatprep.subr.bf16.mxu1 %v16851_v30  ;;  %v20376_v30 = vld [vmem:[#allocation50_spill] sm:$0xff] }
 0x22e   : > { %2604 = vmatprep.mubr.f32.mxu0 %v20306_v56  ;;  %3398 = vmatprep.mubr.f32.mxu1 %v20306_v56  ;;  %v20378_v38 = vld [vmem:[#allocation54_spill] sm:$0xff] }
 0x22f   : > { %2608 = vmatmul.mubr.f32.vlgmr.msra.gmra.mrb[16].mxu0 %v20375_v19  ;;  %3402 = vmatmul.mubr.f32.vlgmr.msra.gmra.mrb[16].mxu1 %v20375_v19 }
 0x230   : > { %13803 = vmatpush1.bf16.msra.mxu0 %v16857_v41  ;;  %13899 = vmatpush1.bf16.msra.mxu1 %v16863_v14  ;;  %v20377_v41 = vld [vmem:[#allocation51_spill] sm:$0xff] }
 0x231   : > { %13805 = vmatprep.subr.bf16.mxu0 %v16870_v23  ;;  %13901 = vmatprep.subr.bf16.mxu1 %v16876_v12 }
 0x232   : > { %2613 = vmatprep.mubr.f32.mxu0 %v20306_v56  ;;  %3407 = vmatprep.mubr.f32.mxu1 %v20306_v56 }
 0x233   : > { %2617 = vmatmul.mubr.f32.gmra.mrb[18].mxu0 %v20376_v30  ;;  %3411 = vmatmul.mubr.f32.gmra.mrb[18].mxu1 %v20376_v30 }
 0x234   : > { %13807 = vmatpush1.bf16.msra.mxu0 %v16882_v11  ;;  %13903 = vmatpush1.bf16.msra.mxu1 %v16888_v58 }
 0x235   : > { %13809 = vmatprep.subr.bf16.mxu0 %v16894_v10  ;;  %13905 = vmatprep.subr.bf16.mxu1 %v16900_v55 }
 0x236   : > { %2622 = vmatprep.mubr.f32.mxu0 %v20306_v56  ;;  %3416 = vmatprep.mubr.f32.mxu1 %v20306_v56 }
 0x237   : > { %2626 = vmatmul.mubr.f32.gmra.mrb[20].mxu0 %v20377_v41  ;;  %3420 = vmatmul.mubr.f32.gmra.mrb[20].mxu1 %v20377_v41 }
 0x238   : > { %13811 = vmatpush1.bf16.msra.mxu0 %v16907_v48  ;;  %13907 = vmatpush1.bf16.msra.mxu1 %v16913_v26 }
 0x239   : > { %13813 = vmatprep.subr.bf16.mxu0 %v16919_v15  ;;  %13909 = vmatprep.subr.bf16.mxu1 %v16927_v25 }
 0x23a   : > { %2631 = vmatprep.mubr.f32.mxu0 %v20306_v56  ;;  %3425 = vmatprep.mubr.f32.mxu1 %v20306_v56 }
 0x23b   : > { %2635 = vmatmul.mubr.f32.gmra.mrb[22].mxu0 %v20378_v38  ;;  %3429 = vmatmul.mubr.f32.gmra.mrb[22].mxu1 %v20378_v38 }
 0x23c   : > { %13815 = vmatpush1.bf16.msra.mxu0 %v16933_v57  ;;  %13911 = vmatpush1.bf16.msra.mxu1 %v16939_v32 }
 0x23d   : > { %13817 = vmatprep.subr.bf16.mxu0 %v20358_v29  ;;  %13913 = vmatprep.subr.bf16.mxu1 %v20359_v46 }
 0x23e   : > { %2753 = vmatprep.mubr.f32.mxu0 %v20306_v56  ;;  %3547 = vmatprep.mubr.f32.mxu1 %v20306_v56 }
 0x23f   : > { %2755 = vmatmul.mubr.f32.vlgmr.msra.gmra.mrb[16].mxu0 %v20348_v21  ;;  %3549 = vmatmul.mubr.f32.vlgmr.msra.gmra.mrb[16].mxu1 %v20348_v21 }
 0x240   : > { %13819 = vmatpush1.bf16.msra.mxu0 %v20361_v63  ;;  %13915 = vmatpush1.bf16.msra.mxu1 %v20362_v51 }
 0x241   : > { %13821 = vmatprep.subr.bf16.mxu0 %v20363_v6  ;;  %13917 = vmatprep.subr.bf16.mxu1 %v20364_v61 }
 0x242   : > { %2760 = vmatprep.mubr.f32.mxu0 %v20306_v56  ;;  %3554 = vmatprep.mubr.f32.mxu1 %v20306_v56 }
 0x243   : > { %2762 = vmatmul.mubr.f32.gmra.mrb[18].mxu0 %v20355_v28  ;;  %3556 = vmatmul.mubr.f32.gmra.mrb[18].mxu1 %v20355_v28 }
 0x244   : > { %13823 = vmatpush1.bf16.msra.mxu0 %v20366_v7  ;;  %13919 = vmatpush1.bf16.msra.mxu1 %v20367_v60 }
 0x245   : > { %13825 = vmatprep.subr.bf16.mxu0 %v16673_v35  ;;  %13921 = vmatprep.subr.bf16.mxu1 %v20368_v52  ;;  %v311_v35 = vld [vmem:[%s19804_s5] sm:$0x1] }
 0x246   : > { %2767 = vmatprep.mubr.f32.mxu0 %v20306_v56  ;;  %3561 = vmatprep.mubr.f32.mxu1 %v20306_v56 }
 0x247   : > { %2769 = vmatmul.mubr.f32.gmra.mrb[20].mxu0 %v20356_v24  ;;  %3563 = vmatmul.mubr.f32.gmra.mrb[20].mxu1 %v20356_v24 }
 0x248   : > { %13827 = vmatpush1.bf16.msra.mxu0 %v20370_v44  ;;  %13923 = vmatpush1.bf16.msra.mxu1 %v20371_v42 }
 0x249   : > { %13829 = vmatprep.subr.bf16.mxu0 %v20372_v33  ;;  %13925 = vmatprep.subr.bf16.mxu1 %v20373_v36 }
 0x24a   : > { %2774 = vmatprep.mubr.f32.mxu0 %v20306_v56  ;;  %3568 = vmatprep.mubr.f32.mxu1 %v20306_v56 }
 0x24b   : > { %2776 = vmatmul.mubr.f32.gmra.mrb[22].mxu0 %v20357_v16  ;;  %3570 = vmatmul.mubr.f32.gmra.mrb[22].mxu1 %v20357_v16 }
 0x24c   : > { %13831 = vmatpush1.bf16.msra.mxu0 %v20374_v39  ;;  %13927 = vmatpush1.bf16.msra.mxu1 %v16661_v5  ;;  %v3703_v5 = vsel %vm3701_vm3, %v311_v35, 0 }
 0x24d   : > { %2862 = vmatprep.mubr.f32.mxu0 %v20306_v56  ;;  %3656 = vmatprep.mubr.f32.mxu1 %v20306_v56  ;;  %v17071_v14 = vand.u32 4294901760, %v3703_v5 }
 0x24f   : > { %2864 = vmatmul.mubr.f32.vlgmr.msra.gmra.mrb[16].mxu0 %v20348_v21  ;;  %3658 = vmatmul.mubr.f32.vlgmr.msra.gmra.mrb[16].mxu1 %v20348_v21  ;;  %20379 = vst [vmem:[#allocation62_spill] sm:$0xff] %v17071_v14  ;;  %v17074_v23 = vsub.f32 %v3703_v5, %v17071_v14 }
 0x250   : > { %2869 = vmatprep.mubr.f32.mxu0 %v20306_v56  ;;  %3663 = vmatprep.mubr.f32.mxu1 %v20306_v56 }
 0x251   : > { %20380 = vst [vmem:[#allocation65_spill] sm:$0xff] %v17074_v23  ;;  %v17080_v17 = vand.u32 4294901760, %v17074_v23 }
 0x253   : > { %2871 = vmatmul.mubr.f32.gmra.mrb[18].mxu0 %v20355_v28  ;;  %3665 = vmatmul.mubr.f32.gmra.mrb[18].mxu1 %v20355_v28  ;;  %20382 = vst [vmem:[#allocation67_spill] sm:$0xff] %v17080_v17  ;;  %v3781_v2 = vsub.f32 %v17074_v23, %v17080_v17 }
 0x254   : > { %2876 = vmatprep.mubr.f32.mxu0 %v20306_v56  ;;  %3670 = vmatprep.mubr.f32.mxu1 %v20306_v56 }
 0x255   : > { %v17111_v39 = vand.u32 4294901760, %v3781_v2 }
 0x257   : > { %2878 = vmatmul.mubr.f32.gmra.mrb[20].mxu0 %v20356_v24  ;;  %3672 = vmatmul.mubr.f32.gmra.mrb[20].mxu1 %v20356_v24  ;;  %20384 = vst [vmem:[#allocation75_spill] sm:$0xff] %v17111_v39 }
 0x258   : > { %2883 = vmatprep.mubr.f32.mxu0 %v20306_v56  ;;  %3677 = vmatprep.mubr.f32.mxu1 %v20306_v56 }
 0x25b   : > { %2885 = vmatmul.mubr.f32.gmra.mrb[22].mxu0 %v20357_v16  ;;  %3679 = vmatmul.mubr.f32.gmra.mrb[22].mxu1 %v20357_v16 }
 0x25c   : > { %3777 = vmatprep.mubr.f32.mxu0 %v20306_v56  ;;  %4320 = vmatprep.mubr.f32.mxu1 %v20306_v56 }
 0x322   : > { %v2865_v12 = vpop.f32.mrb[16].mxu0  ;;  %v3659_v53 = vpop.f32.mrb[16].mxu1 }
 0x323   : > { %v14632_v13 = vadd.f32 %v2865_v12, %v17076_v54  ;;  %v2867_v11 = vpop.f32.mrb[17].mxu0  ;;  %v14640_v9 = vadd.f32 %v3659_v53, %v17076_v54  ;;  %v3661_v27 = vpop.f32.mrb[17].mxu1 }
 0x324   : > { %v14633_v58 = vadd.f32 %v2867_v11, %v17076_v54  ;;  %v14641_v10 = vadd.f32 %v3661_v27, %v17076_v54  ;;  %v17123_v53 = vpop.permute.xlu0 %376 }
 0x325   : > { %v3685_v4 = vmax.f32 %v14632_v13, 0.0  ;;  %v3687_v45 = vmax.f32 %v14640_v9, 0.0  ;;  %20385 = vst [vmem:[#allocation73_spill] sm:$0xff] %v17123_v53 }
 0x326   : > { %v3686_v55 = vmax.f32 %v14633_v58, 0.0  ;;  %v2872_v62 = vpop.f32.mrb[18].mxu0  ;;  %v3688_v48 = vmax.f32 %v14641_v10, 0.0  ;;  %v3666_v34 = vpop.f32.mrb[18].mxu1 }
 0x327   : > { %v3707_v47 = vand.u32 4294901760, %v3685_v4  ;;  %v14634_v18 = vadd.f32 %v2872_v62, %v17085_v59  ;;  %v2874_v26 = vpop.f32.mrb[19].mxu0  ;;  %v4250_v31 = vand.u32 4294901760, %v3687_v45  ;;  %v14642_v43 = vadd.f32 %v3666_v34, %v17085_v59  ;;  %v3668_v25 = vpop.f32.mrb[19].mxu1 }
 0x328   : > { %v17090_v15 = vand.u32 4294901760, %v3686_v55  ;;  %v14635_v20 = vadd.f32 %v2874_v26, %v17085_v59  ;;  %v17096_v1 = vand.u32 4294901760, %v3688_v48  ;;  %v14643_v0 = vadd.f32 %v3668_v25, %v17085_v59 }
 0x329   : > { %v17094_v49 = vsub.f32 %v3685_v4, %v3707_v47  ;;  %v3689_v57 = vmax.f32 %v14634_v18, 0.0  ;;  %v17099_v3 = vsub.f32 %v3687_v45, %v4250_v31  ;;  %v3691_v29 = vmax.f32 %v14642_v43, 0.0  ;;  %v17144_v43 = vpop.permute.xlu1 %381 }
 0x32a   : > { %v17102_v32 = vsub.f32 %v3686_v55, %v17090_v15  ;;  %v3690_v46 = vmax.f32 %v14635_v20, 0.0  ;;  %v2879_v63 = vpop.f32.mrb[20].mxu0  ;;  %v17106_v6 = vsub.f32 %v3688_v48, %v17096_v1  ;;  %v3692_v7 = vmax.f32 %v14643_v0, 0.0  ;;  %v3673_v60 = vpop.f32.mrb[20].mxu1  ;;  %20386 = vst [vmem:[#allocation77_spill] sm:$0xff] %v17144_v43 }
 0x32b   : > { %v19973_v51 = vand.u32 4294901760, %v17094_v49  ;;  %v3711_v61 = vand.u32 4294901760, %v3689_v57  ;;  %v2881_v52 = vpop.f32.mrb[21].mxu0  ;;  %v19971_v44 = vand.u32 4294901760, %v17099_v3  ;;  %v4254_v42 = vand.u32 4294901760, %v3691_v29  ;;  %v3675_v36 = vpop.f32.mrb[21].mxu1 }
 0x32c   : > { %v17109_v33 = vand.u32 4294901760, %v3690_v46  ;;  %v4252_v55 = vand.u32 4294901760, %v3692_v7  ;;  %v14636_v62 = vadd.f32 %v2879_v63, %v17123_v53  ;;  %v14644_v2 = vadd.f32 %v3673_v60, %v17123_v53 }
 0x32d   : > { %v17116_v35 = vsub.f32 %v17094_v49, %v19973_v51  ;;  %v17119_v12 = vpack.c.bf16 %v3711_v61, %v3707_v47  ;;  %v17121_v13 = vsub.f32 %v3689_v57, %v3711_v61  ;;  %v17128_v11 = vsub.f32 %v17099_v3, %v19971_v44 }
 0x32e   : > { %v17130_v9 = vpack.c.bf16 %v4254_v42, %v4250_v31  ;;  %v17132_v58 = vsub.f32 %v3691_v29, %v4254_v42  ;;  %v17135_v27 = vsub.f32 %v3690_v46, %v17109_v33  ;;  %v2886_v4 = vpop.f32.mrb[22].mxu0  ;;  %v3680_v47 = vpop.f32.mrb[22].mxu1  ;;  %v17151_v25 = vsub.f32 %v3692_v7, %v4252_v55 }
 0x32f   : > { %v19972_v45 = vand.u32 4294901760, %v17121_v13  ;;  %v2888_v48 = vpop.f32.mrb[23].mxu0  ;;  %v3682_v31 = vpop.f32.mrb[23].mxu1  ;;  %v3693_v57 = vmax.f32 %v14636_v62, 0.0  ;;  %v14637_v0 = vadd.f32 %v2881_v52, %v17123_v53  ;;  %v3695_v46 = vmax.f32 %v14644_v2, 0.0 }
 0x330   : > { %v19974_v26 = vand.u32 4294901760, %v17132_v58  ;;  %v14645_v63 = vadd.f32 %v3675_v36, %v17123_v53  ;;  %v14638_v61 = vadd.f32 %v2886_v4, %v17144_v43  ;;  %v14646_v36 = vadd.f32 %v3680_v47, %v17144_v43 }
 0x331   : > { %v17149_v20 = vsub.f32 %v17121_v13, %v19972_v45  ;;  %v3715_v44 = vand.u32 4294901760, %v3693_v57  ;;  %v3694_v7 = vmax.f32 %v14637_v0, 0.0  ;;  %v4258_v45 = vand.u32 4294901760, %v3695_v46 }
 0x332   : > { %v17161_v42 = vsub.f32 %v17132_v58, %v19974_v26  ;;  %v3696_v52 = vmax.f32 %v14645_v63, 0.0  ;;  %v3697_v51 = vmax.f32 %v14638_v61, 0.0  ;;  %v14639_v4 = vadd.f32 %v2888_v48, %v17144_v43 }
 0x333   : > { %v3811_v60 = vand.u32 4294901760, %v17149_v20  ;;  %v17164_v34 = vsub.f32 %v3693_v57, %v3715_v44  ;;  %v3713_v2 = vand.u32 4294901760, %v3694_v7  ;;  %v17168_v20 = vsub.f32 %v3695_v46, %v4258_v45 }
 0x334   : > { %v4256_v18 = vand.u32 4294901760, %v3696_v52  ;;  %v3719_v10 = vand.u32 4294901760, %v3697_v51  ;;  %v14647_v26 = vadd.f32 %v3682_v31, %v17144_v43  ;;  %v3699_v62 = vmax.f32 %v14646_v36, 0.0 }
 0x335   : > { %v19977_v0 = vand.u32 4294901760, %v17164_v34  ;;  %v17172_v29 = vsub.f32 %v3694_v7, %v3713_v2  ;;  %v3698_v63 = vmax.f32 %v14639_v4, 0.0  ;;  %v19982_v57 = vand.u32 4294901760, %v17168_v20 }
 0x336   : > { %v17175_v61 = vsub.f32 %v3696_v52, %v4256_v18  ;;  %v17177_v5 = vpack.c.bf16 %v3719_v10, %v3715_v44  ;;  %v17179_v47 = vsub.f32 %v3697_v51, %v3719_v10  ;;  %v4354_v48 = vand.u32 4294901760, %v17161_v42 }
 0x337   : > { %v3822_v31 = vsub.f32 %v17164_v34, %v19977_v0  ;;  %v4262_v46 = vand.u32 4294901760, %v3699_v62  ;;  %v3717_v43 = vand.u32 4294901760, %v3698_v63  ;;  %v4365_v7 = vsub.f32 %v17168_v20, %v19982_v57 }
 0x338   : > { %v19983_v52 = vand.u32 4294901760, %v17179_v47  ;;  %v3700_v44 = vmax.f32 %v14647_v26, 0.0  ;;  %v17202_v57 = vpack.c.bf16 %v17109_v33, %v17090_v15  ;;  %v20393_v30 = vand.u32 4294901760, %v17172_v29 }
 0x339   : > { %v17191_v10 = vpack.c.bf16 %v4262_v46, %v4258_v45  ;;  %v17193_v42 = vsub.f32 %v3699_v62, %v4262_v46  ;;  %v17195_v4 = vsub.f32 %v3698_v63, %v3717_v43  ;;  %v3823_v0 = vand.u32 4294901760, %v3822_v31 }
 0x33a   : > { %v3834_v53 = vsub.f32 %v17179_v47, %v19983_v52  ;;  %v4260_v59 = vand.u32 4294901760, %v3700_v44  ;;  %v4366_v36 = vand.u32 4294901760, %v4365_v7  ;;  %v17206_v45 = vpack.c.bf16 %v4252_v55, %v17096_v1  ;;  %13929 = vmatprep.subr.bf16.mxu0 %v17202_v57 }
 0x33b   : > { %v19984_v26 = vand.u32 4294901760, %v17193_v42  ;;  %v17208_v62 = vpack.c.bf16 %v3717_v43, %v3713_v2  ;;  %v3827_v63 = vand.u32 4294901760, %v17195_v4  ;;  %v20387_v52 = vand.u32 4294901760, %v17102_v32  ;;  %13931 = vmatpush1.bf16.msra.mxu0 %v17119_v12 }
 0x33c   : > { %v17211_v31 = vsub.f32 %v3700_v44, %v4260_v59  ;;  %v17214_v46 = vpack.c.bf16 %v4260_v59, %v4256_v18  ;;  %v3835_v33 = vand.u32 4294901760, %v3834_v53  ;;  %13977 = vmatprep.subr.bf16.mxu1 %v17206_v45  ;;  %v20388_v55 = vand.u32 4294901760, %v17135_v27 }
 0x33d   : > { %v3792_v15 = vsub.f32 %v17102_v32, %v20387_v52  ;;  %v4377_v1 = vsub.f32 %v17193_v42, %v19984_v26  ;;  %v20389_v59 = vand.u32 4294901760, %v17106_v6  ;;  %13979 = vmatpush1.bf16.msra.mxu1 %v17130_v9  ;;  %13933 = vmatprep.subr.bf16.mxu0 %v17208_v62  ;;  %v20390_v7 = vand.u32 4294901760, %v17151_v25 }
 0x33e   : > { %v3804_v43 = vsub.f32 %v17135_v27, %v20388_v55  ;;  %v4370_v2 = vand.u32 4294901760, %v17211_v31  ;;  %v20391_v44 = vand.u32 4294901760, %v17116_v35  ;;  %13981 = vmatprep.subr.bf16.mxu1 %v17214_v46  ;;  %v3828_v19 = vsub.f32 %v17195_v4, %v3827_v63 }
 0x33f   : > { %v4335_v18 = vsub.f32 %v17106_v6, %v20389_v59  ;;  %v3793_v53 = vand.u32 4294901760, %v3792_v15  ;;  %v4347_v52 = vsub.f32 %v17151_v25, %v20390_v7  ;;  %v4378_v51 = vand.u32 4294901760, %v4377_v1  ;;  %13935 = vmatpush1.bf16.msra.mxu0 %v17177_v5 }
 0x340   : > { %v13938_v26 = vpack.c.bf16 %v3811_v60, %v20391_v44  ;;  %v3805_v55 = vand.u32 4294901760, %v3804_v43  ;;  %v20392_v59 = vand.u32 4294901760, %v17128_v11  ;;  %v3816_v15 = vsub.f32 %v17172_v29, %v20393_v30 }
 0x341   : > { %v4336_v54 = vand.u32 4294901760, %v4335_v18  ;;  %v4348_v41 = vand.u32 4294901760, %v4347_v52  ;;  %v20394_v7 = vand.u32 4294901760, %v17175_v61  ;;  %v4371_v1 = vsub.f32 %v17211_v31, %v4370_v2  ;;  %13983 = vmatpush1.bf16.msra.mxu1 %v17191_v10 }
 0x342   : > { %v13986_v38 = vpack.c.bf16 %v4354_v48, %v20392_v59  ;;  %v13936_v60 = vpack.c.bf16 %v3805_v55, %v3793_v53  ;;  %v13942_v43 = vpack.c.bf16 %v3835_v33, %v3823_v0  ;;  %v13990_v18 = vpack.c.bf16 %v4378_v51, %v4366_v36  ;;  %3783 = vmatmul.mubr.f32.vlgmr.msra.gmra.mrb[24].mxu0 %v17111_v39 }
 0x343   : > { %v4359_v35 = vsub.f32 %v17175_v61, %v20394_v7  ;;  %v13984_v11 = vpack.c.bf16 %v4348_v41, %v4336_v54  ;;  %v3817_v48 = vand.u32 4294901760, %v3816_v15  ;;  %v3829_v52 = vand.u32 4294901760, %v3828_v19  ;;  %3893 = vmatprep.mubr.f32.mxu0 %v20306_v56 }
 0x344   : > { %13937 = vmatprep.subr.bf16.mxu0 %v13936_v60  ;;  %v4372_v30 = vand.u32 4294901760, %v4371_v1  ;;  %v13944_v59 = vpack.c.bf16 %v17135_v27, %v17102_v32  ;;  %v13992_v7 = vpack.c.bf16 %v17151_v25, %v17106_v6  ;;  %v13946_v53 = vpack.c.bf16 %v17121_v13, %v17094_v49  ;;  %4326 = vmatmul.mubr.f32.vlgmr.msra.gmra.mrb[24].mxu1 %v17111_v39 }
 0x345   : > { %v4360_v44 = vand.u32 4294901760, %v4359_v35  ;;  %13985 = vmatprep.subr.bf16.mxu1 %v13984_v11  ;;  %v13940_v0 = vpack.c.bf16 %v3829_v52, %v3817_v48  ;;  %v13994_v41 = vpack.c.bf16 %v17132_v58, %v17099_v3  ;;  %v13948_v19 = vpack.c.bf16 %v17195_v4, %v17172_v29  ;;  %13939 = vmatpush1.bf16.msra.mxu0 %v13938_v26 }
 0x346   : > { %v13996_v36 = vpack.c.bf16 %v17211_v31, %v17175_v61  ;;  %v13950_v51 = vpack.c.bf16 %v17179_v47, %v17164_v34  ;;  %13987 = vmatpush1.bf16.msra.mxu1 %v13986_v38  ;;  %v13998_v33 = vpack.c.bf16 %v17193_v42, %v17168_v20  ;;  %v20395_v55 = vand.u32 4294901760, %v17102_v32  ;;  %4436 = vmatprep.mubr.f32.mxu1 %v20306_v56 }
 0x347   : > { %v13988_v54 = vpack.c.bf16 %v4372_v30, %v4360_v44  ;;  %13941 = vmatprep.subr.bf16.mxu0 %v13940_v0  ;;  %v20396_v15 = vand.u32 4294901760, %v17135_v27  ;;  %v20397_v35 = vand.u32 4294901760, %v17106_v6  ;;  %v20398_v26 = vand.u32 4294901760, %v17151_v25 }
 0x348   : > { %v20399_v31 = vand.u32 4294901760, %v17094_v49  ;;  %v20400_v38 = vand.u32 4294901760, %v17121_v13  ;;  %v20401_v11 = vand.u32 4294901760, %v17099_v3  ;;  %v20402_v32 = vand.u32 4294901760, %v17132_v58  ;;  %v4842_v58 = vld [vmem:[%s15863_s10 + $0x28] sm:$0x1f] }
 0x349   : > { %v13960_v4 = vpack.c.bf16 %v20396_v15, %v20395_v55  ;;  %v14008_v60 = vpack.c.bf16 %v20398_v26, %v20397_v35  ;;  %13989 = vmatprep.subr.bf16.mxu1 %v13988_v54  ;;  %v20403_v27 = vand.u32 4294901760, %v17172_v29  ;;  %v20404_v6 = vand.u32 4294901760, %v17175_v61  ;;  %13943 = vmatpush1.bf16.msra.mxu0 %v13942_v43  ;;  %v20409_v55 = vld [vmem:[#allocation20_spill] sm:$0xff]  ;;  %v20410_v15 = vld [vmem:[#allocation23_spill] sm:$0xff]  ;;  %v20412_v35 = vld [vmem:[#allocation30_spill] sm:$0xff] }
 0x34a   : > { %v13962_v1 = vpack.c.bf16 %v20400_v38, %v20399_v31  ;;  %v14010_v48 = vpack.c.bf16 %v20402_v32, %v20401_v11  ;;  %v20405_v44 = vand.u32 4294901760, %v17164_v34  ;;  %v20406_v49 = vand.u32 4294901760, %v17179_v47  ;;  %13991 = vmatpush1.bf16.msra.mxu1 %v13990_v18  ;;  %13945 = vmatprep.subr.bf16.mxu0 %v13944_v59  ;;  %v4844_v34 = vld [vmem:[%s15863_s10 + $0x38] sm:$0x1f]  ;;  %v4843_v47 = vld [vmem:[%s15863_s10 + $0x30] sm:$0x1f] }
 0x34b   : > { %v13964_v52 = vpack.c.bf16 %v3827_v63, %v20403_v27  ;;  %v14012_v25 = vpack.c.bf16 %v4370_v2, %v20404_v6  ;;  %v20407_v13 = vand.u32 4294901760, %v17168_v20  ;;  %v20408_v3 = vand.u32 4294901760, %v17193_v42  ;;  %13993 = vmatprep.subr.bf16.mxu1 %v13992_v7  ;;  %v4841_v20 = vld [vmem:[%s15863_s10 + $0x20] sm:$0x1f]  ;;  %v20415_v31 = vld [vmem:[#allocation39_spill] sm:$0xff]  ;;  %v20416_v38 = vld [vmem:[#allocation40_spill] sm:$0xff] }
 0x34c   : > { %v13966_v30 = vpack.c.bf16 %v20406_v49, %v20405_v44  ;;  %3895 = vmatmul.mubr.f32.vlgmr.msra.gmra.mrb[24].mxu0 %v17071_v14  ;;  %v4849_v29 = vsel %vm423_vm0, %v4842_v58, 0  ;;  %v4855_v61 = vsel %vm423_vm0, %v4844_v34, 0  ;;  %v4846_v63 = vsel %vm423_vm0, %v4841_v20, 0  ;;  %v20413_v26 = vld [vmem:[#allocation34_spill] sm:$0xff]  ;;  %v20419_v32 = vld [vmem:[#allocation11_spill] sm:$0xff]  ;;  %v20423_v6 = vld [vmem:[#allocation29_spill] sm:$0xff] }
 0x34d   : > { %v14014_v0 = vpack.c.bf16 %v20408_v3, %v20407_v13  ;;  %4438 = vmatmul.mubr.f32.vlgmr.msra.gmra.mrb[24].mxu1 %v17071_v14  ;;  %13947 = vmatpush1.bf16.msra.mxu0 %v13946_v53  ;;  %v17323_v42 = vand.u32 4294901760, %v4849_v29  ;;  %v17326_v2 = vand.u32 4294901760, %v4855_v61  ;;  %v4852_v43 = vsel %vm423_vm0, %v4843_v47, 0  ;;  %v20418_v11 = vld [vmem:[#allocation10_spill] sm:$0xff]  ;;  %v20425_v44 = vld [vmem:[#allocation12_spill] sm:$0xff]  ;;  %v20426_v49 = vld [vmem:[#allocation13_spill] sm:$0xff] }
 0x34e   : > { %13995 = vmatpush1.bf16.msra.mxu1 %v13994_v41  ;;  %13949 = vmatprep.subr.bf16.mxu0 %v13948_v19  ;;  %v17334_v59 = vand.u32 4294901760, %v4846_v63  ;;  %v17339_v53 = vand.u32 4294901760, %v4852_v43  ;;  %v20421_v27 = vld [vmem:[#allocation22_spill] sm:$0xff]  ;;  %v20429_v3 = vld [vmem:[#allocation25_spill] sm:$0xff]  ;;  %v20431_v58 = vld [vmem:[#allocation32_spill] sm:$0xff] }
 0x34f   : > { %13997 = vmatprep.subr.bf16.mxu1 %v13996_v36  ;;  %3981 = vmatprep.mubr.f32.mxu0 %v20306_v56  ;;  %v17331_v18 = vsub.f32 %v4849_v29, %v17323_v42  ;;  %v17337_v7 = vsub.f32 %v4855_v61, %v17326_v2  ;;  %v20428_v13 = vld [vmem:[#allocation18_spill] sm:$0xff]  ;;  %v20432_v34 = vld [vmem:[#allocation36_spill] sm:$0xff]  ;;  %v20434_v20 = vld [vmem:[#allocation17_spill] sm:$0xff] }
 0x350   : > { %4524 = vmatprep.mubr.f32.mxu1 %v20306_v56  ;;  %v17343_v41 = vsub.f32 %v4846_v63, %v17334_v59  ;;  %v17347_v19 = vsub.f32 %v4852_v43, %v17339_v53  ;;  %v20433_v29 = vld [vmem:[#allocation16_spill] sm:$0xff]  ;;  %v20435_v61 = vld [vmem:[#allocation19_spill] sm:$0xff]  ;;  %v20436_v47 = vld [vmem:[#allocation21_spill] sm:$0xff] }
 0x351   : > { %13951 = vmatpush1.bf16.msra.mxu0 %v13950_v51  ;;  %v5014_v54 = vand.u32 4294901760, %v17331_v18  ;;  %v5822_v36 = vand.u32 4294901760, %v17337_v7  ;;  %v20438_v63 = vld [vmem:[#allocation31_spill] sm:$0xff]  ;;  %v20440_v43 = vld [vmem:[#allocation38_spill] sm:$0xff] }
 0x352   : > { %13999 = vmatpush1.bf16.msra.mxu1 %v13998_v33  ;;  %13953 = vmatprep.subr.bf16.mxu0 %v17202_v57  ;;  %v5828_v51 = vand.u32 4294901760, %v17347_v19 }
 0x353   : > { %14001 = vmatprep.subr.bf16.mxu1 %v17206_v45 }
 0x354   : > { %3984 = vmatmul.mubr.f32.vlgmr.msra.gmra.mrb[24].mxu0 %v17074_v23 }
 0x355   : > { %4527 = vmatmul.mubr.f32.vlgmr.msra.gmra.mrb[24].mxu1 %v17074_v23  ;;  %13955 = vmatpush1.bf16.msra.mxu0 %v17119_v12 }
 0x356   : > { %14003 = vmatpush1.bf16.msra.mxu1 %v17130_v9  ;;  %13957 = vmatprep.subr.bf16.mxu0 %v17208_v62 }
 0x357   : > { %14005 = vmatprep.subr.bf16.mxu1 %v17214_v46  ;;  %4062 = vmatprep.mubr.f32.mxu0 %v20306_v56 }
 0x358   : > { %4605 = vmatprep.mubr.f32.mxu1 %v20306_v56 }
 0x359   : > { %13959 = vmatpush1.bf16.msra.mxu0 %v17177_v5 }
 0x35a   : > { %14007 = vmatpush1.bf16.msra.mxu1 %v17191_v10  ;;  %13961 = vmatprep.subr.bf16.mxu0 %v13960_v4  ;;  %v20411_v4 = vld [vmem:[#allocation26_spill] sm:$0xff] }
 0x35b   : > { %14009 = vmatprep.subr.bf16.mxu1 %v14008_v60  ;;  %v20414_v60 = vld [vmem:[#allocation37_spill] sm:$0xff] }
 0x35c   : > { %4066 = vmatmul.mubr.f32.vlgmr.msra.gmra.mrb[24].mxu0 %v17080_v17 }
 0x35d   : > { %4609 = vmatmul.mubr.f32.vlgmr.msra.gmra.mrb[24].mxu1 %v17080_v17  ;;  %13963 = vmatpush1.bf16.msra.mxu0 %v13962_v1  ;;  %v20417_v1 = vld [vmem:[#allocation9_spill] sm:$0xff] }
 0x35e   : > { %14011 = vmatpush1.bf16.msra.mxu1 %v14010_v48  ;;  %13965 = vmatprep.subr.bf16.mxu0 %v13964_v52  ;;  %v20420_v48 = vld [vmem:[#allocation15_spill] sm:$0xff]  ;;  %v20422_v52 = vld [vmem:[#allocation24_spill] sm:$0xff] }
 0x35f   : > { %14013 = vmatprep.subr.bf16.mxu1 %v14012_v25  ;;  %4160 = vmatprep.mubr.f32.mxu0 %v20306_v56  ;;  %v20424_v25 = vld [vmem:[#allocation33_spill] sm:$0xff] }
 0x360   : > { %4703 = vmatprep.mubr.f32.mxu1 %v20306_v56 }
 0x361   : > { %13967 = vmatpush1.bf16.msra.mxu0 %v13966_v30  ;;  %v20427_v30 = vld [vmem:[#allocation14_spill] sm:$0xff] }
 0x362   : > { %14015 = vmatpush1.bf16.msra.mxu1 %v14014_v0  ;;  %13969 = vmatprep.subr.bf16.mxu0 %v17202_v57  ;;  %v5020_v57 = vand.u32 4294901760, %v17343_v41  ;;  %v20430_v0 = vld [vmem:[#allocation28_spill] sm:$0xff] }
 0x363   : > { %14017 = vmatprep.subr.bf16.mxu1 %v17206_v45  ;;  %v5015_v45 = vsub.f32 %v17331_v18, %v5014_v54 }
 0x364   : > { %4162 = vmatmul.mubr.f32.vlgmr.msra.gmra.mrb[24].mxu0 %v17071_v14 }
 0x365   : > { %4705 = vmatmul.mubr.f32.vlgmr.msra.gmra.mrb[24].mxu1 %v17071_v14  ;;  %13971 = vmatpush1.bf16.msra.mxu0 %v17119_v12  ;;  %v5823_v12 = vsub.f32 %v17337_v7, %v5822_v36 }
 0x366   : > { %14019 = vmatpush1.bf16.msra.mxu1 %v17130_v9  ;;  %13973 = vmatprep.subr.bf16.mxu0 %v17208_v62  ;;  %v5021_v9 = vsub.f32 %v17343_v41, %v5020_v57  ;;  %v5016_v62 = vand.u32 4294901760, %v5015_v45 }
 0x367   : > { %14021 = vmatprep.subr.bf16.mxu1 %v17214_v46  ;;  %4240 = vmatprep.mubr.f32.mxu0 %v20306_v56  ;;  %v5829_v46 = vsub.f32 %v17347_v19, %v5828_v51  ;;  %v5824_v33 = vand.u32 4294901760, %v5823_v12 }
 0x368   : > { %4783 = vmatprep.mubr.f32.mxu1 %v20306_v56 }
 0x369   : > { %13975 = vmatpush1.bf16.msra.mxu0 %v17177_v5  ;;  %v5022_v5 = vand.u32 4294901760, %v5021_v9 }
 0x36a   : > { %14023 = vmatpush1.bf16.msra.mxu1 %v17191_v10  ;;  %4858 = vmatprep.subr.mxu0 %v17323_v42  ;;  %v5830_v10 = vand.u32 4294901760, %v5829_v46 }
 0x36b   : > { %5666 = vmatprep.subr.mxu1 %v17326_v2 }
 0x36c   : > { %4242 = vmatmul.mubr.f32.vlgmr.msra.gmra.mrb[24].mxu0 %v17071_v14 }
 0x36d   : > { %4785 = vmatmul.mubr.f32.vlgmr.msra.gmra.mrb[24].mxu1 %v17071_v14  ;;  %4860 = vmatpush1.msra.mxu0 %v17334_v59 }
 0x36e   : > { %4923 = vmatprep.mubr.f32.mxu0 %v20306_v56  ;;  %5668 = vmatpush1.msra.mxu1 %v17339_v53 }
 0x36f   : > { %5731 = vmatprep.mubr.f32.mxu1 %v20306_v56  ;;  %5017 = vmatprep.subr.mxu0 %v5016_v62 }
 0x370   : > { %4929 = vmatmul.mubr.f32.vlgmr.msra.gmra.mrb[26].mxu0 %v20409_v55  ;;  %5825 = vmatprep.subr.mxu1 %v5824_v33 }
 0x371   : > { %5737 = vmatmul.mubr.f32.vlgmr.msra.gmra.mrb[26].mxu1 %v20409_v55  ;;  %4934 = vmatprep.mubr.f32.mxu0 %v20306_v56 }
 0x372   : > { %5742 = vmatprep.mubr.f32.mxu1 %v20306_v56  ;;  %5023 = vmatpush1.msra.mxu0 %v5022_v5 }
 0x373   : > { %5831 = vmatpush1.msra.mxu1 %v5830_v10  ;;  %5145 = vmatprep.subr.mxu0 %v17331_v18  ;;  %v390_v18 = vlaneseq  ;;  %v15715_v10 = vmov 1966171168  }
 0x374   : > { %4940 = vmatmul.mubr.f32.gmra.mrb[28].mxu0 %v20410_v15  ;;  %5953 = vmatprep.subr.mxu1 %v17337_v7 }
 0x375   : > { %5748 = vmatmul.mubr.f32.gmra.mrb[28].mxu1 %v20410_v15  ;;  %4945 = vmatprep.mubr.f32.mxu0 %v20306_v56  ;;  %vm17606_vm4 = vcmp.lt.s32.totalorder %v390_v18, 512 }
 0x376   : > { %5753 = vmatprep.mubr.f32.mxu1 %v20306_v56 }
 0x378   : > { %4951 = vmatmul.mubr.f32.gmra.mrb[30].mxu0 %v20411_v4 }
 0x379   : > { %5759 = vmatmul.mubr.f32.gmra.mrb[30].mxu1 %v20411_v4  ;;  %4956 = vmatprep.mubr.f32.mxu0 %v20306_v56 }
 0x37a   : > { %5764 = vmatprep.mubr.f32.mxu1 %v20306_v56 }
 0x37c   : > { %4962 = vmatmul.mubr.f32.gmra.mrb[32].mxu0 %v20412_v35 }
 0x37d   : > { %5770 = vmatmul.mubr.f32.gmra.mrb[32].mxu1 %v20412_v35  ;;  %4967 = vmatprep.mubr.f32.mxu0 %v20306_v56 }
 0x37e   : > { %5775 = vmatprep.mubr.f32.mxu1 %v20306_v56 }
 0x380   : > { %4973 = vmatmul.mubr.f32.gmra.mrb[34].mxu0 %v20413_v26 }
 0x381   : > { %5781 = vmatmul.mubr.f32.gmra.mrb[34].mxu1 %v20413_v26  ;;  %4978 = vmatprep.mubr.f32.mxu0 %v20306_v56 }
 0x382   : > { %5786 = vmatprep.mubr.f32.mxu1 %v20306_v56 }
 0x384   : > { %4984 = vmatmul.mubr.f32.gmra.mrb[36].mxu0 %v20414_v60 }
 0x385   : > { %5792 = vmatmul.mubr.f32.gmra.mrb[36].mxu1 %v20414_v60  ;;  %4989 = vmatprep.mubr.f32.mxu0 %v20306_v56 }
 0x386   : > { %5797 = vmatprep.mubr.f32.mxu1 %v20306_v56 }
 0x388   : > { %4995 = vmatmul.mubr.f32.gmra.mrb[38].mxu0 %v20415_v31 }
 0x389   : > { %5803 = vmatmul.mubr.f32.gmra.mrb[38].mxu1 %v20415_v31  ;;  %5000 = vmatprep.mubr.f32.mxu0 %v20306_v56 }
 0x38a   : > { %5808 = vmatprep.mubr.f32.mxu1 %v20306_v56 }
 0x38c   : > { %5006 = vmatmul.mubr.f32.gmra.mrb[40].mxu0 %v20416_v38 }
 0x38d   : > { %5814 = vmatmul.mubr.f32.gmra.mrb[40].mxu1 %v20416_v38  ;;  %5086 = vmatprep.mubr.f32.mxu0 %v20306_v56 }
 0x38e   : > { %5894 = vmatprep.mubr.f32.mxu1 %v20306_v56 }
 0x390   : > { %5088 = vmatmul.mubr.f32.vlgmr.msra.gmra.mrb[26].mxu0 %v20417_v1 }
 0x391   : > { %5896 = vmatmul.mubr.f32.vlgmr.msra.gmra.mrb[26].mxu1 %v20417_v1  ;;  %5093 = vmatprep.mubr.f32.mxu0 %v20306_v56 }
 0x392   : > { %5901 = vmatprep.mubr.f32.mxu1 %v20306_v56  ;;  %5148 = vmatpush1.msra.mxu0 %v17343_v41 }
 0x393   : > { %5956 = vmatpush1.msra.mxu1 %v17347_v19  ;;  %5277 = vmatprep.subr.mxu0 %v17323_v42 }
 0x394   : > { %5095 = vmatmul.mubr.f32.gmra.mrb[28].mxu0 %v20418_v11  ;;  %6085 = vmatprep.subr.mxu1 %v17326_v2 }
 0x395   : > { %5903 = vmatmul.mubr.f32.gmra.mrb[28].mxu1 %v20418_v11  ;;  %5100 = vmatprep.mubr.f32.mxu0 %v20306_v56 }
 0x396   : > { %5908 = vmatprep.mubr.f32.mxu1 %v20306_v56 }
 0x398   : > { %5102 = vmatmul.mubr.f32.gmra.mrb[30].mxu0 %v20419_v32 }
 0x399   : > { %5910 = vmatmul.mubr.f32.gmra.mrb[30].mxu1 %v20419_v32  ;;  %5107 = vmatprep.mubr.f32.mxu0 %v20306_v56 }
 0x39a   : > { %5915 = vmatprep.mubr.f32.mxu1 %v20306_v56 }
 0x39c   : > { %5109 = vmatmul.mubr.f32.gmra.mrb[32].mxu0 %v20420_v48 }
 0x39d   : > { %5917 = vmatmul.mubr.f32.gmra.mrb[32].mxu1 %v20420_v48  ;;  %5114 = vmatprep.mubr.f32.mxu0 %v20306_v56 }
 0x39e   : > { %5922 = vmatprep.mubr.f32.mxu1 %v20306_v56 }
 0x3a0   : > { %5116 = vmatmul.mubr.f32.gmra.mrb[34].mxu0 %v20421_v27 }
 0x3a1   : > { %5924 = vmatmul.mubr.f32.gmra.mrb[34].mxu1 %v20421_v27  ;;  %5121 = vmatprep.mubr.f32.mxu0 %v20306_v56 }
 0x3a2   : > { %5929 = vmatprep.mubr.f32.mxu1 %v20306_v56 }
 0x3a4   : > { %5123 = vmatmul.mubr.f32.gmra.mrb[36].mxu0 %v20422_v52 }
 0x3a5   : > { %5931 = vmatmul.mubr.f32.gmra.mrb[36].mxu1 %v20422_v52  ;;  %5128 = vmatprep.mubr.f32.mxu0 %v20306_v56 }
 0x3a6   : > { %5936 = vmatprep.mubr.f32.mxu1 %v20306_v56 }
 0x3a8   : > { %5130 = vmatmul.mubr.f32.gmra.mrb[38].mxu0 %v20423_v6 }
 0x3a9   : > { %5938 = vmatmul.mubr.f32.gmra.mrb[38].mxu1 %v20423_v6  ;;  %5135 = vmatprep.mubr.f32.mxu0 %v20306_v56 }
 0x3aa   : > { %5943 = vmatprep.mubr.f32.mxu1 %v20306_v56 }
 0x3ac   : > { %5137 = vmatmul.mubr.f32.gmra.mrb[40].mxu0 %v20424_v25 }
 0x3ad   : > { %5945 = vmatmul.mubr.f32.gmra.mrb[40].mxu1 %v20424_v25  ;;  %5211 = vmatprep.mubr.f32.mxu0 %v20306_v56 }
 0x3ae   : > { %6019 = vmatprep.mubr.f32.mxu1 %v20306_v56 }
 0x3b0   : > { %5214 = vmatmul.mubr.f32.vlgmr.msra.gmra.mrb[26].mxu0 %v20425_v44 }
 0x3b1   : > { %6022 = vmatmul.mubr.f32.vlgmr.msra.gmra.mrb[26].mxu1 %v20425_v44  ;;  %5219 = vmatprep.mubr.f32.mxu0 %v20306_v56 }
 0x3b2   : > { %6027 = vmatprep.mubr.f32.mxu1 %v20306_v56  ;;  %5279 = vmatpush1.msra.mxu0 %v17334_v59 }
 0x3b3   : > { %6087 = vmatpush1.msra.mxu1 %v17339_v53  ;;  %5418 = vmatprep.subr.mxu0 %v5014_v54 }
 0x3b4   : > { %5222 = vmatmul.mubr.f32.gmra.mrb[28].mxu0 %v20426_v49  ;;  %6226 = vmatprep.subr.mxu1 %v5822_v36 }
 0x3b5   : > { %6030 = vmatmul.mubr.f32.gmra.mrb[28].mxu1 %v20426_v49  ;;  %5227 = vmatprep.mubr.f32.mxu0 %v20306_v56 }
 0x3b6   : > { %6035 = vmatprep.mubr.f32.mxu1 %v20306_v56 }
 0x3b8   : > { %5230 = vmatmul.mubr.f32.gmra.mrb[30].mxu0 %v20427_v30 }
 0x3b9   : > { %6038 = vmatmul.mubr.f32.gmra.mrb[30].mxu1 %v20427_v30  ;;  %5235 = vmatprep.mubr.f32.mxu0 %v20306_v56  ;;  %v20451_v30 = vld [vmem:[#allocation61_spill] sm:$0xff] }
 0x3ba   : > { %6043 = vmatprep.mubr.f32.mxu1 %v20306_v56 }
 0x3bc   : > { %5238 = vmatmul.mubr.f32.gmra.mrb[32].mxu0 %v20428_v13 }
 0x3bd   : > { %6046 = vmatmul.mubr.f32.gmra.mrb[32].mxu1 %v20428_v13  ;;  %5243 = vmatprep.mubr.f32.mxu0 %v20306_v56 }
 0x3be   : > { %6051 = vmatprep.mubr.f32.mxu1 %v20306_v56 }
 0x3c0   : > { %5246 = vmatmul.mubr.f32.gmra.mrb[34].mxu0 %v20429_v3 }
 0x3c1   : > { %6054 = vmatmul.mubr.f32.gmra.mrb[34].mxu1 %v20429_v3  ;;  %5251 = vmatprep.mubr.f32.mxu0 %v20306_v56 }
 0x3c2   : > { %6059 = vmatprep.mubr.f32.mxu1 %v20306_v56 }
 0x3c4   : > { %5254 = vmatmul.mubr.f32.gmra.mrb[36].mxu0 %v20430_v0 }
 0x3c5   : > { %6062 = vmatmul.mubr.f32.gmra.mrb[36].mxu1 %v20430_v0  ;;  %5259 = vmatprep.mubr.f32.mxu0 %v20306_v56 }
 0x3c6   : > { %6067 = vmatprep.mubr.f32.mxu1 %v20306_v56 }
 0x3c8   : > { %5262 = vmatmul.mubr.f32.gmra.mrb[38].mxu0 %v20431_v58 }
 0x3c9   : > { %6070 = vmatmul.mubr.f32.gmra.mrb[38].mxu1 %v20431_v58  ;;  %5267 = vmatprep.mubr.f32.mxu0 %v20306_v56 }
 0x3ca   : > { %6075 = vmatprep.mubr.f32.mxu1 %v20306_v56 }
 0x3cc   : > { %5270 = vmatmul.mubr.f32.gmra.mrb[40].mxu0 %v20432_v34 }
 0x3cd   : > { %6078 = vmatmul.mubr.f32.gmra.mrb[40].mxu1 %v20432_v34  ;;  %5342 = vmatprep.mubr.f32.mxu0 %v20306_v56 }
 0x3ce   : > { %6150 = vmatprep.mubr.f32.mxu1 %v20306_v56 }
 0x3d0   : > { %5346 = vmatmul.mubr.f32.vlgmr.msra.gmra.mrb[26].mxu0 %v20433_v29 }
 0x3d1   : > { %6154 = vmatmul.mubr.f32.vlgmr.msra.gmra.mrb[26].mxu1 %v20433_v29  ;;  %5351 = vmatprep.mubr.f32.mxu0 %v20306_v56 }
 0x3d2   : > { %6159 = vmatprep.mubr.f32.mxu1 %v20306_v56  ;;  %5422 = vmatpush1.msra.mxu0 %v5020_v57 }
 0x3d3   : > { %6230 = vmatpush1.msra.mxu1 %v5828_v51  ;;  %5543 = vmatprep.subr.mxu0 %v17323_v42  ;;  %v20437_v42 = vld [vmem:[#allocation27_spill] sm:$0xff] }
 0x3d4   : > { %5355 = vmatmul.mubr.f32.gmra.mrb[28].mxu0 %v20434_v20  ;;  %6351 = vmatprep.subr.mxu1 %v17326_v2  ;;  %v20439_v2 = vld [vmem:[#allocation35_spill] sm:$0xff] }
 0x3d5   : > { %6163 = vmatmul.mubr.f32.gmra.mrb[28].mxu1 %v20434_v20  ;;  %5360 = vmatprep.mubr.f32.mxu0 %v20306_v56 }
 0x3d6   : > { %6168 = vmatprep.mubr.f32.mxu1 %v20306_v56 }
 0x3d8   : > { %5364 = vmatmul.mubr.f32.gmra.mrb[30].mxu0 %v20435_v61 }
 0x3d9   : > { %6172 = vmatmul.mubr.f32.gmra.mrb[30].mxu1 %v20435_v61  ;;  %5369 = vmatprep.mubr.f32.mxu0 %v20306_v56 }
 0x3da   : > { %6177 = vmatprep.mubr.f32.mxu1 %v20306_v56 }
 0x3dc   : > { %5373 = vmatmul.mubr.f32.gmra.mrb[32].mxu0 %v20436_v47 }
 0x3dd   : > { %6181 = vmatmul.mubr.f32.gmra.mrb[32].mxu1 %v20436_v47  ;;  %5378 = vmatprep.mubr.f32.mxu0 %v20306_v56 }
 0x3de   : > { %6186 = vmatprep.mubr.f32.mxu1 %v20306_v56 }
 0x3e0   : > { %5382 = vmatmul.mubr.f32.gmra.mrb[34].mxu0 %v20437_v42 }
 0x3e1   : > { %6190 = vmatmul.mubr.f32.gmra.mrb[34].mxu1 %v20437_v42  ;;  %5387 = vmatprep.mubr.f32.mxu0 %v20306_v56 }
 0x3e2   : > { %6195 = vmatprep.mubr.f32.mxu1 %v20306_v56 }
 0x3e4   : > { %5391 = vmatmul.mubr.f32.gmra.mrb[36].mxu0 %v20438_v63 }
 0x3e5   : > { %6199 = vmatmul.mubr.f32.gmra.mrb[36].mxu1 %v20438_v63  ;;  %5396 = vmatprep.mubr.f32.mxu0 %v20306_v56 }
 0x3e6   : > { %6204 = vmatprep.mubr.f32.mxu1 %v20306_v56 }
 0x3e8   : > { %5400 = vmatmul.mubr.f32.gmra.mrb[38].mxu0 %v20439_v2 }
 0x3e9   : > { %6208 = vmatmul.mubr.f32.gmra.mrb[38].mxu1 %v20439_v2  ;;  %5405 = vmatprep.mubr.f32.mxu0 %v20306_v56 }
 0x3ea   : > { %6213 = vmatprep.mubr.f32.mxu1 %v20306_v56 }
 0x3ec   : > { %5409 = vmatmul.mubr.f32.gmra.mrb[40].mxu0 %v20440_v43 }
 0x3ed   : > { %6217 = vmatmul.mubr.f32.gmra.mrb[40].mxu1 %v20440_v43  ;;  %5485 = vmatprep.mubr.f32.mxu0 %v20306_v56 }
 0x3ee   : > { %6293 = vmatprep.mubr.f32.mxu1 %v20306_v56 }
 0x3f0   : > { %5487 = vmatmul.mubr.f32.vlgmr.msra.gmra.mrb[26].mxu0 %v20417_v1 }
 0x3f1   : > { %6295 = vmatmul.mubr.f32.vlgmr.msra.gmra.mrb[26].mxu1 %v20417_v1  ;;  %5492 = vmatprep.mubr.f32.mxu0 %v20306_v56 }
 0x3f2   : > { %6300 = vmatprep.mubr.f32.mxu1 %v20306_v56  ;;  %5545 = vmatpush1.msra.mxu0 %v17334_v59  ;;  %v391_v59 = vshrl.u32 %v390_v18, 7 }
 0x3f3   : > { %6353 = vmatpush1.msra.mxu1 %v17339_v53  ;;  %v388_v53 = vpop.permute.xlu0 %387 }
 0x3f4   : > { %5494 = vmatmul.mubr.f32.gmra.mrb[28].mxu0 %v20418_v11  ;;  %v392_v7 = vsub.s32 0, %v391_v59 }
 0x3f5   : > { %6302 = vmatmul.mubr.f32.gmra.mrb[28].mxu1 %v20418_v11  ;;  %5499 = vmatprep.mubr.f32.mxu0 %v20306_v56 }
 0x3f6   : > { %6307 = vmatprep.mubr.f32.mxu1 %v20306_v56  ;;  %v17595_v41 = vrot.slane %v388_v53, %v392_v7  ;;  %v4814_v7 = vunpack.c.l.s4 %v15715_v10 }
 0x3f8   : > { %5501 = vmatmul.mubr.f32.gmra.mrb[30].mxu0 %v20419_v32  ;;  %20441 = vst [vmem:[#allocation68_spill] sm:$0xff] %v17595_v41  ;;  %v4815_v43 = vunpack.c.0.s8 %v4814_v7 }
 0x3f9   : > { %6309 = vmatmul.mubr.f32.gmra.mrb[30].mxu1 %v20419_v32  ;;  %5506 = vmatprep.mubr.f32.mxu0 %v20306_v56 }
 0x3fa   : > { %6314 = vmatprep.mubr.f32.mxu1 %v20306_v56 }
 0x3fc   : > { %5508 = vmatmul.mubr.f32.gmra.mrb[32].mxu0 %v20420_v48 }
 0x3fd   : > { %6316 = vmatmul.mubr.f32.gmra.mrb[32].mxu1 %v20420_v48  ;;  %5513 = vmatprep.mubr.f32.mxu0 %v20306_v56 }
 0x3fe   : > { %6321 = vmatprep.mubr.f32.mxu1 %v20306_v56 }
 0x400   : > { %5515 = vmatmul.mubr.f32.gmra.mrb[34].mxu0 %v20421_v27 }
 0x401   : > { %6323 = vmatmul.mubr.f32.gmra.mrb[34].mxu1 %v20421_v27  ;;  %5520 = vmatprep.mubr.f32.mxu0 %v20306_v56 }
 0x402   : > { %6328 = vmatprep.mubr.f32.mxu1 %v20306_v56 }
 0x404   : > { %5522 = vmatmul.mubr.f32.gmra.mrb[36].mxu0 %v20422_v52 }
 0x405   : > { %6330 = vmatmul.mubr.f32.gmra.mrb[36].mxu1 %v20422_v52  ;;  %5527 = vmatprep.mubr.f32.mxu0 %v20306_v56 }
 0x406   : > { %6335 = vmatprep.mubr.f32.mxu1 %v20306_v56 }
 0x408   : > { %5529 = vmatmul.mubr.f32.gmra.mrb[38].mxu0 %v20423_v6 }
 0x409   : > { %6337 = vmatmul.mubr.f32.gmra.mrb[38].mxu1 %v20423_v6  ;;  %5534 = vmatprep.mubr.f32.mxu0 %v20306_v56 }
 0x40a   : > { %6342 = vmatprep.mubr.f32.mxu1 %v20306_v56 }
 0x40c   : > { %5536 = vmatmul.mubr.f32.gmra.mrb[40].mxu0 %v20424_v25 }
 0x40d   : > { %6344 = vmatmul.mubr.f32.gmra.mrb[40].mxu1 %v20424_v25  ;;  %5608 = vmatprep.mubr.f32.mxu0 %v20306_v56 }
 0x40e   : > { %6416 = vmatprep.mubr.f32.mxu1 %v20306_v56 }
 0x410   : > { %5610 = vmatmul.mubr.f32.vlgmr.msra.gmra.mrb[26].mxu0 %v20417_v1 }
 0x411   : > { %6418 = vmatmul.mubr.f32.vlgmr.msra.gmra.mrb[26].mxu1 %v20417_v1  ;;  %5615 = vmatprep.mubr.f32.mxu0 %v20306_v56 }
 0x412   : > { %6423 = vmatprep.mubr.f32.mxu1 %v20306_v56 }
 0x414   : > { %5617 = vmatmul.mubr.f32.gmra.mrb[28].mxu0 %v20418_v11 }
 0x415   : > { %6425 = vmatmul.mubr.f32.gmra.mrb[28].mxu1 %v20418_v11  ;;  %5622 = vmatprep.mubr.f32.mxu0 %v20306_v56 }
 0x416   : > { %6430 = vmatprep.mubr.f32.mxu1 %v20306_v56 }
 0x418   : > { %5624 = vmatmul.mubr.f32.gmra.mrb[30].mxu0 %v20419_v32 }
 0x419   : > { %6432 = vmatmul.mubr.f32.gmra.mrb[30].mxu1 %v20419_v32  ;;  %5629 = vmatprep.mubr.f32.mxu0 %v20306_v56 }
 0x41a   : > { %6437 = vmatprep.mubr.f32.mxu1 %v20306_v56 }
 0x41c   : > { %5631 = vmatmul.mubr.f32.gmra.mrb[32].mxu0 %v20420_v48 }
 0x41d   : > { %6439 = vmatmul.mubr.f32.gmra.mrb[32].mxu1 %v20420_v48  ;;  %5636 = vmatprep.mubr.f32.mxu0 %v20306_v56 }
 0x41e   : > { %6444 = vmatprep.mubr.f32.mxu1 %v20306_v56 }
 0x420   : > { %5638 = vmatmul.mubr.f32.gmra.mrb[34].mxu0 %v20421_v27 }
 0x421   : > { %6446 = vmatmul.mubr.f32.gmra.mrb[34].mxu1 %v20421_v27  ;;  %5643 = vmatprep.mubr.f32.mxu0 %v20306_v56 }
 0x422   : > { %6451 = vmatprep.mubr.f32.mxu1 %v20306_v56 }
 0x424   : > { %5645 = vmatmul.mubr.f32.gmra.mrb[36].mxu0 %v20422_v52 }
 0x425   : > { %6453 = vmatmul.mubr.f32.gmra.mrb[36].mxu1 %v20422_v52  ;;  %5650 = vmatprep.mubr.f32.mxu0 %v20306_v56 }
 0x426   : > { %6458 = vmatprep.mubr.f32.mxu1 %v20306_v56 }
 0x428   : > { %5652 = vmatmul.mubr.f32.gmra.mrb[38].mxu0 %v20423_v6 }
 0x429   : > { %6460 = vmatmul.mubr.f32.gmra.mrb[38].mxu1 %v20423_v6  ;;  %5657 = vmatprep.mubr.f32.mxu0 %v20306_v56 }
 0x42a   : > { %6465 = vmatprep.mubr.f32.mxu1 %v20306_v56 }
 0x42c   : > { %5659 = vmatmul.mubr.f32.gmra.mrb[40].mxu0 %v20424_v25 }
 0x42d   : > { %6467 = vmatmul.mubr.f32.gmra.mrb[40].mxu1 %v20424_v25  ;;  %6585 = vmatprep.mubr.f32.mxu0 %v20306_v56 }
 0x42e   : > { %7379 = vmatprep.mubr.f32.mxu1 %v20306_v56 }
 0x43f   : > { %v4243_v19 = vpop.f32.mrb[24].mxu0 }
 0x440   : > { %v14648_v54 = vadd.f32 %v4243_v19, %v17595_v41  ;;  %v4786_v36 = vpop.f32.mrb[24].mxu1  ;;  %v4245_v57 = vpop.f32.mrb[25].mxu0 }
 0x441   : > { %v14650_v45 = vadd.f32 %v4786_v36, %v17595_v41  ;;  %v14649_v51 = vadd.f32 %v4245_v57, %v17595_v41  ;;  %v4788_v12 = vpop.f32.mrb[25].mxu1 }
 0x442   : > { %v4791_v9 = vmul.f32 0.5, %v14648_v54  ;;  %v14651_v62 = vadd.f32 %v4788_v12, %v17595_v41 }
 0x443   : > { %v4793_v46 = vmul.f32 0.5, %v14650_v45  ;;  %v4792_v33 = vmul.f32 0.5, %v14649_v51  ;;  %v17601_v51 = vsub.s32 %v4815_v43, %v391_v59 }
 0x444   : > { %15590 = vtanh.f32 %v4791_v9  ;;  %v4794_v5 = vmul.f32 0.5, %v14651_v62 }
 0x445   : > { %15592 = vtanh.f32 %v4793_v46  ;;  %20442 = vst [vmem:[#allocation69_spill] sm:$0xff] %v17601_v51 }
 0x446   : > { %15594 = vtanh.f32 %v4792_v33 }
 0x447   : > { %15596 = vtanh.f32 %v4794_v5 }
 0x44e   : > { %v15591_v53 = vpop.eup %15590 }
 0x44f   : > { %v15593_v19 = vpop.eup %15592  ;;  %v4799_v36 = vadd.f32 1.0, %v15591_v53  ;;  %v20443_v53 = vmov 0 }
 0x450   : > { %v15595_v2 = vpop.eup %15594  ;;  %v4801_v57 = vadd.f32 1.0, %v15593_v19  ;;  %v20444_v53 = vsel %vm17606_vm4, 4294967295, %v20443_v53 }
 0x451   : > { %v15597_v63 = vpop.eup %15596  ;;  %v4803_v54 = vmul.f32 0.5, %v4799_v36  ;;  %v4800_v42 = vadd.f32 1.0, %v15595_v2  ;;  %20445 = vst [vmem:[#allocation57_spill] sm:$0xff] %v20444_v53 }
 0x452   : > { %v4805_v12 = vmul.f32 0.5, %v4801_v57  ;;  %v4802_v45 = vadd.f32 1.0, %v15597_v63  ;;  %v20446_v63 = vld [vmem:[#allocation48_spill] sm:$0xff] }
 0x453   : > { %v4804_v9 = vmul.f32 0.5, %v4800_v42 }
 0x454   : > { %v4806_v62 = vmul.f32 0.5, %v4802_v45 }
 0x455   : > { %v4811_v46 = vcombine.low %v4803_v54, %v4804_v9 }
 0x456   : > { %v4812_v33 = vcombine.low %v4805_v12, %v4806_v62 }
 0x457   : > { %v4819_v5 = vrot.slane %v4811_v46, %v17601_v51 }
 0x458   : > { %v4826_v10 = vrot.slane %v4812_v33, %v17601_v51 }
 0x45a   : > { %v4827_v7 = vcombine.low %v4819_v5, %v4826_v10  ;;  %v20447_v5 = vld [vmem:[#allocation53_spill] sm:$0xff] }
 0x45c   : > { %v4834_v2 = vrot.slane %v4827_v7, %v17601_v51 }
 0x45e   : > { %4840 = vst.msk [vmem:[%s17611_s9] sm:$0xf] %vm17606_vm4, %v4834_v2 }
 0x4e3   : > { %v5611_v42 = vpop.f32.mrb[26].mxu0 }
 0x4e4   : > { %v14652_v43 = vadd.f32 %v5611_v42, %v20446_v63  ;;  %v6419_v59 = vpop.f32.mrb[26].mxu1  ;;  %v5613_v19 = vpop.f32.mrb[27].mxu0 }
 0x4e5   : > { %v14668_v36 = vadd.f32 %v6419_v59, %v20446_v63  ;;  %v14653_v18 = vadd.f32 %v5613_v19, %v20446_v63  ;;  %v6421_v57 = vpop.f32.mrb[27].mxu1 }
 0x4e6   : > { %v6473_v54 = vmax.f32 %v14652_v43, 0.0  ;;  %v14669_v12 = vadd.f32 %v6421_v57, %v20446_v63 }
 0x4e7   : > { %v6475_v45 = vmax.f32 %v14668_v36, 0.0  ;;  %v6474_v9 = vmax.f32 %v14653_v18, 0.0  ;;  %v5618_v62 = vpop.f32.mrb[28].mxu0 }
 0x4e8   : > { %v6507_v46 = vand.u32 4294901760, %v6473_v54  ;;  %v6476_v33 = vmax.f32 %v14669_v12, 0.0  ;;  %v14654_v10 = vadd.f32 %v5618_v62, %v20447_v5  ;;  %v6426_v7 = vpop.f32.mrb[28].mxu1  ;;  %v5620_v2 = vpop.f32.mrb[29].mxu0 }
 0x4e9   : > { %v7301_v42 = vand.u32 4294901760, %v6475_v45  ;;  %v17621_v53 = vand.u32 4294901760, %v6474_v9  ;;  %v14670_v59 = vadd.f32 %v6426_v7, %v20447_v5  ;;  %v14655_v19 = vadd.f32 %v5620_v2, %v20447_v5  ;;  %v6428_v51 = vpop.f32.mrb[29].mxu1 }
 0x4ea   : > { %v17625_v43 = vsub.f32 %v6473_v54, %v6507_v46  ;;  %v17627_v57 = vand.u32 4294901760, %v6476_v33  ;;  %v6477_v36 = vmax.f32 %v14654_v10, 0.0  ;;  %v14671_v18 = vadd.f32 %v6428_v51, %v20447_v5 }
 0x4eb   : > { %v17630_v12 = vsub.f32 %v6475_v45, %v7301_v42  ;;  %v6479_v62 = vmax.f32 %v14670_v59, 0.0  ;;  %v6478_v63 = vmax.f32 %v14655_v19, 0.0  ;;  %v5625_v41 = vpop.f32.mrb[30].mxu0  ;;  %v17634_v61 = vsub.f32 %v6474_v9, %v17621_v53 }
 0x4ec   : > { %v20010_v47 = vand.u32 4294901760, %v17625_v43  ;;  %v6511_v7 = vand.u32 4294901760, %v6477_v36  ;;  %v6480_v2 = vmax.f32 %v14671_v18, 0.0  ;;  %v6433_v20 = vpop.f32.mrb[30].mxu1  ;;  %v5627_v54 = vpop.f32.mrb[31].mxu0  ;;  %v17638_v10 = vsub.f32 %v6476_v33, %v17627_v57 }
 0x4ed   : > { %v20014_v29 = vand.u32 4294901760, %v17630_v12  ;;  %v7305_v51 = vand.u32 4294901760, %v6479_v62  ;;  %v17640_v45 = vand.u32 4294901760, %v6478_v63  ;;  %v6435_v59 = vpop.f32.mrb[31].mxu1 }
 0x4ee   : > { %v17645_v19 = vsub.f32 %v17625_v43, %v20010_v47  ;;  %v17647_v9 = vpack.c.bf16 %v6511_v7, %v6507_v46  ;;  %v17649_v5 = vsub.f32 %v6477_v36, %v6511_v7  ;;  %v17664_v3 = vand.u32 4294901760, %v6480_v2  ;;  %v20450_v46 = vld [vmem:[#allocation55_spill] sm:$0xff] }
 0x4ef   : > { %v17654_v18 = vsub.f32 %v17630_v12, %v20014_v29  ;;  %v17656_v33 = vpack.c.bf16 %v7305_v51, %v7301_v42  ;;  %v17658_v34 = vsub.f32 %v6479_v62, %v7305_v51  ;;  %v17661_v58 = vsub.f32 %v6478_v63, %v17640_v45  ;;  %v5632_v0 = vpop.f32.mrb[32].mxu0 }
 0x4f0   : > { %20448 = vst [vmem:[#allocation59_spill] sm:$0xff] %v17647_v9  ;;  %v14656_v36 = vadd.f32 %v5625_v41, %v20450_v46  ;;  %v6440_v7 = vpop.f32.mrb[32].mxu1  ;;  %v5634_v13 = vpop.f32.mrb[33].mxu0  ;;  %v14672_v62 = vadd.f32 %v6433_v20, %v20450_v46  ;;  %v14657_v44 = vadd.f32 %v5627_v54, %v20450_v46  ;;  %v14673_v6 = vadd.f32 %v6435_v59, %v20450_v46 }
 0x4f1   : > { %20449 = vst [vmem:[#allocation78_spill] sm:$0xff] %v17656_v33  ;;  %v6442_v51 = vpop.f32.mrb[33].mxu1  ;;  %v14658_v52 = vadd.f32 %v5632_v0, %v20451_v30  ;;  %v20452_v42 = vand.u32 4294901760, %v17649_v5  ;;  %v17683_v63 = vsub.f32 %v6480_v2, %v17664_v3  ;;  %v20453_v41 = vand.u32 4294901760, %v17658_v34 }
 0x4f2   : > { %v6481_v47 = vmax.f32 %v14656_v36, 0.0  ;;  %v6483_v25 = vmax.f32 %v14672_v62, 0.0  ;;  %v6482_v36 = vmax.f32 %v14657_v44, 0.0  ;;  %v6484_v0 = vmax.f32 %v14673_v6, 0.0 }
 0x4f3   : > { %v5639_v29 = vpop.f32.mrb[34].mxu0  ;;  %v17680_v20 = vsub.f32 %v17649_v5, %v20452_v42  ;;  %v17688_v62 = vsub.f32 %v17658_v34, %v20453_v41  ;;  %v6485_v46 = vmax.f32 %v14658_v52, 0.0  ;;  %v14674_v2 = vadd.f32 %v6440_v7, %v20451_v30 }
 0x4f4   : > { %v6515_v49 = vand.u32 4294901760, %v6481_v47  ;;  %v6447_v27 = vpop.f32.mrb[34].mxu1  ;;  %v5641_v54 = vpop.f32.mrb[35].mxu0  ;;  %v7309_v59 = vand.u32 4294901760, %v6483_v25  ;;  %v17692_v42 = vand.u32 4294901760, %v6482_v36  ;;  %v14659_v11 = vadd.f32 %v5634_v13, %v20451_v30 }
 0x4f5   : > { %v6449_v48 = vpop.f32.mrb[35].mxu1  ;;  %v17698_v1 = vand.u32 4294901760, %v6484_v0  ;;  %v6519_v38 = vand.u32 4294901760, %v6485_v46  ;;  %v14675_v41 = vadd.f32 %v6442_v51, %v20451_v30  ;;  %v17758_v30 = vpack.c.bf16 %v17664_v3, %v17627_v57  ;;  %v20462_v57 = vld [vmem:[#allocation71_spill] sm:$0xff] }
 0x4f6   : > { %v17690_v32 = vsub.f32 %v6481_v47, %v6515_v49  ;;  %v17696_v44 = vsub.f32 %v6483_v25, %v7309_v59  ;;  %v17703_v52 = vsub.f32 %v6482_v36, %v17692_v42  ;;  %v6487_v47 = vmax.f32 %v14674_v2, 0.0 }
 0x4f7   : > { %v5646_v31 = vpop.f32.mrb[36].mxu0  ;;  %v6486_v60 = vmax.f32 %v14659_v11, 0.0  ;;  %v17707_v25 = vsub.f32 %v6484_v0, %v17698_v1  ;;  %v17709_v13 = vpack.c.bf16 %v6519_v38, %v6515_v49  ;;  %v17711_v4 = vsub.f32 %v6485_v46, %v6519_v38  ;;  %20460 = vst [vmem:[#allocation74_spill] sm:$0xff] %v17758_v30  ;;  %14121 = vmatprep.subr.bf16.mxu1 %v17758_v30 }
 0x4f8   : > { %v20035_v6 = vand.u32 4294901760, %v17690_v32  ;;  %v6454_v26 = vpop.f32.mrb[36].mxu1  ;;  %v5648_v35 = vpop.f32.mrb[37].mxu0  ;;  %v7313_v11 = vand.u32 4294901760, %v6487_v47  ;;  %v20455_v0 = vand.u32 4294901760, %v17696_v44  ;;  %v6488_v46 = vmax.f32 %v14675_v41, 0.0  ;;  %14123 = vmatpush1.bf16.msra.mxu1 %v17656_v33 }
 0x4f9   : > { %20454 = vst [vmem:[#allocation80_spill] sm:$0xff] %v17709_v13  ;;  %v6456_v51 = vpop.f32.mrb[37].mxu1  ;;  %v17719_v2 = vand.u32 4294901760, %v6486_v60  ;;  %v20458_v41 = vand.u32 4294901760, %v17711_v4  ;;  %v14662_v39 = vadd.f32 %v5646_v31, %v20462_v57  ;;  %v14663_v16 = vadd.f32 %v5648_v35, %v20462_v57 }
 0x4fa   : > { %v17717_v36 = vsub.f32 %v17690_v32, %v20035_v6  ;;  %v17725_v49 = vsub.f32 %v17696_v44, %v20455_v0  ;;  %v17731_v55 = vpack.c.bf16 %v7313_v11, %v7309_v59  ;;  %v17733_v6 = vsub.f32 %v6487_v47, %v7313_v11  ;;  %v20461_v0 = vld [vmem:[#allocation70_spill] sm:$0xff] }
 0x4fb   : > { %v17728_v15 = vpop.f32.mrb[38].mxu0  ;;  %v17736_v17 = vsub.f32 %v6486_v60, %v17719_v2  ;;  %v17747_v14 = vsub.f32 %v17711_v4, %v20458_v41  ;;  %v17751_v59 = vpack.c.bf16 %v17640_v45, %v17621_v53  ;;  %v7311_v11 = vand.u32 4294901760, %v6488_v46 }
 0x4fc   : > { %20456 = vst [vmem:[#allocation64_spill] sm:$0xff] %v17731_v55  ;;  %20457 = vst [vmem:[#allocation66_spill] sm:$0xff] %v17733_v6  ;;  %v17738_v7 = vpop.f32.mrb[38].mxu1  ;;  %v17740_v23 = vpop.f32.mrb[39].mxu0  ;;  %v14660_v38 = vadd.f32 %v5639_v29, %v20461_v0  ;;  %v14676_v53 = vadd.f32 %v6447_v27, %v20461_v0  ;;  %v14661_v45 = vadd.f32 %v5641_v54, %v20461_v0  ;;  %v20463_v27 = vand.u32 4294901760, %v17733_v6 }
 0x4fd   : > { %20459 = vst [vmem:[#allocation83_spill] sm:$0xff] %v17751_v59  ;;  %v17753_v47 = vpop.f32.mrb[39].mxu1  ;;  %14025 = vmatprep.subr.bf16.mxu0 %v17751_v59  ;;  %v14677_v29 = vadd.f32 %v6449_v48, %v20461_v0  ;;  %v14678_v60 = vadd.f32 %v6454_v26, %v20462_v57  ;;  %v6493_v0 = vmax.f32 %v14662_v39, 0.0  ;;  %v6494_v39 = vmax.f32 %v14663_v16, 0.0 }
 0x4fe   : > { %14027 = vmatpush1.bf16.msra.mxu0 %v17647_v9  ;;  %v6489_v3 = vmax.f32 %v14660_v38, 0.0  ;;  %v6491_v54 = vmax.f32 %v14676_v53, 0.0  ;;  %v6490_v40 = vmax.f32 %v14661_v45, 0.0  ;;  %v17782_v9 = vsub.f32 %v6488_v46, %v7311_v11 }
 0x4ff   : > { %v17766_v50 = vpop.f32.mrb[40].mxu0  ;;  %v6492_v48 = vmax.f32 %v14677_v29, 0.0  ;;  %v6495_v59 = vmax.f32 %v14678_v60, 0.0  ;;  %v17790_v53 = vsub.f32 %v17733_v6, %v20463_v27  ;;  %v6527_v46 = vand.u32 4294901760, %v6493_v0 }
 0x500   : > { %v17773_v41 = vpop.f32.mrb[40].mxu1  ;;  %v17775_v8 = vpop.f32.mrb[41].mxu0  ;;  %v6523_v38 = vand.u32 4294901760, %v6489_v3  ;;  %v7317_v31 = vand.u32 4294901760, %v6491_v54  ;;  %v17784_v30 = vand.u32 4294901760, %v6490_v40  ;;  %v14679_v24 = vadd.f32 %v6456_v51, %v20462_v57  ;;  %v20474_v57 = vld [vmem:[#allocation81_spill] sm:$0xff] }
 0x501   : > { %v17780_v37 = vpop.f32.mrb[41].mxu1  ;;  %v17794_v26 = vand.u32 4294901760, %v6492_v48  ;;  %v7321_v29 = vand.u32 4294901760, %v6495_v59  ;;  %v17805_v27 = vsub.f32 %v6493_v0, %v6527_v46  ;;  %v17822_v0 = vand.u32 4294901760, %v6494_v39 }
 0x502   : > { %v17792_v45 = vsub.f32 %v6489_v3, %v6523_v38  ;;  %v17796_v33 = vsub.f32 %v6491_v54, %v7317_v31  ;;  %v17801_v35 = vsub.f32 %v6490_v40, %v17784_v30  ;;  %v17803_v28 = vpack.c.bf16 %v6527_v46, %v6523_v38 }
 0x503   : > { %20467 = vst [vmem:[#allocation82_spill] sm:$0xff] %v17805_v27  ;;  %v17809_v21 = vsub.f32 %v6492_v48, %v17794_v26  ;;  %v17811_v54 = vpack.c.bf16 %v7321_v29, %v7317_v31  ;;  %v17813_v22 = vsub.f32 %v6495_v59, %v7321_v29  ;;  %v20066_v51 = vand.u32 4294901760, %v17805_v27 }
 0x504   : > { %20464 = vst [vmem:[#allocation76_spill] sm:$0xff] %v17792_v45  ;;  %20465 = vst [vmem:[#allocation84_spill] sm:$0xff] %v17796_v33  ;;  %v20064_v60 = vand.u32 4294901760, %v17792_v45  ;;  %v20065_v3 = vand.u32 4294901760, %v17796_v33  ;;  %v6496_v59 = vmax.f32 %v14679_v24, 0.0  ;;  %v17832_v31 = vpack.c.bf16 %v17719_v2, %v17692_v42  ;;  %v20472_v42 = vld [vmem:[#allocation79_spill] sm:$0xff] }
 0x505   : > { %20466 = vst [vmem:[#allocation85_spill] sm:$0xff] %v17803_v28  ;;  %20468 = vst [vmem:[#allocation87_spill] sm:$0xff] %v17811_v54  ;;  %v17842_v16 = vpack.c.bf16 %v7311_v11, %v17698_v1  ;;  %v17847_v48 = vsub.f32 %v6494_v39, %v17822_v0  ;;  %v14664_v2 = vadd.f32 %v17728_v15, %v20472_v42 }
 0x506   : > { %20469 = vst [vmem:[#allocation88_spill] sm:$0xff] %v17813_v22  ;;  %v17819_v40 = vsub.f32 %v17792_v45, %v20064_v60  ;;  %v17827_v38 = vsub.f32 %v17796_v33, %v20065_v3  ;;  %20470 = vst [vmem:[#allocation89_spill] sm:$0xff] %v17832_v31  ;;  %v17839_v60 = vsub.f32 %v17805_v27, %v20066_v51  ;;  %14029 = vmatprep.subr.bf16.mxu0 %v17832_v31 }
 0x507   : > { %20471 = vst [vmem:[#allocation90_spill] sm:$0xff] %v17842_v16  ;;  %v20473_v51 = vand.u32 4294901760, %v17813_v22  ;;  %14125 = vmatprep.subr.bf16.mxu1 %v17842_v16  ;;  %14031 = vmatpush1.bf16.msra.mxu0 %v17709_v13  ;;  %v14680_v1 = vadd.f32 %v17738_v7, %v20472_v42  ;;  %v14665_v11 = vadd.f32 %v17740_v23, %v20472_v42  ;;  %v7319_v15 = vand.u32 4294901760, %v6496_v59 }
 0x508   : > { %14127 = vmatpush1.bf16.msra.mxu1 %v17731_v55  ;;  %v6497_v29 = vmax.f32 %v14664_v2, 0.0  ;;  %v14666_v13 = vadd.f32 %v17766_v50, %v20474_v57  ;;  %v14682_v7 = vadd.f32 %v17773_v41, %v20474_v57  ;;  %v14667_v39 = vadd.f32 %v17775_v8, %v20474_v57 }
 0x509   : > { %v17856_v46 = vsub.f32 %v17813_v22, %v20473_v51  ;;  %v14681_v51 = vadd.f32 %v17753_v47, %v20472_v42  ;;  %v6499_v3 = vmax.f32 %v14680_v1, 0.0  ;;  %v6498_v24 = vmax.f32 %v14665_v11, 0.0 }
 0x50a   : > { %v6531_v23 = vand.u32 4294901760, %v6497_v29  ;;  %v6501_v22 = vmax.f32 %v14666_v13, 0.0  ;;  %v6503_v33 = vmax.f32 %v14682_v7, 0.0  ;;  %v6502_v11 = vmax.f32 %v14667_v39, 0.0 }
 0x50b   : > { %v6500_v31 = vmax.f32 %v14681_v51, 0.0  ;;  %v7325_v55 = vand.u32 4294901760, %v6499_v3  ;;  %v6529_v2 = vand.u32 4294901760, %v6498_v24  ;;  %v14683_v50 = vadd.f32 %v17780_v37, %v20474_v57 }
 0x50c   : > { %v17875_v47 = vsub.f32 %v6497_v29, %v6531_v23  ;;  %v17879_v42 = vsub.f32 %v6496_v59, %v7319_v15  ;;  %v6535_v16 = vand.u32 4294901760, %v6501_v22  ;;  %v7329_v51 = vand.u32 4294901760, %v6503_v33 }
 0x50d   : > { %v7323_v1 = vand.u32 4294901760, %v6500_v31  ;;  %v17881_v41 = vsub.f32 %v6499_v3, %v7325_v55  ;;  %v17884_v8 = vsub.f32 %v6498_v24, %v6529_v2  ;;  %v6533_v45 = vand.u32 4294901760, %v6502_v11 }
 0x50e   : > { %v20087_v27 = vand.u32 4294901760, %v17875_v47  ;;  %v6504_v13 = vmax.f32 %v14683_v50, 0.0  ;;  %v17889_v39 = vpack.c.bf16 %v6535_v16, %v6531_v23  ;;  %v17891_v6 = vsub.f32 %v6501_v22, %v6535_v16 }
 0x50f   : > { %v17887_v7 = vsub.f32 %v6500_v31, %v7323_v1  ;;  %v17899_v59 = vpack.c.bf16 %v7329_v51, %v7325_v55  ;;  %v17901_v24 = vsub.f32 %v6503_v33, %v7329_v51  ;;  %v17905_v29 = vsub.f32 %v6502_v11, %v6533_v45 }
 0x510   : > { %20475 = vst [vmem:[#allocation91_spill] sm:$0xff] %v17889_v39  ;;  %v17897_v3 = vsub.f32 %v17875_v47, %v20087_v27  ;;  %v20088_v31 = vand.u32 4294901760, %v17891_v6  ;;  %v7327_v23 = vand.u32 4294901760, %v6504_v13  ;;  %v17911_v37 = vpack.c.bf16 %v17822_v0, %v17784_v30 }
 0x511   : > { %v20089_v16 = vand.u32 4294901760, %v17901_v24  ;;  %v17914_v55 = vpack.c.bf16 %v7319_v15, %v17794_v26  ;;  %v20477_v33 = vand.u32 4294901760, %v17881_v41  ;;  %v17933_v26 = vpack.c.bf16 %v6533_v45, %v6529_v2 }
 0x512   : > { %v17925_v27 = vsub.f32 %v17891_v6, %v20088_v31  ;;  %v17927_v22 = vsub.f32 %v6504_v13, %v7327_v23  ;;  %14033 = vmatprep.subr.bf16.mxu0 %v17911_v37  ;;  %v17935_v15 = vpack.c.bf16 %v7327_v23, %v7323_v1  ;;  %v20480_v13 = vand.u32 4294901760, %v17634_v61 }
 0x513   : > { %20476 = vst [vmem:[#allocation92_spill] sm:$0xff] %v17914_v55  ;;  %v17919_v51 = vsub.f32 %v17881_v41, %v20477_v33  ;;  %14129 = vmatprep.subr.bf16.mxu1 %v17914_v55  ;;  %20478 = vst [vmem:[#allocation93_spill] sm:$0xff] %v17933_v26  ;;  %v17941_v31 = vsub.f32 %v17901_v24, %v20089_v16  ;;  %14035 = vmatpush1.bf16.msra.mxu0 %v17803_v28  ;;  %v20481_v45 = vand.u32 4294901760, %v17661_v58 }
 0x514   : > { %20479 = vst [vmem:[#allocation94_spill] sm:$0xff] %v17935_v15  ;;  %14131 = vmatpush1.bf16.msra.mxu1 %v17811_v54  ;;  %v6633_v30 = vsub.f32 %v17634_v61, %v20480_v13  ;;  %14037 = vmatprep.subr.bf16.mxu0 %v17933_v26  ;;  %v20482_v23 = vand.u32 4294901760, %v17638_v10  ;;  %v20483_v33 = vand.u32 4294901760, %v17683_v63  ;;  %v20484_v13 = vand.u32 4294901760, %v17645_v19 }
 0x515   : > { %v6645_v2 = vsub.f32 %v17661_v58, %v20481_v45  ;;  %14133 = vmatprep.subr.bf16.mxu1 %v17935_v15  ;;  %v20485_v0 = vand.u32 4294901760, %v17680_v20  ;;  %v20486_v1 = vand.u32 4294901760, %v17654_v18  ;;  %v20487_v26 = vand.u32 4294901760, %v17688_v62 }
 0x516   : > { %v7427_v16 = vsub.f32 %v17638_v10, %v20482_v23  ;;  %v7439_v11 = vsub.f32 %v17683_v63, %v20483_v33  ;;  %v6634_v45 = vand.u32 4294901760, %v6633_v30  ;;  %v20488_v54 = vand.u32 4294901760, %v17703_v52 }
 0x517   : > { %v14042_v50 = vpack.c.bf16 %v20485_v0, %v20484_v13  ;;  %v6646_v57 = vand.u32 4294901760, %v6645_v2  ;;  %v14138_v15 = vpack.c.bf16 %v20487_v26, %v20486_v1  ;;  %v20489_v33 = vand.u32 4294901760, %v17736_v17  ;;  %14039 = vmatpush1.bf16.msra.mxu0 %v17889_v39 }
 0x518   : > { %v6657_v23 = vsub.f32 %v17703_v52, %v20488_v54  ;;  %v7428_v28 = vand.u32 4294901760, %v7427_v16  ;;  %v7440_v55 = vand.u32 4294901760, %v7439_v11  ;;  %v20490_v20 = vand.u32 4294901760, %v17707_v25  ;;  %14135 = vmatpush1.bf16.msra.mxu1 %v17899_v59 }
 0x519   : > { %v6669_v19 = vsub.f32 %v17736_v17, %v20489_v33  ;;  %v14040_v18 = vpack.c.bf16 %v6646_v57, %v6634_v45  ;;  %v20491_v0 = vand.u32 4294901760, %v17782_v9  ;;  %v20492_v16 = vand.u32 4294901760, %v17717_v36 }
 0x51a   : > { %v7451_v30 = vsub.f32 %v17707_v25, %v20490_v20  ;;  %v6658_v62 = vand.u32 4294901760, %v6657_v23  ;;  %v20493_v11 = vand.u32 4294901760, %v17747_v14  ;;  %v14136_v2 = vpack.c.bf16 %v7440_v55, %v7428_v28 }
 0x51b   : > { %v7463_v54 = vsub.f32 %v17782_v9, %v20491_v0  ;;  %v6670_v1 = vand.u32 4294901760, %v6669_v19  ;;  %v20494_v33 = vand.u32 4294901760, %v17725_v49  ;;  %v20495_v20 = vand.u32 4294901760, %v17790_v53  ;;  %14041 = vmatprep.subr.bf16.mxu0 %v14040_v18  ;;  %v20499_v49 = vld [vmem:[#allocation56_spill] sm:$0xff] }
 0x51c   : > { %v14046_v26 = vpack.c.bf16 %v20493_v11, %v20492_v16  ;;  %v7452_v13 = vand.u32 4294901760, %v7451_v30  ;;  %v20496_v45 = vand.u32 4294901760, %v17801_v35  ;;  %v20497_v0 = vand.u32 4294901760, %v17847_v48  ;;  %14137 = vmatprep.subr.bf16.mxu1 %v14136_v2  ;;  %6591 = vmatmul.mubr.f32.vlgmr.msra.gmra.mrb[42].mxu0 %v20499_v49 }
 0x51d   : > { %v14142_v39 = vpack.c.bf16 %v20495_v20, %v20494_v33  ;;  %v7464_v57 = vand.u32 4294901760, %v7463_v54  ;;  %v20498_v14 = vand.u32 4294901760, %v17809_v21  ;;  %v7518_v55 = vand.u32 4294901760, %v17941_v31  ;;  %7385 = vmatmul.mubr.f32.vlgmr.msra.gmra.mrb[42].mxu1 %v20499_v49  ;;  %14043 = vmatpush1.bf16.msra.mxu0 %v14042_v50 }
 0x51e   : > { %v6681_v23 = vsub.f32 %v17801_v35, %v20496_v45  ;;  %v6693_v36 = vsub.f32 %v17847_v48, %v20497_v0  ;;  %v14044_v53 = vpack.c.bf16 %v6670_v1, %v6658_v62  ;;  %v20500_v19 = vand.u32 4294901760, %v17879_v42  ;;  %14139 = vmatpush1.bf16.msra.mxu1 %v14138_v15  ;;  %6596 = vmatprep.mubr.f32.mxu0 %v20306_v56 }
 0x51f   : > { %v7475_v28 = vsub.f32 %v17809_v21, %v20498_v14  ;;  %v20501_v18 = vand.u32 4294901760, %v17819_v40  ;;  %v20502_v54 = vand.u32 4294901760, %v17839_v60  ;;  %v14140_v11 = vpack.c.bf16 %v7464_v57, %v7452_v13  ;;  %7390 = vmatprep.mubr.f32.mxu1 %v20306_v56 }
 0x520   : > { %v7487_v30 = vsub.f32 %v17879_v42, %v20500_v19  ;;  %v6682_v33 = vand.u32 4294901760, %v6681_v23  ;;  %v6694_v20 = vand.u32 4294901760, %v6693_v36  ;;  %14045 = vmatprep.subr.bf16.mxu0 %v14044_v53  ;;  %v20503_v62 = vand.u32 4294901760, %v17827_v38  ;;  %v20509_v36 = vld [vmem:[#allocation58_spill] sm:$0xff] }
 0x521   : > { %v14050_v16 = vpack.c.bf16 %v20502_v54, %v20501_v18  ;;  %v7476_v31 = vand.u32 4294901760, %v7475_v28  ;;  %v20504_v1 = vand.u32 4294901760, %v17856_v46  ;;  %v20505_v40 = vand.u32 4294901760, %v17884_v8  ;;  %14141 = vmatprep.subr.bf16.mxu1 %v14140_v11  ;;  %6602 = vmatmul.mubr.f32.gmra.mrb[44].mxu0 %v20509_v36 }
 0x522   : > { %v7488_v2 = vand.u32 4294901760, %v7487_v30  ;;  %v20506_v0 = vand.u32 4294901760, %v17905_v29  ;;  %v7506_v13 = vand.u32 4294901760, %v17919_v51  ;;  %v14048_v15 = vpack.c.bf16 %v6694_v20, %v6682_v33  ;;  %7396 = vmatmul.mubr.f32.gmra.mrb[44].mxu1 %v20509_v36  ;;  %14047 = vmatpush1.bf16.msra.mxu0 %v14046_v26 }
 0x523   : > { %v14146_v45 = vpack.c.bf16 %v20504_v1, %v20503_v62  ;;  %v6705_v60 = vsub.f32 %v17884_v8, %v20505_v40  ;;  %v20507_v57 = vand.u32 4294901760, %v17887_v7  ;;  %v20508_v46 = vand.u32 4294901760, %v17927_v22  ;;  %14143 = vmatpush1.bf16.msra.mxu1 %v14142_v39  ;;  %6607 = vmatprep.mubr.f32.mxu0 %v20306_v56  ;;  %v20512_v39 = vld [vmem:[#allocation60_spill] sm:$0xff]  ;;  %v20513_v1 = vld [vmem:[#allocation66_spill] sm:$0xff] }
 0x524   : > { %v6717_v50 = vsub.f32 %v17905_v29, %v20506_v0  ;;  %v14144_v14 = vpack.c.bf16 %v7488_v2, %v7476_v31  ;;  %v20510_v51 = vand.u32 4294901760, %v17897_v3  ;;  %v20511_v19 = vand.u32 4294901760, %v17925_v27  ;;  %14049 = vmatprep.subr.bf16.mxu0 %v14048_v15  ;;  %7401 = vmatprep.mubr.f32.mxu1 %v20306_v56 }
 0x525   : > { %v7499_v38 = vsub.f32 %v17887_v7, %v20507_v57  ;;  %v7511_v23 = vsub.f32 %v17927_v22, %v20508_v46  ;;  %v6706_v28 = vand.u32 4294901760, %v6705_v60  ;;  %v14150_v11 = vpack.c.bf16 %v7518_v55, %v7506_v13  ;;  %6613 = vmatmul.mubr.f32.gmra.mrb[46].mxu0 %v20512_v39  ;;  %v20515_v13 = vld [vmem:[#allocation82_spill] sm:$0xff]  ;;  %v20516_v57 = vld [vmem:[#allocation84_spill] sm:$0xff] }
 0x526   : > { %v6718_v53 = vand.u32 4294901760, %v6717_v50  ;;  %v14054_v30 = vpack.c.bf16 %v20511_v19, %v20510_v51  ;;  %v14056_v33 = vpack.c.bf16 %v17661_v58, %v17634_v61  ;;  %v14152_v31 = vpack.c.bf16 %v17683_v63, %v17638_v10  ;;  %14145 = vmatprep.subr.bf16.mxu1 %v14144_v14  ;;  %7407 = vmatmul.mubr.f32.gmra.mrb[46].mxu1 %v20512_v39  ;;  %v20514_v50 = vld [vmem:[#allocation76_spill] sm:$0xff]  ;;  %v20520_v19 = vld [vmem:[#allocation86_spill] sm:$0xff] }
 0x527   : > { %v7500_v18 = vand.u32 4294901760, %v7499_v38  ;;  %v7512_v54 = vand.u32 4294901760, %v7511_v23  ;;  %v14058_v3 = vpack.c.bf16 %v17649_v5, %v17625_v43  ;;  %v14154_v26 = vpack.c.bf16 %v17658_v34, %v17630_v12  ;;  %14051 = vmatpush1.bf16.msra.mxu0 %v14050_v16  ;;  %14147 = vmatpush1.bf16.msra.mxu1 %v14146_v45  ;;  %v20517_v38 = vld [vmem:[#allocation88_spill] sm:$0xff] }
 0x528   : > { %v14052_v20 = vpack.c.bf16 %v6718_v53, %v6706_v28  ;;  %v14060_v55 = vpack.c.bf16 %v17736_v17, %v17703_v52  ;;  %v14156_v2 = vpack.c.bf16 %v17782_v9, %v17707_v25  ;;  %v14062_v62 = vpack.c.bf16 %v17711_v4, %v17690_v32  ;;  %6618 = vmatprep.mubr.f32.mxu0 %v20306_v56 }
 0x529   : > { %v14148_v27 = vpack.c.bf16 %v7512_v54, %v7500_v18  ;;  %v14158_v40 = vpack.c.bf16 %v20513_v1, %v17696_v44  ;;  %v14064_v60 = vpack.c.bf16 %v17847_v48, %v17801_v35  ;;  %v14160_v0 = vpack.c.bf16 %v17879_v42, %v17809_v21  ;;  %7412 = vmatprep.mubr.f32.mxu1 %v20306_v56 }
 0x52a   : > { %v14066_v15 = vpack.c.bf16 %v20515_v13, %v20514_v50  ;;  %14053 = vmatprep.subr.bf16.mxu0 %v14052_v20  ;;  %v14162_v46 = vpack.c.bf16 %v20517_v38, %v20516_v57  ;;  %v14068_v23 = vpack.c.bf16 %v17905_v29, %v17884_v8  ;;  %v14164_v16 = vpack.c.bf16 %v17927_v22, %v17887_v7 }
 0x52b   : > { %14149 = vmatprep.subr.bf16.mxu1 %v14148_v27  ;;  %v14070_v14 = vpack.c.bf16 %v17891_v6, %v17875_v47  ;;  %v14166_v28 = vpack.c.bf16 %v17901_v24, %v17881_v41  ;;  %v20518_v45 = vand.u32 4294901760, %v17634_v61  ;;  %v20519_v53 = vand.u32 4294901760, %v17661_v58  ;;  %6624 = vmatmul.mubr.f32.gmra.mrb[48].mxu0 %v20520_v19 }
 0x52c   : > { %v20521_v18 = vand.u32 4294901760, %v17638_v10  ;;  %v20522_v54 = vand.u32 4294901760, %v17683_v63  ;;  %v20523_v27 = vand.u32 4294901760, %v17625_v43  ;;  %v20524_v39 = vand.u32 4294901760, %v17649_v5  ;;  %7418 = vmatmul.mubr.f32.gmra.mrb[48].mxu1 %v20520_v19  ;;  %14055 = vmatpush1.bf16.msra.mxu0 %v14054_v30 }
 0x52d   : > { %v18075_v51 = vpack.c.bf16 %v20519_v53, %v20518_v45  ;;  %v20525_v58 = vand.u32 4294901760, %v17630_v12  ;;  %v20526_v61 = vand.u32 4294901760, %v17658_v34  ;;  %v20527_v10 = vand.u32 4294901760, %v17703_v52  ;;  %14151 = vmatpush1.bf16.msra.mxu1 %v14150_v11  ;;  %14057 = vmatprep.subr.bf16.mxu0 %v14056_v33 }
 0x52e   : > { %v18083_v20 = vpack.c.bf16 %v20522_v54, %v20521_v18  ;;  %v18089_v36 = vpack.c.bf16 %v20524_v39, %v20523_v27  ;;  %v20528_v63 = vand.u32 4294901760, %v17736_v17  ;;  %v20529_v43 = vand.u32 4294901760, %v17707_v25  ;;  %14153 = vmatprep.subr.bf16.mxu1 %v14152_v31  ;;  %6774 = vmatprep.mubr.f32.mxu0 %v20306_v56  ;;  %v20545_v31 = vld [vmem:[#allocation41_spill] sm:$0xff] }
 0x52f   : > { %v18095_v45 = vpack.c.bf16 %v20526_v61, %v20525_v58  ;;  %v20530_v5 = vand.u32 4294901760, %v17782_v9  ;;  %v20531_v12 = vand.u32 4294901760, %v17690_v32  ;;  %v20532_v34 = vand.u32 4294901760, %v17711_v4  ;;  %7568 = vmatprep.mubr.f32.mxu1 %v20306_v56  ;;  %6776 = vmatmul.mubr.f32.vlgmr.msra.gmra.mrb[42].mxu0 %v20545_v31 }
 0x530   : > { %v18102_v53 = vpack.c.bf16 %v20528_v63, %v20527_v10  ;;  %v20533_v52 = vand.u32 4294901760, %v17696_v44  ;;  %v20534_v17 = vand.u32 4294901760, %v20513_v1  ;;  %v20535_v25 = vand.u32 4294901760, %v17801_v35  ;;  %7570 = vmatmul.mubr.f32.vlgmr.msra.gmra.mrb[42].mxu1 %v20545_v31  ;;  %14059 = vmatpush1.bf16.msra.mxu0 %v14058_v3  ;;  %v20558_v3 = vld [vmem:[#allocation59_spill] sm:$0xff] }
 0x531   : > { %v18108_v39 = vpack.c.bf16 %v20530_v5, %v20529_v43  ;;  %v18114_v18 = vpack.c.bf16 %v20532_v34, %v20531_v12  ;;  %v20536_v9 = vand.u32 4294901760, %v17847_v48  ;;  %v20537_v32 = vand.u32 4294901760, %v17809_v21  ;;  %14155 = vmatpush1.bf16.msra.mxu1 %v14154_v26  ;;  %14061 = vmatprep.subr.bf16.mxu0 %v14060_v55  ;;  %v20559_v26 = vld [vmem:[#allocation78_spill] sm:$0xff]  ;;  %v20560_v55 = vld [vmem:[#allocation89_spill] sm:$0xff]  ;;  %v20572_v43 = vld [vmem:[#allocation91_spill] sm:$0xff] }
 0x532   : > { %v18120_v30 = vpack.c.bf16 %v20534_v17, %v20533_v52  ;;  %v20538_v4 = vand.u32 4294901760, %v17879_v42  ;;  %v20539_v44 = vand.u32 4294901760, %v20514_v50  ;;  %v20540_v11 = vand.u32 4294901760, %v20515_v13  ;;  %14157 = vmatprep.subr.bf16.mxu1 %v14156_v2  ;;  %6781 = vmatprep.mubr.f32.mxu0 %v20306_v56  ;;  %v20561_v2 = vld [vmem:[#allocation90_spill] sm:$0xff]  ;;  %v20573_v5 = vld [vmem:[#allocation49_spill] sm:$0xff] }
 0x533   : > { %v18126_v54 = vpack.c.bf16 %v20536_v9, %v20535_v25  ;;  %v20541_v35 = vand.u32 4294901760, %v20516_v57  ;;  %v20542_v48 = vand.u32 4294901760, %v20517_v38  ;;  %v20543_v21 = vand.u32 4294901760, %v17884_v8  ;;  %7575 = vmatprep.mubr.f32.mxu1 %v20306_v56 }
 0x534   : > { %v18132_v27 = vpack.c.bf16 %v20538_v4, %v20537_v32  ;;  %v18139_v33 = vpack.c.bf16 %v20540_v11, %v20539_v44  ;;  %v20544_v42 = vand.u32 4294901760, %v17905_v29  ;;  %v20546_v50 = vand.u32 4294901760, %v17887_v7  ;;  %14063 = vmatpush1.bf16.msra.mxu0 %v14062_v62  ;;  %v20555_v7 = vld [vmem:[#allocation83_spill] sm:$0xff]  ;;  %v20562_v62 = vld [vmem:[#allocation45_spill] sm:$0xff]  ;;  %v20578_v4 = vld [vmem:[#allocation72_spill] sm:$0xff] }
 0x535   : > { %v18145_v1 = vpack.c.bf16 %v20542_v48, %v20541_v35  ;;  %v20547_v13 = vand.u32 4294901760, %v17927_v22  ;;  %v20548_v57 = vand.u32 4294901760, %v17875_v47  ;;  %v20549_v38 = vand.u32 4294901760, %v17891_v6  ;;  %v20552_v47 = vld [vmem:[#allocation42_spill] sm:$0xff]  ;;  %14159 = vmatpush1.bf16.msra.mxu1 %v14158_v40  ;;  %14065 = vmatprep.subr.bf16.mxu0 %v14064_v60  ;;  %v20553_v6 = vld [vmem:[#allocation43_spill] sm:$0xff]  ;;  %v20557_v22 = vld [vmem:[#allocation44_spill] sm:$0xff] }
 0x536   : > { %v18151_v58 = vpack.c.bf16 %v20544_v42, %v20543_v21  ;;  %v20550_v8 = vand.u32 4294901760, %v17881_v41  ;;  %v20551_v29 = vand.u32 4294901760, %v17901_v24  ;;  %6783 = vmatmul.mubr.f32.gmra.mrb[44].mxu0 %v20552_v47  ;;  %7577 = vmatmul.mubr.f32.gmra.mrb[44].mxu1 %v20552_v47  ;;  %v20554_v41 = vld [vmem:[#allocation47_spill] sm:$0xff]  ;;  %v20556_v24 = vld [vmem:[#allocation74_spill] sm:$0xff]  ;;  %v20563_v40 = vld [vmem:[#allocation80_spill] sm:$0xff] }
 0x537   : > { %v18159_v61 = vpack.c.bf16 %v20547_v13, %v20546_v50  ;;  %v18165_v10 = vpack.c.bf16 %v20549_v38, %v20548_v57  ;;  %14161 = vmatprep.subr.bf16.mxu1 %v14160_v0  ;;  %6788 = vmatprep.mubr.f32.mxu0 %v20306_v56  ;;  %v20564_v60 = vld [vmem:[#allocation64_spill] sm:$0xff] }
 0x538   : > { %v18171_v63 = vpack.c.bf16 %v20551_v29, %v20550_v8  ;;  %7582 = vmatprep.mubr.f32.mxu1 %v20306_v56  ;;  %14067 = vmatpush1.bf16.msra.mxu0 %v14066_v15  ;;  %v20565_v0 = vld [vmem:[#allocation92_spill] sm:$0xff]  ;;  %v20566_v15 = vld [vmem:[#allocation46_spill] sm:$0xff] }
 0x539   : > { %14163 = vmatpush1.bf16.msra.mxu1 %v14162_v46  ;;  %14069 = vmatprep.subr.bf16.mxu0 %v14068_v23  ;;  %v20567_v46 = vld [vmem:[#allocation85_spill] sm:$0xff]  ;;  %v20568_v23 = vld [vmem:[#allocation87_spill] sm:$0xff] }
 0x53a   : > { %6790 = vmatmul.mubr.f32.gmra.mrb[46].mxu0 %v20553_v6  ;;  %7584 = vmatmul.mubr.f32.gmra.mrb[46].mxu1 %v20553_v6 }
 0x53b   : > { %14165 = vmatprep.subr.bf16.mxu1 %v14164_v16  ;;  %6795 = vmatprep.mubr.f32.mxu0 %v20306_v56  ;;  %v20569_v16 = vld [vmem:[#allocation93_spill] sm:$0xff] }
 0x53c   : > { %7589 = vmatprep.mubr.f32.mxu1 %v20306_v56  ;;  %14071 = vmatpush1.bf16.msra.mxu0 %v14070_v14  ;;  %v20570_v14 = vld [vmem:[#allocation94_spill] sm:$0xff] }
 0x53d   : > { %14167 = vmatpush1.bf16.msra.mxu1 %v14166_v28  ;;  %14073 = vmatprep.subr.bf16.mxu0 %v20555_v7  ;;  %v20571_v28 = vld [vmem:[#allocation52_spill] sm:$0xff] }
 0x53e   : > { %6797 = vmatmul.mubr.f32.gmra.mrb[48].mxu0 %v20554_v41  ;;  %7591 = vmatmul.mubr.f32.gmra.mrb[48].mxu1 %v20554_v41 }
 0x53f   : > { %14169 = vmatprep.subr.bf16.mxu1 %v20556_v24  ;;  %6899 = vmatprep.mubr.f32.mxu0 %v20306_v56 }
 0x540   : > { %7693 = vmatprep.mubr.f32.mxu1 %v20306_v56 }
 0x542   : > { %6902 = vmatmul.mubr.f32.vlgmr.msra.gmra.mrb[42].mxu0 %v20557_v22  ;;  %7696 = vmatmul.mubr.f32.vlgmr.msra.gmra.mrb[42].mxu1 %v20557_v22 }
 0x543   : > { %14075 = vmatpush1.bf16.msra.mxu0 %v20558_v3  ;;  %14171 = vmatpush1.bf16.msra.mxu1 %v20559_v26 }
 0x544   : > { %14077 = vmatprep.subr.bf16.mxu0 %v20560_v55  ;;  %14173 = vmatprep.subr.bf16.mxu1 %v20561_v2 }
 0x545   : > { %6907 = vmatprep.mubr.f32.mxu0 %v20306_v56  ;;  %7701 = vmatprep.mubr.f32.mxu1 %v20306_v56 }
 0x546   : > { %6910 = vmatmul.mubr.f32.gmra.mrb[44].mxu0 %v20562_v62  ;;  %7704 = vmatmul.mubr.f32.gmra.mrb[44].mxu1 %v20562_v62 }
 0x547   : > { %14079 = vmatpush1.bf16.msra.mxu0 %v20563_v40  ;;  %14175 = vmatpush1.bf16.msra.mxu1 %v20564_v60 }
 0x548   : > { %14081 = vmatprep.subr.bf16.mxu0 %v17911_v37  ;;  %14177 = vmatprep.subr.bf16.mxu1 %v20565_v0 }
 0x549   : > { %6915 = vmatprep.mubr.f32.mxu0 %v20306_v56  ;;  %7709 = vmatprep.mubr.f32.mxu1 %v20306_v56 }
 0x54a   : > { %6918 = vmatmul.mubr.f32.gmra.mrb[46].mxu0 %v20566_v15  ;;  %7712 = vmatmul.mubr.f32.gmra.mrb[46].mxu1 %v20566_v15 }
 0x54b   : > { %14083 = vmatpush1.bf16.msra.mxu0 %v20567_v46  ;;  %14179 = vmatpush1.bf16.msra.mxu1 %v20568_v23 }
 0x54c   : > { %14085 = vmatprep.subr.bf16.mxu0 %v20569_v16  ;;  %14181 = vmatprep.subr.bf16.mxu1 %v20570_v14 }
 0x54d   : > { %6923 = vmatprep.mubr.f32.mxu0 %v20306_v56  ;;  %7717 = vmatprep.mubr.f32.mxu1 %v20306_v56 }
 0x54e   : > { %6926 = vmatmul.mubr.f32.gmra.mrb[48].mxu0 %v20571_v28  ;;  %7720 = vmatmul.mubr.f32.gmra.mrb[48].mxu1 %v20571_v28 }
 0x54f   : > { %14087 = vmatpush1.bf16.msra.mxu0 %v20572_v43  ;;  %14183 = vmatpush1.bf16.msra.mxu1 %v17899_v59 }
 0x550   : > { %14089 = vmatprep.subr.bf16.mxu0 %v18075_v51  ;;  %14185 = vmatprep.subr.bf16.mxu1 %v18083_v20  ;;  %v20574_v51 = vld [vmem:[#allocation50_spill] sm:$0xff] }
 0x551   : > { %7012 = vmatprep.mubr.f32.mxu0 %v20306_v56  ;;  %7806 = vmatprep.mubr.f32.mxu1 %v20306_v56  ;;  %v20576_v20 = vld [vmem:[#allocation54_spill] sm:$0xff] }
 0x552   : > { %7016 = vmatmul.mubr.f32.vlgmr.msra.gmra.mrb[42].mxu0 %v20573_v5  ;;  %7810 = vmatmul.mubr.f32.vlgmr.msra.gmra.mrb[42].mxu1 %v20573_v5 }
 0x553   : > { %14091 = vmatpush1.bf16.msra.mxu0 %v18089_v36  ;;  %14187 = vmatpush1.bf16.msra.mxu1 %v18095_v45  ;;  %v20575_v36 = vld [vmem:[#allocation51_spill] sm:$0xff] }
 0x554   : > { %14093 = vmatprep.subr.bf16.mxu0 %v18102_v53  ;;  %14189 = vmatprep.subr.bf16.mxu1 %v18108_v39 }
 0x555   : > { %7021 = vmatprep.mubr.f32.mxu0 %v20306_v56  ;;  %7815 = vmatprep.mubr.f32.mxu1 %v20306_v56 }
 0x556   : > { %7025 = vmatmul.mubr.f32.gmra.mrb[44].mxu0 %v20574_v51  ;;  %7819 = vmatmul.mubr.f32.gmra.mrb[44].mxu1 %v20574_v51 }
 0x557   : > { %14095 = vmatpush1.bf16.msra.mxu0 %v18114_v18  ;;  %14191 = vmatpush1.bf16.msra.mxu1 %v18120_v30 }
 0x558   : > { %14097 = vmatprep.subr.bf16.mxu0 %v18126_v54  ;;  %14193 = vmatprep.subr.bf16.mxu1 %v18132_v27 }
 0x559   : > { %7030 = vmatprep.mubr.f32.mxu0 %v20306_v56  ;;  %7824 = vmatprep.mubr.f32.mxu1 %v20306_v56 }
 0x55a   : > { %7034 = vmatmul.mubr.f32.gmra.mrb[46].mxu0 %v20575_v36  ;;  %7828 = vmatmul.mubr.f32.gmra.mrb[46].mxu1 %v20575_v36 }
 0x55b   : > { %14099 = vmatpush1.bf16.msra.mxu0 %v18139_v33  ;;  %14195 = vmatpush1.bf16.msra.mxu1 %v18145_v1 }
 0x55c   : > { %14101 = vmatprep.subr.bf16.mxu0 %v18151_v58  ;;  %14197 = vmatprep.subr.bf16.mxu1 %v18159_v61 }
 0x55d   : > { %7039 = vmatprep.mubr.f32.mxu0 %v20306_v56  ;;  %7833 = vmatprep.mubr.f32.mxu1 %v20306_v56 }
 0x55e   : > { %7043 = vmatmul.mubr.f32.gmra.mrb[48].mxu0 %v20576_v20  ;;  %7837 = vmatmul.mubr.f32.gmra.mrb[48].mxu1 %v20576_v20 }
 0x55f   : > { %14103 = vmatpush1.bf16.msra.mxu0 %v18165_v10  ;;  %14199 = vmatpush1.bf16.msra.mxu1 %v18171_v63 }
 0x560   : > { %14105 = vmatprep.subr.bf16.mxu0 %v20555_v7  ;;  %14201 = vmatprep.subr.bf16.mxu1 %v20556_v24 }
 0x561   : > { %7161 = vmatprep.mubr.f32.mxu0 %v20306_v56  ;;  %7955 = vmatprep.mubr.f32.mxu1 %v20306_v56 }
 0x562   : > { %7163 = vmatmul.mubr.f32.vlgmr.msra.gmra.mrb[42].mxu0 %v20545_v31  ;;  %7957 = vmatmul.mubr.f32.vlgmr.msra.gmra.mrb[42].mxu1 %v20545_v31 }
 0x563   : > { %14107 = vmatpush1.bf16.msra.mxu0 %v20558_v3  ;;  %14203 = vmatpush1.bf16.msra.mxu1 %v20559_v26 }
 0x564   : > { %14109 = vmatprep.subr.bf16.mxu0 %v20560_v55  ;;  %14205 = vmatprep.subr.bf16.mxu1 %v20561_v2 }
 0x565   : > { %7168 = vmatprep.mubr.f32.mxu0 %v20306_v56  ;;  %7962 = vmatprep.mubr.f32.mxu1 %v20306_v56 }
 0x566   : > { %7170 = vmatmul.mubr.f32.gmra.mrb[44].mxu0 %v20552_v47  ;;  %7964 = vmatmul.mubr.f32.gmra.mrb[44].mxu1 %v20552_v47 }
 0x567   : > { %14111 = vmatpush1.bf16.msra.mxu0 %v20563_v40  ;;  %14207 = vmatpush1.bf16.msra.mxu1 %v20564_v60 }
 0x568   : > { %14113 = vmatprep.subr.bf16.mxu0 %v17911_v37  ;;  %14209 = vmatprep.subr.bf16.mxu1 %v20565_v0 }
 0x569   : > { %7175 = vmatprep.mubr.f32.mxu0 %v20306_v56  ;;  %7969 = vmatprep.mubr.f32.mxu1 %v20306_v56 }
 0x56a   : > { %7177 = vmatmul.mubr.f32.gmra.mrb[46].mxu0 %v20553_v6  ;;  %7971 = vmatmul.mubr.f32.gmra.mrb[46].mxu1 %v20553_v6 }
 0x56b   : > { %14115 = vmatpush1.bf16.msra.mxu0 %v20567_v46  ;;  %14211 = vmatpush1.bf16.msra.mxu1 %v20568_v23 }
 0x56c   : > { %14117 = vmatprep.subr.bf16.mxu0 %v20569_v16  ;;  %14213 = vmatprep.subr.bf16.mxu1 %v20570_v14 }
 0x56d   : > { %7182 = vmatprep.mubr.f32.mxu0 %v20306_v56  ;;  %7976 = vmatprep.mubr.f32.mxu1 %v20306_v56 }
 0x56e   : > { %7184 = vmatmul.mubr.f32.gmra.mrb[48].mxu0 %v20554_v41  ;;  %7978 = vmatmul.mubr.f32.gmra.mrb[48].mxu1 %v20554_v41 }
 0x56f   : > { %14119 = vmatpush1.bf16.msra.mxu0 %v20572_v43  ;;  %14215 = vmatpush1.bf16.msra.mxu1 %v17899_v59  ;;  %v20577_v59 = vld [vmem:[#allocation63_spill] sm:$0xff] }
 0x570   : > { %7270 = vmatprep.mubr.f32.mxu0 %v20306_v56  ;;  %8064 = vmatprep.mubr.f32.mxu1 %v20306_v56 }
 0x572   : > { %7272 = vmatmul.mubr.f32.vlgmr.msra.gmra.mrb[42].mxu0 %v20545_v31  ;;  %8066 = vmatmul.mubr.f32.vlgmr.msra.gmra.mrb[42].mxu1 %v20545_v31 }
 0x573   : > { %7277 = vmatprep.mubr.f32.mxu0 %v20306_v56  ;;  %8071 = vmatprep.mubr.f32.mxu1 %v20306_v56 }
 0x576   : > { %7279 = vmatmul.mubr.f32.gmra.mrb[44].mxu0 %v20552_v47  ;;  %8073 = vmatmul.mubr.f32.gmra.mrb[44].mxu1 %v20552_v47 }
 0x577   : > { %7284 = vmatprep.mubr.f32.mxu0 %v20306_v56  ;;  %8078 = vmatprep.mubr.f32.mxu1 %v20306_v56 }
 0x57a   : > { %7286 = vmatmul.mubr.f32.gmra.mrb[46].mxu0 %v20553_v6  ;;  %8080 = vmatmul.mubr.f32.gmra.mrb[46].mxu1 %v20553_v6 }
 0x57b   : > { %7291 = vmatprep.mubr.f32.mxu0 %v20306_v56  ;;  %8085 = vmatprep.mubr.f32.mxu1 %v20306_v56 }
 0x57e   : > { %7293 = vmatmul.mubr.f32.gmra.mrb[48].mxu0 %v20554_v41  ;;  %8087 = vmatmul.mubr.f32.gmra.mrb[48].mxu1 %v20554_v41 }
 0x57f   : > { %8181 = vmatprep.mubr.f32.mxu0 %v20306_v56  ;;  %8724 = vmatprep.mubr.f32.mxu1 %v20306_v56 }
 0x645   : > { %v7273_v37 = vpop.f32.mrb[42].mxu0  ;;  %v8067_v53 = vpop.f32.mrb[42].mxu1 }
 0x646   : > { %v14684_v45 = vadd.f32 %v7273_v37, %v20577_v59  ;;  %v7275_v39 = vpop.f32.mrb[43].mxu0  ;;  %v14692_v12 = vadd.f32 %v8067_v53, %v20577_v59  ;;  %v8069_v18 = vpop.f32.mrb[43].mxu1 }
 0x647   : > { %v14685_v34 = vadd.f32 %v7275_v39, %v20577_v59  ;;  %v14693_v17 = vadd.f32 %v8069_v18, %v20577_v59  ;;  %v20579_v18 = vld [vmem:[#allocation73_spill] sm:$0xff] }
 0x648   : > { %v8093_v52 = vmax.f32 %v14684_v45, 0.0  ;;  %v8095_v30 = vmax.f32 %v14692_v12, 0.0 }
 0x649   : > { %v8094_v25 = vmax.f32 %v14685_v34, 0.0  ;;  %v7280_v9 = vpop.f32.mrb[44].mxu0  ;;  %v8096_v32 = vmax.f32 %v14693_v17, 0.0  ;;  %v8074_v44 = vpop.f32.mrb[44].mxu1 }
 0x64a   : > { %v8111_v54 = vand.u32 4294901760, %v8093_v52  ;;  %v14686_v27 = vadd.f32 %v7280_v9, %v20578_v4  ;;  %v7282_v11 = vpop.f32.mrb[45].mxu0  ;;  %v8654_v33 = vand.u32 4294901760, %v8095_v30  ;;  %v14694_v48 = vadd.f32 %v8074_v44, %v20578_v4  ;;  %v8076_v21 = vpop.f32.mrb[45].mxu1 }
 0x64b   : > { %v18305_v35 = vand.u32 4294901760, %v8094_v25  ;;  %v14687_v1 = vadd.f32 %v7282_v11, %v20578_v4  ;;  %v18311_v58 = vand.u32 4294901760, %v8096_v32  ;;  %v14695_v13 = vadd.f32 %v8076_v21, %v20578_v4 }
 0x64c   : > { %v18309_v42 = vsub.f32 %v8093_v52, %v8111_v54  ;;  %v8097_v50 = vmax.f32 %v14686_v27, 0.0  ;;  %v18314_v61 = vsub.f32 %v8095_v30, %v8654_v33  ;;  %v8099_v38 = vmax.f32 %v14694_v48, 0.0 }
 0x64d   : > { %v18317_v57 = vsub.f32 %v8094_v25, %v18305_v35  ;;  %v8098_v10 = vmax.f32 %v14687_v1, 0.0  ;;  %v7287_v8 = vpop.f32.mrb[46].mxu0  ;;  %v18321_v63 = vsub.f32 %v8096_v32, %v18311_v58  ;;  %v8100_v24 = vmax.f32 %v14695_v13, 0.0  ;;  %v8081_v3 = vpop.f32.mrb[46].mxu1  ;;  %v20580_v13 = vld [vmem:[#allocation77_spill] sm:$0xff] }
 0x64e   : > { %v20107_v29 = vand.u32 4294901760, %v18309_v42  ;;  %v8115_v7 = vand.u32 4294901760, %v8097_v50  ;;  %v7289_v26 = vpop.f32.mrb[47].mxu0  ;;  %v20105_v55 = vand.u32 4294901760, %v18314_v61  ;;  %v8658_v2 = vand.u32 4294901760, %v8099_v38  ;;  %v8083_v60 = vpop.f32.mrb[47].mxu1 }
 0x64f   : > { %v18324_v40 = vand.u32 4294901760, %v8098_v10  ;;  %v8656_v34 = vand.u32 4294901760, %v8100_v24  ;;  %v14688_v52 = vadd.f32 %v7287_v8, %v20579_v18  ;;  %v14696_v32 = vadd.f32 %v8081_v3, %v20579_v18 }
 0x650   : > { %v18329_v0 = vsub.f32 %v18309_v42, %v20107_v29  ;;  %v18332_v23 = vpack.c.bf16 %v8115_v7, %v8111_v54  ;;  %v18334_v16 = vsub.f32 %v8097_v50, %v8115_v7  ;;  %v18339_v14 = vsub.f32 %v18314_v61, %v20105_v55 }
 0x651   : > { %v18341_v43 = vpack.c.bf16 %v8658_v2, %v8654_v33  ;;  %v18343_v37 = vsub.f32 %v8099_v38, %v8658_v2  ;;  %v18346_v45 = vsub.f32 %v8098_v10, %v18324_v40  ;;  %v7294_v53 = vpop.f32.mrb[48].mxu0  ;;  %v8088_v17 = vpop.f32.mrb[48].mxu1  ;;  %v18360_v11 = vsub.f32 %v8100_v24, %v8656_v34 }
 0x652   : > { %v20106_v12 = vand.u32 4294901760, %v18334_v16  ;;  %v7296_v30 = vpop.f32.mrb[49].mxu0  ;;  %v8090_v27 = vpop.f32.mrb[49].mxu1  ;;  %v8101_v33 = vmax.f32 %v14688_v52, 0.0  ;;  %v14689_v48 = vadd.f32 %v7289_v26, %v20579_v18  ;;  %v8103_v21 = vmax.f32 %v14696_v32, 0.0 }
 0x653   : > { %v20108_v54 = vand.u32 4294901760, %v18343_v37  ;;  %v14697_v50 = vadd.f32 %v8083_v60, %v20579_v18  ;;  %v14690_v38 = vadd.f32 %v7294_v53, %v20580_v13  ;;  %v14698_v60 = vadd.f32 %v8088_v17, %v20580_v13 }
 0x654   : > { %v18358_v44 = vsub.f32 %v18334_v16, %v20106_v12  ;;  %v8119_v7 = vand.u32 4294901760, %v8101_v33  ;;  %v8102_v24 = vmax.f32 %v14689_v48, 0.0  ;;  %v8662_v2 = vand.u32 4294901760, %v8103_v21 }
 0x655   : > { %v18370_v8 = vsub.f32 %v18343_v37, %v20108_v54  ;;  %v8104_v26 = vmax.f32 %v14697_v50, 0.0  ;;  %v8105_v52 = vmax.f32 %v14690_v38, 0.0  ;;  %v14691_v53 = vadd.f32 %v7296_v30, %v20580_v13 }
 0x656   : > { %v8215_v10 = vand.u32 4294901760, %v18358_v44  ;;  %v18373_v55 = vsub.f32 %v8101_v33, %v8119_v7  ;;  %v8117_v32 = vand.u32 4294901760, %v8102_v24  ;;  %v18377_v44 = vsub.f32 %v8103_v21, %v8662_v2 }
 0x657   : > { %v8660_v12 = vand.u32 4294901760, %v8104_v26  ;;  %v8123_v29 = vand.u32 4294901760, %v8105_v52  ;;  %v14699_v54 = vadd.f32 %v8090_v27, %v20580_v13  ;;  %v8107_v25 = vmax.f32 %v14698_v60, 0.0 }
 0x658   : > { %v20109_v48 = vand.u32 4294901760, %v18373_v55  ;;  %v18381_v9 = vsub.f32 %v8102_v24, %v8117_v32  ;;  %v8106_v50 = vmax.f32 %v14691_v53, 0.0  ;;  %v20110_v33 = vand.u32 4294901760, %v18377_v44 }
 0x659   : > { %v18384_v38 = vsub.f32 %v8104_v26, %v8660_v12  ;;  %v18386_v3 = vpack.c.bf16 %v8123_v29, %v8119_v7  ;;  %v18388_v17 = vsub.f32 %v8105_v52, %v8123_v29  ;;  %v8758_v30 = vand.u32 4294901760, %v18370_v8 }
 0x65a   : > { %v8226_v27 = vsub.f32 %v18373_v55, %v20109_v48  ;;  %v8666_v21 = vand.u32 4294901760, %v8107_v25  ;;  %v8121_v39 = vand.u32 4294901760, %v8106_v50  ;;  %v8769_v24 = vsub.f32 %v18377_v44, %v20110_v33 }
 0x65b   : > { %v20111_v26 = vand.u32 4294901760, %v18388_v17  ;;  %v8108_v7 = vmax.f32 %v14699_v54, 0.0  ;;  %v18411_v33 = vpack.c.bf16 %v18324_v40, %v18305_v35  ;;  %v20587_v59 = vand.u32 4294901760, %v18381_v9 }
 0x65c   : > { %v18400_v52 = vpack.c.bf16 %v8666_v21, %v8662_v2  ;;  %v18402_v8 = vsub.f32 %v8107_v25, %v8666_v21  ;;  %v18404_v53 = vsub.f32 %v8106_v50, %v8121_v39  ;;  %v8227_v48 = vand.u32 4294901760, %v8226_v27 }
 0x65d   : > { %v8238_v1 = vsub.f32 %v18388_v17, %v20111_v26  ;;  %v8664_v46 = vand.u32 4294901760, %v8108_v7  ;;  %v8770_v60 = vand.u32 4294901760, %v8769_v24  ;;  %v18415_v2 = vpack.c.bf16 %v8656_v34, %v18311_v58  ;;  %14217 = vmatprep.subr.bf16.mxu0 %v18411_v33 }
 0x65e   : > { %v20112_v54 = vand.u32 4294901760, %v18402_v8  ;;  %v18417_v25 = vpack.c.bf16 %v8121_v39, %v8117_v32  ;;  %v8231_v50 = vand.u32 4294901760, %v18404_v53  ;;  %v20581_v26 = vand.u32 4294901760, %v18317_v57  ;;  %14219 = vmatpush1.bf16.msra.mxu0 %v18332_v23 }
 0x65f   : > { %v18420_v27 = vsub.f32 %v8108_v7, %v8664_v46  ;;  %v18423_v21 = vpack.c.bf16 %v8664_v46, %v8660_v12  ;;  %v8239_v40 = vand.u32 4294901760, %v8238_v1  ;;  %14265 = vmatprep.subr.bf16.mxu1 %v18415_v2  ;;  %v20582_v39 = vand.u32 4294901760, %v18346_v45 }
 0x660   : > { %v8196_v35 = vsub.f32 %v18317_v57, %v20581_v26  ;;  %v8781_v58 = vsub.f32 %v18402_v8, %v20112_v54  ;;  %v20583_v46 = vand.u32 4294901760, %v18321_v63  ;;  %14267 = vmatpush1.bf16.msra.mxu1 %v18341_v43  ;;  %14221 = vmatprep.subr.bf16.mxu0 %v18417_v25  ;;  %v20584_v24 = vand.u32 4294901760, %v18360_v11 }
 0x661   : > { %v8208_v34 = vsub.f32 %v18346_v45, %v20582_v39  ;;  %v8774_v32 = vand.u32 4294901760, %v18420_v27  ;;  %v20585_v7 = vand.u32 4294901760, %v18329_v0  ;;  %14269 = vmatprep.subr.bf16.mxu1 %v18423_v21  ;;  %v8232_v20 = vsub.f32 %v18404_v53, %v8231_v50 }
 0x662   : > { %v8739_v12 = vsub.f32 %v18321_v63, %v20583_v46  ;;  %v8197_v1 = vand.u32 4294901760, %v8196_v35  ;;  %v8751_v26 = vsub.f32 %v18360_v11, %v20584_v24  ;;  %v8782_v29 = vand.u32 4294901760, %v8781_v58  ;;  %14223 = vmatpush1.bf16.msra.mxu0 %v18386_v3 }
 0x663   : > { %v14226_v54 = vpack.c.bf16 %v8215_v10, %v20585_v7  ;;  %v8209_v39 = vand.u32 4294901760, %v8208_v34  ;;  %v20586_v46 = vand.u32 4294901760, %v18339_v14  ;;  %v8220_v35 = vsub.f32 %v18381_v9, %v20587_v59 }
 0x664   : > { %v8740_v13 = vand.u32 4294901760, %v8739_v12  ;;  %v8752_v4 = vand.u32 4294901760, %v8751_v26  ;;  %v20588_v24 = vand.u32 4294901760, %v18384_v38  ;;  %v8775_v58 = vsub.f32 %v18420_v27, %v8774_v32  ;;  %14271 = vmatpush1.bf16.msra.mxu1 %v18400_v52 }
 0x665   : > { %v14274_v18 = vpack.c.bf16 %v8758_v30, %v20586_v46  ;;  %v14224_v10 = vpack.c.bf16 %v8209_v39, %v8197_v1  ;;  %v14230_v34 = vpack.c.bf16 %v8239_v40, %v8227_v48  ;;  %v14278_v12 = vpack.c.bf16 %v8782_v29, %v8770_v60  ;;  %v20589_v48 = vld [vmem:[#allocation75_spill] sm:$0xff] }
 0x666   : > { %v8763_v0 = vsub.f32 %v18384_v38, %v20588_v24  ;;  %v14272_v14 = vpack.c.bf16 %v8752_v4, %v8740_v13  ;;  %v8221_v30 = vand.u32 4294901760, %v8220_v35  ;;  %v8233_v26 = vand.u32 4294901760, %v8232_v20  ;;  %8187 = vmatmul.mubr.f32.vlgmr.msra.gmra.mrb[50].mxu0 %v20589_v48 }
 0x667   : > { %14225 = vmatprep.subr.bf16.mxu0 %v14224_v10  ;;  %v8776_v59 = vand.u32 4294901760, %v8775_v58  ;;  %v14232_v46 = vpack.c.bf16 %v18346_v45, %v18317_v57  ;;  %v14280_v24 = vpack.c.bf16 %v18360_v11, %v18321_v63  ;;  %v14234_v1 = vpack.c.bf16 %v18334_v16, %v18309_v42  ;;  %8730 = vmatmul.mubr.f32.vlgmr.msra.gmra.mrb[50].mxu1 %v20589_v48 }
 0x668   : > { %v8764_v7 = vand.u32 4294901760, %v8763_v0  ;;  %14273 = vmatprep.subr.bf16.mxu1 %v14272_v14  ;;  %v14228_v60 = vpack.c.bf16 %v8233_v26, %v8221_v30  ;;  %v14282_v4 = vpack.c.bf16 %v18343_v37, %v18314_v61  ;;  %v14236_v20 = vpack.c.bf16 %v18404_v53, %v18381_v9  ;;  %14227 = vmatpush1.bf16.msra.mxu0 %v14226_v54 }
 0x669   : > { %v14284_v29 = vpack.c.bf16 %v18420_v27, %v18384_v38  ;;  %v14238_v40 = vpack.c.bf16 %v18388_v17, %v18373_v55  ;;  %14275 = vmatpush1.bf16.msra.mxu1 %v14274_v18  ;;  %v14286_v39 = vpack.c.bf16 %v18402_v8, %v18377_v44  ;;  %v20590_v35 = vand.u32 4294901760, %v18317_v57  ;;  %8297 = vmatprep.mubr.f32.mxu0 %v20306_v56 }
 0x66a   : > { %v14276_v13 = vpack.c.bf16 %v8776_v59, %v8764_v7  ;;  %14229 = vmatprep.subr.bf16.mxu0 %v14228_v60  ;;  %v20591_v0 = vand.u32 4294901760, %v18346_v45  ;;  %v20592_v10 = vand.u32 4294901760, %v18321_v63  ;;  %v20593_v54 = vand.u32 4294901760, %v18360_v11  ;;  %8840 = vmatprep.mubr.f32.mxu1 %v20306_v56 }
 0x66b   : > { %v20594_v27 = vand.u32 4294901760, %v18309_v42  ;;  %v20595_v18 = vand.u32 4294901760, %v18334_v16  ;;  %v20596_v30 = vand.u32 4294901760, %v18314_v61  ;;  %v20597_v57 = vand.u32 4294901760, %v18343_v37  ;;  %v20604_v37 = vld [vmem:[#allocation62_spill] sm:$0xff] }
 0x66c   : > { %v14248_v53 = vpack.c.bf16 %v20591_v0, %v20590_v35  ;;  %v14296_v58 = vpack.c.bf16 %v20593_v54, %v20592_v10  ;;  %14277 = vmatprep.subr.bf16.mxu1 %v14276_v13  ;;  %v20598_v45 = vand.u32 4294901760, %v18381_v9  ;;  %v20599_v63 = vand.u32 4294901760, %v18384_v38  ;;  %14231 = vmatpush1.bf16.msra.mxu0 %v14230_v34  ;;  %v9242_v9 = vld [vmem:[%s15863_s10 + $0x48] sm:$0x1f]  ;;  %v20607_v54 = vld [vmem:[#allocation20_spill] sm:$0xff] }
 0x66d   : > { %v14250_v14 = vpack.c.bf16 %v20595_v18, %v20594_v27  ;;  %v14298_v26 = vpack.c.bf16 %v20597_v57, %v20596_v30  ;;  %v20600_v59 = vand.u32 4294901760, %v18373_v55  ;;  %v20601_v42 = vand.u32 4294901760, %v18388_v17  ;;  %14279 = vmatpush1.bf16.msra.mxu1 %v14278_v12  ;;  %14233 = vmatprep.subr.bf16.mxu0 %v14232_v46  ;;  %v20605_v55 = vld [vmem:[#allocation65_spill] sm:$0xff]  ;;  %v9241_v17 = vld [vmem:[%s15863_s10 + $0x40] sm:$0x1f]  ;;  %v20613_v57 = vld [vmem:[#allocation39_spill] sm:$0xff] }
 0x66e   : > { %v14252_v7 = vpack.c.bf16 %v8231_v50, %v20598_v45  ;;  %v14300_v11 = vpack.c.bf16 %v8774_v32, %v20599_v63  ;;  %v20602_v16 = vand.u32 4294901760, %v18377_v44  ;;  %v20603_v61 = vand.u32 4294901760, %v18402_v8  ;;  %14281 = vmatprep.subr.bf16.mxu1 %v14280_v24  ;;  %v9244_v44 = vld [vmem:[%s15863_s10 + $0x58] sm:$0x1f]  ;;  %v9243_v50 = vld [vmem:[%s15863_s10 + $0x50] sm:$0x1f] }
 0x66f   : > { %v14254_v60 = vpack.c.bf16 %v20601_v42, %v20600_v59  ;;  %8299 = vmatmul.mubr.f32.vlgmr.msra.gmra.mrb[50].mxu0 %v20604_v37  ;;  %v9249_v38 = vsel %vm423_vm0, %v9242_v9, 0  ;;  %v9255_v8 = vsel %vm423_vm0, %v9244_v44, 0  ;;  %v20606_v32 = vld [vmem:[#allocation67_spill] sm:$0xff]  ;;  %v9246_v12 = vsel %vm423_vm0, %v9241_v17, 0  ;;  %v20609_v27 = vld [vmem:[#allocation26_spill] sm:$0xff]  ;;  %v20612_v30 = vld [vmem:[#allocation37_spill] sm:$0xff] }
 0x670   : > { %v14302_v13 = vpack.c.bf16 %v20603_v61, %v20602_v16  ;;  %8842 = vmatmul.mubr.f32.vlgmr.msra.gmra.mrb[50].mxu1 %v20604_v37  ;;  %14235 = vmatpush1.bf16.msra.mxu0 %v14234_v1  ;;  %v18532_v34 = vand.u32 4294901760, %v9249_v38  ;;  %v18535_v46 = vand.u32 4294901760, %v9255_v8  ;;  %v9252_v24 = vsel %vm423_vm0, %v9243_v50, 0  ;;  %v20610_v18 = vld [vmem:[#allocation30_spill] sm:$0xff]  ;;  %v20615_v45 = vld [vmem:[#allocation9_spill] sm:$0xff]  ;;  %v20617_v63 = vld [vmem:[#allocation11_spill] sm:$0xff] }
 0x671   : > { %14283 = vmatpush1.bf16.msra.mxu1 %v14282_v4  ;;  %14237 = vmatprep.subr.bf16.mxu0 %v14236_v20  ;;  %v18543_v4 = vand.u32 4294901760, %v9246_v12  ;;  %v20619_v59 = vld [vmem:[#allocation22_spill] sm:$0xff]  ;;  %v20620_v42 = vld [vmem:[#allocation24_spill] sm:$0xff]  ;;  %v20622_v16 = vld [vmem:[#allocation33_spill] sm:$0xff]  ;;  %s13735_s10 = smul.u32 192, %s15781_s6  ;;  %s15716_s6 = smov [#allocation6]  }
 0x672   : > { %14285 = vmatprep.subr.bf16.mxu1 %v14284_v29  ;;  %8385 = vmatprep.mubr.f32.mxu0 %v20306_v56  ;;  %v18540_v1 = vsub.f32 %v9249_v38, %v18532_v34  ;;  %v18546_v20 = vsub.f32 %v9255_v8, %v18535_v46  ;;  %v18548_v29 = vand.u32 4294901760, %v9252_v24  ;;  %v20623_v61 = vld [vmem:[#allocation12_spill] sm:$0xff]  ;;  %v20625_v9 = vld [vmem:[#allocation14_spill] sm:$0xff]  ;;  %v20627_v38 = vld [vmem:[#allocation25_spill] sm:$0xff]  ;;  %s15648_s18 = sshll.u32 %s15716_s6, 4  ;;  %s15649_s18 = int_to_ptr.vmem [resolvable:$false] %s15648_s18 }
 0x673   : > { %8928 = vmatprep.mubr.f32.mxu1 %v20306_v56  ;;  %v20626_v44 = vld [vmem:[#allocation18_spill] sm:$0xff]  ;;  %v20628_v17 = vld [vmem:[#allocation28_spill] sm:$0xff]  ;;  %s19752_s23 = scalar_lea.hbm %s19806_s7, %s13735_s10  ;;  %s15650_s15 = scalar_lea.vmem %s15649_s18, 384 }
 0x674   : > { %14239 = vmatpush1.bf16.msra.mxu0 %v14238_v40  ;;  %v18552_v40 = vsub.f32 %v9246_v12, %v18543_v4  ;;  %v9414_v35 = vand.u32 4294901760, %v18540_v1  ;;  %v10222_v0 = vand.u32 4294901760, %v18546_v20  ;;  %v20629_v8 = vld [vmem:[#allocation32_spill] sm:$0xff]  ;;  %p15651_p5 = scmp.lt.s32.totalorder %s19754_s12, %s15649_s18  ;;  %p15652_p10 = scmp.lt.s32.totalorder %s15650_s15, %s15644_s16 }
 0x675   : > { %14287 = vmatpush1.bf16.msra.mxu1 %v14286_v39  ;;  %14241 = vmatprep.subr.bf16.mxu0 %v18411_v33  ;;  %v18556_v39 = vsub.f32 %v9252_v24, %v18548_v29  ;;  %v20630_v50 = vld [vmem:[#allocation36_spill] sm:$0xff]  ;;  %v20632_v24 = vld [vmem:[#allocation17_spill] sm:$0xff] }
 0x676   : > { %14289 = vmatprep.subr.bf16.mxu1 %v18415_v2  ;;  %v20631_v12 = vld [vmem:[#allocation16_spill] sm:$0xff]  ;;  %p15653_p2 = por %p15652_p10, %p15651_p5 }
 0x677   : > { %8388 = vmatmul.mubr.f32.vlgmr.msra.gmra.mrb[50].mxu0 %v20605_v55 }
 0x678   : > { %8931 = vmatmul.mubr.f32.vlgmr.msra.gmra.mrb[50].mxu1 %v20605_v55  ;;  %14243 = vmatpush1.bf16.msra.mxu0 %v18332_v23  ;;  %p15654_p4 = pnand %p15653_p2, %p15647_p13 }
 0x679   : > { %14291 = vmatpush1.bf16.msra.mxu1 %v18341_v43  ;;  %14245 = vmatprep.subr.bf16.mxu0 %v18417_v25 }
 0x67a   : > { %14293 = vmatprep.subr.bf16.mxu1 %v18423_v21  ;;  %8466 = vmatprep.mubr.f32.mxu0 %v20306_v56 }
 0x67b   : > { %9009 = vmatprep.mubr.f32.mxu1 %v20306_v56 }
 0x67c   : > { %14247 = vmatpush1.bf16.msra.mxu0 %v18386_v3 }
 0x67d   : > { %14295 = vmatpush1.bf16.msra.mxu1 %v18400_v52  ;;  %14249 = vmatprep.subr.bf16.mxu0 %v14248_v53  ;;  %v10228_v53 = vand.u32 4294901760, %v18556_v39 }
 0x67e   : > { %14297 = vmatprep.subr.bf16.mxu1 %v14296_v58  ;;  %v20608_v58 = vld [vmem:[#allocation23_spill] sm:$0xff] }
 0x67f   : > { %8470 = vmatmul.mubr.f32.vlgmr.msra.gmra.mrb[50].mxu0 %v20606_v32 }
 0x680   : > { %9013 = vmatmul.mubr.f32.vlgmr.msra.gmra.mrb[50].mxu1 %v20606_v32  ;;  %14251 = vmatpush1.bf16.msra.mxu0 %v14250_v14  ;;  %v20611_v14 = vld [vmem:[#allocation34_spill] sm:$0xff] }
 0x681   : > { %14299 = vmatpush1.bf16.msra.mxu1 %v14298_v26  ;;  %14253 = vmatprep.subr.bf16.mxu0 %v14252_v7  ;;  %v20614_v26 = vld [vmem:[#allocation40_spill] sm:$0xff]  ;;  %v20616_v7 = vld [vmem:[#allocation10_spill] sm:$0xff] }
 0x682   : > { %14301 = vmatprep.subr.bf16.mxu1 %v14300_v11  ;;  %8564 = vmatprep.mubr.f32.mxu0 %v20306_v56  ;;  %v20618_v11 = vld [vmem:[#allocation15_spill] sm:$0xff] }
 0x683   : > { %9107 = vmatprep.mubr.f32.mxu1 %v20306_v56 }
 0x684   : > { %14255 = vmatpush1.bf16.msra.mxu0 %v14254_v60  ;;  %v20621_v60 = vld [vmem:[#allocation29_spill] sm:$0xff] }
 0x685   : > { %14303 = vmatpush1.bf16.msra.mxu1 %v14302_v13  ;;  %14257 = vmatprep.subr.bf16.mxu0 %v18411_v33  ;;  %v9420_v33 = vand.u32 4294901760, %v18552_v40  ;;  %v20624_v13 = vld [vmem:[#allocation13_spill] sm:$0xff] }
 0x686   : > { %14305 = vmatprep.subr.bf16.mxu1 %v18415_v2  ;;  %v9415_v2 = vsub.f32 %v18540_v1, %v9414_v35 }
 0x687   : > { %8566 = vmatmul.mubr.f32.vlgmr.msra.gmra.mrb[50].mxu0 %v20604_v37 }
 0x688   : > { %9109 = vmatmul.mubr.f32.vlgmr.msra.gmra.mrb[50].mxu1 %v20604_v37  ;;  %14259 = vmatpush1.bf16.msra.mxu0 %v18332_v23  ;;  %v10223_v23 = vsub.f32 %v18546_v20, %v10222_v0 }
 0x689   : > { %14307 = vmatpush1.bf16.msra.mxu1 %v18341_v43  ;;  %14261 = vmatprep.subr.bf16.mxu0 %v18417_v25  ;;  %v9421_v43 = vsub.f32 %v18552_v40, %v9420_v33  ;;  %v9416_v25 = vand.u32 4294901760, %v9415_v2 }
 0x68a   : > { %14309 = vmatprep.subr.bf16.mxu1 %v18423_v21  ;;  %8644 = vmatprep.mubr.f32.mxu0 %v20306_v56  ;;  %v10229_v21 = vsub.f32 %v18556_v39, %v10228_v53  ;;  %v10224_v10 = vand.u32 4294901760, %v10223_v23 }
 0x68b   : > { %9187 = vmatprep.mubr.f32.mxu1 %v20306_v56 }
 0x68c   : > { %14263 = vmatpush1.bf16.msra.mxu0 %v18386_v3  ;;  %v9422_v3 = vand.u32 4294901760, %v9421_v43 }
 0x68d   : > { %14311 = vmatpush1.bf16.msra.mxu1 %v18400_v52  ;;  %9258 = vmatprep.subr.mxu0 %v18532_v34  ;;  %v10230_v52 = vand.u32 4294901760, %v10229_v21 }
 0x68e   : > { %10066 = vmatprep.subr.mxu1 %v18535_v46 }
 0x68f   : > { %8646 = vmatmul.mubr.f32.vlgmr.msra.gmra.mrb[50].mxu0 %v20604_v37 }
 0x690   : > { %9189 = vmatmul.mubr.f32.vlgmr.msra.gmra.mrb[50].mxu1 %v20604_v37  ;;  %9260 = vmatpush1.msra.mxu0 %v18543_v4 }
 0x691   : > { %9323 = vmatprep.mubr.f32.mxu0 %v20306_v56  ;;  %10068 = vmatpush1.msra.mxu1 %v18548_v29 }
 0x692   : > { %10131 = vmatprep.mubr.f32.mxu1 %v20306_v56  ;;  %9417 = vmatprep.subr.mxu0 %v9416_v25 }
 0x693   : > { %9329 = vmatmul.mubr.f32.vlgmr.msra.gmra.mrb[52].mxu0 %v20607_v54  ;;  %10225 = vmatprep.subr.mxu1 %v10224_v10 }
 0x694   : > { %10137 = vmatmul.mubr.f32.vlgmr.msra.gmra.mrb[52].mxu1 %v20607_v54  ;;  %9334 = vmatprep.mubr.f32.mxu0 %v20306_v56 }
 0x695   : > { %10142 = vmatprep.mubr.f32.mxu1 %v20306_v56  ;;  %9423 = vmatpush1.msra.mxu0 %v9422_v3 }
 0x696   : > { %10231 = vmatpush1.msra.mxu1 %v10230_v52  ;;  %9545 = vmatprep.subr.mxu0 %v18540_v1  ;;  %v20633_v1 = vld [vmem:[#allocation19_spill] sm:$0xff] }
 0x697   : > { %9340 = vmatmul.mubr.f32.gmra.mrb[54].mxu0 %v20608_v58  ;;  %10353 = vmatprep.subr.mxu1 %v18546_v20  ;;  %v20634_v20 = vld [vmem:[#allocation21_spill] sm:$0xff] }
 0x698   : > { %10148 = vmatmul.mubr.f32.gmra.mrb[54].mxu1 %v20608_v58  ;;  %9345 = vmatprep.mubr.f32.mxu0 %v20306_v56 }
 0x699   : > { %10153 = vmatprep.mubr.f32.mxu1 %v20306_v56 }
 0x69b   : > { %9351 = vmatmul.mubr.f32.gmra.mrb[56].mxu0 %v20609_v27 }
 0x69c   : > { %10159 = vmatmul.mubr.f32.gmra.mrb[56].mxu1 %v20609_v27  ;;  %9356 = vmatprep.mubr.f32.mxu0 %v20306_v56 }
 0x69d   : > { %10164 = vmatprep.mubr.f32.mxu1 %v20306_v56 }
 0x69f   : > { %9362 = vmatmul.mubr.f32.gmra.mrb[58].mxu0 %v20610_v18 }
 0x6a0   : > { %10170 = vmatmul.mubr.f32.gmra.mrb[58].mxu1 %v20610_v18  ;;  %9367 = vmatprep.mubr.f32.mxu0 %v20306_v56 }
 0x6a1   : > { %10175 = vmatprep.mubr.f32.mxu1 %v20306_v56 }
 0x6a3   : > { %9373 = vmatmul.mubr.f32.gmra.mrb[60].mxu0 %v20611_v14 }
 0x6a4   : > { %10181 = vmatmul.mubr.f32.gmra.mrb[60].mxu1 %v20611_v14  ;;  %9378 = vmatprep.mubr.f32.mxu0 %v20306_v56 }
 0x6a5   : > { %10186 = vmatprep.mubr.f32.mxu1 %v20306_v56 }
 0x6a7   : > { %9384 = vmatmul.mubr.f32.gmra.mrb[62].mxu0 %v20612_v30 }
 0x6a8   : > { %10192 = vmatmul.mubr.f32.gmra.mrb[62].mxu1 %v20612_v30  ;;  %9389 = vmatprep.mubr.f32.mxu0 %v20306_v56 }
 0x6a9   : > { %10197 = vmatprep.mubr.f32.mxu1 %v20306_v56 }
 0x6ab   : > { %9395 = vmatmul.mubr.f32.gmra.mrb[64].mxu0 %v20613_v57 }
 0x6ac   : > { %10203 = vmatmul.mubr.f32.gmra.mrb[64].mxu1 %v20613_v57  ;;  %9400 = vmatprep.mubr.f32.mxu0 %v20306_v56 }
 0x6ad   : > { %10208 = vmatprep.mubr.f32.mxu1 %v20306_v56 }
 0x6af   : > { %9406 = vmatmul.mubr.f32.gmra.mrb[66].mxu0 %v20614_v26 }
 0x6b0   : > { %10214 = vmatmul.mubr.f32.gmra.mrb[66].mxu1 %v20614_v26  ;;  %9486 = vmatprep.mubr.f32.mxu0 %v20306_v56 }
 0x6b1   : > { %10294 = vmatprep.mubr.f32.mxu1 %v20306_v56 }
 0x6b3   : > { %9488 = vmatmul.mubr.f32.vlgmr.msra.gmra.mrb[52].mxu0 %v20615_v45 }
 0x6b4   : > { %10296 = vmatmul.mubr.f32.vlgmr.msra.gmra.mrb[52].mxu1 %v20615_v45  ;;  %9493 = vmatprep.mubr.f32.mxu0 %v20306_v56 }
 0x6b5   : > { %10301 = vmatprep.mubr.f32.mxu1 %v20306_v56  ;;  %9548 = vmatpush1.msra.mxu0 %v18552_v40  ;;  %v20637_v40 = vld [vmem:[#allocation35_spill] sm:$0xff] }
 0x6b6   : > { %10356 = vmatpush1.msra.mxu1 %v18556_v39  ;;  %9677 = vmatprep.subr.mxu0 %v18532_v34  ;;  %v20638_v39 = vld [vmem:[#allocation38_spill] sm:$0xff] }
 0x6b7   : > { %9495 = vmatmul.mubr.f32.gmra.mrb[54].mxu0 %v20616_v7  ;;  %10485 = vmatprep.subr.mxu1 %v18535_v46 }
 0x6b8   : > { %10303 = vmatmul.mubr.f32.gmra.mrb[54].mxu1 %v20616_v7  ;;  %9500 = vmatprep.mubr.f32.mxu0 %v20306_v56 }
 0x6b9   : > { %10308 = vmatprep.mubr.f32.mxu1 %v20306_v56 }
 0x6bb   : > { %9502 = vmatmul.mubr.f32.gmra.mrb[56].mxu0 %v20617_v63 }
 0x6bc   : > { %10310 = vmatmul.mubr.f32.gmra.mrb[56].mxu1 %v20617_v63  ;;  %9507 = vmatprep.mubr.f32.mxu0 %v20306_v56 }
 0x6bd   : > { %10315 = vmatprep.mubr.f32.mxu1 %v20306_v56 }
 0x6bf   : > { %9509 = vmatmul.mubr.f32.gmra.mrb[58].mxu0 %v20618_v11 }
 0x6c0   : > { %10317 = vmatmul.mubr.f32.gmra.mrb[58].mxu1 %v20618_v11  ;;  %9514 = vmatprep.mubr.f32.mxu0 %v20306_v56 }
 0x6c1   : > { %10322 = vmatprep.mubr.f32.mxu1 %v20306_v56 }
 0x6c3   : > { %9516 = vmatmul.mubr.f32.gmra.mrb[60].mxu0 %v20619_v59 }
 0x6c4   : > { %10324 = vmatmul.mubr.f32.gmra.mrb[60].mxu1 %v20619_v59  ;;  %9521 = vmatprep.mubr.f32.mxu0 %v20306_v56 }
 0x6c5   : > { %10329 = vmatprep.mubr.f32.mxu1 %v20306_v56 }
 0x6c7   : > { %9523 = vmatmul.mubr.f32.gmra.mrb[62].mxu0 %v20620_v42 }
 0x6c8   : > { %10331 = vmatmul.mubr.f32.gmra.mrb[62].mxu1 %v20620_v42  ;;  %9528 = vmatprep.mubr.f32.mxu0 %v20306_v56 }
 0x6c9   : > { %10336 = vmatprep.mubr.f32.mxu1 %v20306_v56 }
 0x6cb   : > { %9530 = vmatmul.mubr.f32.gmra.mrb[64].mxu0 %v20621_v60 }
 0x6cc   : > { %10338 = vmatmul.mubr.f32.gmra.mrb[64].mxu1 %v20621_v60  ;;  %9535 = vmatprep.mubr.f32.mxu0 %v20306_v56 }
 0x6cd   : > { %10343 = vmatprep.mubr.f32.mxu1 %v20306_v56 }
 0x6cf   : > { %9537 = vmatmul.mubr.f32.gmra.mrb[66].mxu0 %v20622_v16 }
 0x6d0   : > { %10345 = vmatmul.mubr.f32.gmra.mrb[66].mxu1 %v20622_v16  ;;  %9611 = vmatprep.mubr.f32.mxu0 %v20306_v56 }
 0x6d1   : > { %10419 = vmatprep.mubr.f32.mxu1 %v20306_v56 }
 0x6d3   : > { %9614 = vmatmul.mubr.f32.vlgmr.msra.gmra.mrb[52].mxu0 %v20623_v61 }
 0x6d4   : > { %10422 = vmatmul.mubr.f32.vlgmr.msra.gmra.mrb[52].mxu1 %v20623_v61  ;;  %9619 = vmatprep.mubr.f32.mxu0 %v20306_v56 }
 0x6d5   : > { %10427 = vmatprep.mubr.f32.mxu1 %v20306_v56  ;;  %9679 = vmatpush1.msra.mxu0 %v18543_v4 }
 0x6d6   : > { %10487 = vmatpush1.msra.mxu1 %v18548_v29  ;;  %9818 = vmatprep.subr.mxu0 %v9414_v35 }
 0x6d7   : > { %9622 = vmatmul.mubr.f32.gmra.mrb[54].mxu0 %v20624_v13  ;;  %10626 = vmatprep.subr.mxu1 %v10222_v0 }
 0x6d8   : > { %10430 = vmatmul.mubr.f32.gmra.mrb[54].mxu1 %v20624_v13  ;;  %9627 = vmatprep.mubr.f32.mxu0 %v20306_v56 }
 0x6d9   : > { %10435 = vmatprep.mubr.f32.mxu1 %v20306_v56 }
 0x6db   : > { %9630 = vmatmul.mubr.f32.gmra.mrb[56].mxu0 %v20625_v9 }
 0x6dc   : > { %10438 = vmatmul.mubr.f32.gmra.mrb[56].mxu1 %v20625_v9  ;;  %9635 = vmatprep.mubr.f32.mxu0 %v20306_v56 }
 0x6dd   : > { %10443 = vmatprep.mubr.f32.mxu1 %v20306_v56 }
 0x6df   : > { %9638 = vmatmul.mubr.f32.gmra.mrb[58].mxu0 %v20626_v44 }
 0x6e0   : > { %10446 = vmatmul.mubr.f32.gmra.mrb[58].mxu1 %v20626_v44  ;;  %9643 = vmatprep.mubr.f32.mxu0 %v20306_v56 }
 0x6e1   : > { %10451 = vmatprep.mubr.f32.mxu1 %v20306_v56 }
 0x6e3   : > { %9646 = vmatmul.mubr.f32.gmra.mrb[60].mxu0 %v20627_v38 }
 0x6e4   : > { %10454 = vmatmul.mubr.f32.gmra.mrb[60].mxu1 %v20627_v38  ;;  %9651 = vmatprep.mubr.f32.mxu0 %v20306_v56  ;;  %v20642_v38 = vld [vmem:[#allocation48_spill] sm:$0xff] }
 0x6e5   : > { %10459 = vmatprep.mubr.f32.mxu1 %v20306_v56 }
 0x6e7   : > { %9654 = vmatmul.mubr.f32.gmra.mrb[62].mxu0 %v20628_v17 }
 0x6e8   : > { %10462 = vmatmul.mubr.f32.gmra.mrb[62].mxu1 %v20628_v17  ;;  %9659 = vmatprep.mubr.f32.mxu0 %v20306_v56 }
 0x6e9   : > { %10467 = vmatprep.mubr.f32.mxu1 %v20306_v56 }
 0x6eb   : > { %9662 = vmatmul.mubr.f32.gmra.mrb[64].mxu0 %v20629_v8 }
 0x6ec   : > { %10470 = vmatmul.mubr.f32.gmra.mrb[64].mxu1 %v20629_v8  ;;  %9667 = vmatprep.mubr.f32.mxu0 %v20306_v56 }
 0x6ed   : > { %10475 = vmatprep.mubr.f32.mxu1 %v20306_v56 }
 0x6ef   : > { %9670 = vmatmul.mubr.f32.gmra.mrb[66].mxu0 %v20630_v50 }
 0x6f0   : > { %10478 = vmatmul.mubr.f32.gmra.mrb[66].mxu1 %v20630_v50  ;;  %9742 = vmatprep.mubr.f32.mxu0 %v20306_v56 }
 0x6f1   : > { %10550 = vmatprep.mubr.f32.mxu1 %v20306_v56 }
 0x6f3   : > { %9746 = vmatmul.mubr.f32.vlgmr.msra.gmra.mrb[52].mxu0 %v20631_v12 }
 0x6f4   : > { %10554 = vmatmul.mubr.f32.vlgmr.msra.gmra.mrb[52].mxu1 %v20631_v12  ;;  %9751 = vmatprep.mubr.f32.mxu0 %v20306_v56 }
 0x6f5   : > { %10559 = vmatprep.mubr.f32.mxu1 %v20306_v56  ;;  %9822 = vmatpush1.msra.mxu0 %v9420_v33 }
 0x6f6   : > { %10630 = vmatpush1.msra.mxu1 %v10228_v53  ;;  %9943 = vmatprep.subr.mxu0 %v18532_v34  ;;  %v20635_v34 = vld [vmem:[#allocation27_spill] sm:$0xff] }
 0x6f7   : > { %9755 = vmatmul.mubr.f32.gmra.mrb[54].mxu0 %v20632_v24  ;;  %10751 = vmatprep.subr.mxu1 %v18535_v46  ;;  %v20636_v46 = vld [vmem:[#allocation31_spill] sm:$0xff] }
 0x6f8   : > { %10563 = vmatmul.mubr.f32.gmra.mrb[54].mxu1 %v20632_v24  ;;  %9760 = vmatprep.mubr.f32.mxu0 %v20306_v56 }
 0x6f9   : > { %10568 = vmatprep.mubr.f32.mxu1 %v20306_v56 }
 0x6fb   : > { %9764 = vmatmul.mubr.f32.gmra.mrb[56].mxu0 %v20633_v1 }
 0x6fc   : > { %10572 = vmatmul.mubr.f32.gmra.mrb[56].mxu1 %v20633_v1  ;;  %9769 = vmatprep.mubr.f32.mxu0 %v20306_v56 }
 0x6fd   : > { %10577 = vmatprep.mubr.f32.mxu1 %v20306_v56 }
 0x6ff   : > { %9773 = vmatmul.mubr.f32.gmra.mrb[58].mxu0 %v20634_v20 }
 0x700   : > { %10581 = vmatmul.mubr.f32.gmra.mrb[58].mxu1 %v20634_v20  ;;  %9778 = vmatprep.mubr.f32.mxu0 %v20306_v56 }
 0x701   : > { %10586 = vmatprep.mubr.f32.mxu1 %v20306_v56 }
 0x703   : > { %9782 = vmatmul.mubr.f32.gmra.mrb[60].mxu0 %v20635_v34 }
 0x704   : > { %10590 = vmatmul.mubr.f32.gmra.mrb[60].mxu1 %v20635_v34  ;;  %9787 = vmatprep.mubr.f32.mxu0 %v20306_v56 }
 0x705   : > { %10595 = vmatprep.mubr.f32.mxu1 %v20306_v56 }
 0x707   : > { %9791 = vmatmul.mubr.f32.gmra.mrb[62].mxu0 %v20636_v46 }
 0x708   : > { %10599 = vmatmul.mubr.f32.gmra.mrb[62].mxu1 %v20636_v46  ;;  %9796 = vmatprep.mubr.f32.mxu0 %v20306_v56 }
 0x709   : > { %10604 = vmatprep.mubr.f32.mxu1 %v20306_v56 }
 0x70b   : > { %9800 = vmatmul.mubr.f32.gmra.mrb[64].mxu0 %v20637_v40 }
 0x70c   : > { %10608 = vmatmul.mubr.f32.gmra.mrb[64].mxu1 %v20637_v40  ;;  %9805 = vmatprep.mubr.f32.mxu0 %v20306_v56 }
 0x70d   : > { %10613 = vmatprep.mubr.f32.mxu1 %v20306_v56 }
 0x70f   : > { %9809 = vmatmul.mubr.f32.gmra.mrb[66].mxu0 %v20638_v39 }
 0x710   : > { %10617 = vmatmul.mubr.f32.gmra.mrb[66].mxu1 %v20638_v39  ;;  %9885 = vmatprep.mubr.f32.mxu0 %v20306_v56 }
 0x711   : > { %10693 = vmatprep.mubr.f32.mxu1 %v20306_v56 }
 0x713   : > { %9887 = vmatmul.mubr.f32.vlgmr.msra.gmra.mrb[52].mxu0 %v20615_v45 }
 0x714   : > { %10695 = vmatmul.mubr.f32.vlgmr.msra.gmra.mrb[52].mxu1 %v20615_v45  ;;  %9892 = vmatprep.mubr.f32.mxu0 %v20306_v56 }
 0x715   : > { %10700 = vmatprep.mubr.f32.mxu1 %v20306_v56  ;;  %9945 = vmatpush1.msra.mxu0 %v18543_v4 }
 0x716   : > { %10753 = vmatpush1.msra.mxu1 %v18548_v29  ;;  %v20639_v29 = vld [vmem:[#allocation68_spill] sm:$0xff] }
 0x717   : > { %9894 = vmatmul.mubr.f32.gmra.mrb[54].mxu0 %v20616_v7 }
 0x718   : > { %10702 = vmatmul.mubr.f32.gmra.mrb[54].mxu1 %v20616_v7  ;;  %9899 = vmatprep.mubr.f32.mxu0 %v20306_v56 }
 0x719   : > { %10707 = vmatprep.mubr.f32.mxu1 %v20306_v56 }
 0x71b   : > { %9901 = vmatmul.mubr.f32.gmra.mrb[56].mxu0 %v20617_v63 }
 0x71c   : > { %10709 = vmatmul.mubr.f32.gmra.mrb[56].mxu1 %v20617_v63  ;;  %9906 = vmatprep.mubr.f32.mxu0 %v20306_v56 }
 0x71d   : > { %10714 = vmatprep.mubr.f32.mxu1 %v20306_v56 }
 0x71f   : > { %9908 = vmatmul.mubr.f32.gmra.mrb[58].mxu0 %v20618_v11 }
 0x720   : > { %10716 = vmatmul.mubr.f32.gmra.mrb[58].mxu1 %v20618_v11  ;;  %9913 = vmatprep.mubr.f32.mxu0 %v20306_v56 }
 0x721   : > { %10721 = vmatprep.mubr.f32.mxu1 %v20306_v56 }
 0x723   : > { %9915 = vmatmul.mubr.f32.gmra.mrb[60].mxu0 %v20619_v59 }
 0x724   : > { %10723 = vmatmul.mubr.f32.gmra.mrb[60].mxu1 %v20619_v59  ;;  %9920 = vmatprep.mubr.f32.mxu0 %v20306_v56 }
 0x725   : > { %10728 = vmatprep.mubr.f32.mxu1 %v20306_v56 }
 0x727   : > { %9922 = vmatmul.mubr.f32.gmra.mrb[62].mxu0 %v20620_v42 }
 0x728   : > { %10730 = vmatmul.mubr.f32.gmra.mrb[62].mxu1 %v20620_v42  ;;  %9927 = vmatprep.mubr.f32.mxu0 %v20306_v56 }
 0x729   : > { %10735 = vmatprep.mubr.f32.mxu1 %v20306_v56 }
 0x72b   : > { %9929 = vmatmul.mubr.f32.gmra.mrb[64].mxu0 %v20621_v60 }
 0x72c   : > { %10737 = vmatmul.mubr.f32.gmra.mrb[64].mxu1 %v20621_v60  ;;  %9934 = vmatprep.mubr.f32.mxu0 %v20306_v56 }
 0x72d   : > { %10742 = vmatprep.mubr.f32.mxu1 %v20306_v56 }
 0x72f   : > { %9936 = vmatmul.mubr.f32.gmra.mrb[66].mxu0 %v20622_v16 }
 0x730   : > { %10744 = vmatmul.mubr.f32.gmra.mrb[66].mxu1 %v20622_v16  ;;  %10008 = vmatprep.mubr.f32.mxu0 %v20306_v56 }
 0x731   : > { %10816 = vmatprep.mubr.f32.mxu1 %v20306_v56 }
 0x733   : > { %10010 = vmatmul.mubr.f32.vlgmr.msra.gmra.mrb[52].mxu0 %v20615_v45 }
 0x734   : > { %10818 = vmatmul.mubr.f32.vlgmr.msra.gmra.mrb[52].mxu1 %v20615_v45  ;;  %10015 = vmatprep.mubr.f32.mxu0 %v20306_v56 }
 0x735   : > { %10823 = vmatprep.mubr.f32.mxu1 %v20306_v56 }
 0x737   : > { %10017 = vmatmul.mubr.f32.gmra.mrb[54].mxu0 %v20616_v7 }
 0x738   : > { %10825 = vmatmul.mubr.f32.gmra.mrb[54].mxu1 %v20616_v7  ;;  %10022 = vmatprep.mubr.f32.mxu0 %v20306_v56 }
 0x739   : > { %10830 = vmatprep.mubr.f32.mxu1 %v20306_v56 }
 0x73b   : > { %10024 = vmatmul.mubr.f32.gmra.mrb[56].mxu0 %v20617_v63 }
 0x73c   : > { %10832 = vmatmul.mubr.f32.gmra.mrb[56].mxu1 %v20617_v63  ;;  %10029 = vmatprep.mubr.f32.mxu0 %v20306_v56 }
 0x73d   : > { %10837 = vmatprep.mubr.f32.mxu1 %v20306_v56 }
 0x73f   : > { %10031 = vmatmul.mubr.f32.gmra.mrb[58].mxu0 %v20618_v11 }
 0x740   : > { %10839 = vmatmul.mubr.f32.gmra.mrb[58].mxu1 %v20618_v11  ;;  %10036 = vmatprep.mubr.f32.mxu0 %v20306_v56 }
 0x741   : > { %10844 = vmatprep.mubr.f32.mxu1 %v20306_v56 }
 0x743   : > { %10038 = vmatmul.mubr.f32.gmra.mrb[60].mxu0 %v20619_v59 }
 0x744   : > { %10846 = vmatmul.mubr.f32.gmra.mrb[60].mxu1 %v20619_v59  ;;  %10043 = vmatprep.mubr.f32.mxu0 %v20306_v56 }
 0x745   : > { %10851 = vmatprep.mubr.f32.mxu1 %v20306_v56 }
 0x747   : > { %10045 = vmatmul.mubr.f32.gmra.mrb[62].mxu0 %v20620_v42 }
 0x748   : > { %10853 = vmatmul.mubr.f32.gmra.mrb[62].mxu1 %v20620_v42  ;;  %10050 = vmatprep.mubr.f32.mxu0 %v20306_v56  ;;  %v20640_v42 = vld [vmem:[#allocation69_spill] sm:$0xff] }
 0x749   : > { %10858 = vmatprep.mubr.f32.mxu1 %v20306_v56 }
 0x74b   : > { %10052 = vmatmul.mubr.f32.gmra.mrb[64].mxu0 %v20621_v60 }
 0x74c   : > { %10860 = vmatmul.mubr.f32.gmra.mrb[64].mxu1 %v20621_v60  ;;  %10057 = vmatprep.mubr.f32.mxu0 %v20306_v56 }
 0x74d   : > { %10865 = vmatprep.mubr.f32.mxu1 %v20306_v56 }
 0x74f   : > { %10059 = vmatmul.mubr.f32.gmra.mrb[66].mxu0 %v20622_v16 }
 0x750   : > { %10867 = vmatmul.mubr.f32.gmra.mrb[66].mxu1 %v20622_v16  ;;  %10985 = vmatprep.mubr.f32.mxu0 %v20306_v56 }
 0x751   : > { %11779 = vmatprep.mubr.f32.mxu1 %v20306_v56 }
 0x762   : > { %v8647_v4 = vpop.f32.mrb[50].mxu0 }
 0x763   : > { %v14700_v35 = vadd.f32 %v8647_v4, %v20639_v29  ;;  %v9190_v0 = vpop.f32.mrb[50].mxu1  ;;  %v8649_v33 = vpop.f32.mrb[51].mxu0 }
 0x764   : > { %v14702_v2 = vadd.f32 %v9190_v0, %v20639_v29  ;;  %v14701_v53 = vadd.f32 %v8649_v33, %v20639_v29  ;;  %v9192_v23 = vpop.f32.mrb[51].mxu1  ;;  %v20643_v0 = vld [vmem:[#allocation53_spill] sm:$0xff] }
 0x765   : > { %v9195_v43 = vmul.f32 0.5, %v14700_v35  ;;  %v14703_v25 = vadd.f32 %v9192_v23, %v20639_v29 }
 0x766   : > { %v9197_v21 = vmul.f32 0.5, %v14702_v2  ;;  %v9196_v10 = vmul.f32 0.5, %v14701_v53 }
 0x767   : > { %15598 = vtanh.f32 %v9195_v43  ;;  %v9198_v3 = vmul.f32 0.5, %v14703_v25 }
 0x768   : > { %15600 = vtanh.f32 %v9197_v21 }
 0x769   : > { %15602 = vtanh.f32 %v9196_v10 }
 0x76a   : > { %15604 = vtanh.f32 %v9198_v3 }
 0x771   : > { %v15599_v52 = vpop.eup %15598 }
 0x772   : > { %v15601_v54 = vpop.eup %15600  ;;  %v9203_v58 = vadd.f32 1.0, %v15599_v52 }
 0x773   : > { %v15603_v27 = vpop.eup %15602  ;;  %v9205_v18 = vadd.f32 1.0, %v15601_v54 }
 0x774   : > { %v15605_v14 = vpop.eup %15604  ;;  %v9207_v30 = vmul.f32 0.5, %v9203_v58  ;;  %v9204_v57 = vadd.f32 1.0, %v15603_v27 }
 0x775   : > { %v9209_v26 = vmul.f32 0.5, %v9205_v18  ;;  %v9206_v45 = vadd.f32 1.0, %v15605_v14 }
 0x776   : > { %v9208_v7 = vmul.f32 0.5, %v9204_v57 }
 0x777   : > { %v9210_v63 = vmul.f32 0.5, %v9206_v45 }
 0x778   : > { %v9215_v11 = vcombine.low %v9207_v30, %v9208_v7 }
 0x779   : > { %v9216_v59 = vcombine.low %v9209_v26, %v9210_v63 }
 0x77a   : > { %v9223_v60 = vrot.slane %v9215_v11, %v20640_v42 }
 0x77b   : > { %v9230_v16 = vrot.slane %v9216_v59, %v20640_v42 }
 0x77d   : > { %v9231_v61 = vcombine.low %v9223_v60, %v9230_v16 }
 0x77f   : > { %v9238_v13 = vrot.slane %v9231_v61, %v20640_v42 }
 0x781   : > { %9240 = vst.msk [vmem:[%s17611_s9 + $0x4] sm:$0xf] %vm17606_vm4, %v9238_v13 }
 0x806   : > { %v10011_v44 = vpop.f32.mrb[52].mxu0 }
 0x807   : > { %v14704_v17 = vadd.f32 %v10011_v44, %v20642_v38  ;;  %v10819_v8 = vpop.f32.mrb[52].mxu1  ;;  %v10013_v50 = vpop.f32.mrb[53].mxu0 }
 0x808   : > { %v14720_v12 = vadd.f32 %v10819_v8, %v20642_v38  ;;  %v14705_v24 = vadd.f32 %v10013_v50, %v20642_v38  ;;  %v10821_v1 = vpop.f32.mrb[53].mxu1 }
 0x809   : > { %v10873_v20 = vmax.f32 %v14704_v17, 0.0  ;;  %v14721_v34 = vadd.f32 %v10821_v1, %v20642_v38 }
 0x80a   : > { %v10875_v46 = vmax.f32 %v14720_v12, 0.0  ;;  %v10874_v40 = vmax.f32 %v14705_v24, 0.0  ;;  %v10018_v39 = vpop.f32.mrb[54].mxu0 }
 0x80b   : > { %v10907_v4 = vand.u32 4294901760, %v10873_v20  ;;  %v10876_v35 = vmax.f32 %v14721_v34, 0.0  ;;  %v14706_v33 = vadd.f32 %v10018_v39, %v20643_v0  ;;  %v10826_v2 = vpop.f32.mrb[54].mxu1  ;;  %v10020_v53 = vpop.f32.mrb[55].mxu0 }
 0x80c   : > { %v11701_v23 = vand.u32 4294901760, %v10875_v46  ;;  %v18819_v43 = vand.u32 4294901760, %v10874_v40  ;;  %v14722_v25 = vadd.f32 %v10826_v2, %v20643_v0  ;;  %v14707_v21 = vadd.f32 %v10020_v53, %v20643_v0  ;;  %v10828_v10 = vpop.f32.mrb[55].mxu1 }
 0x80d   : > { %v18823_v3 = vsub.f32 %v10873_v20, %v10907_v4  ;;  %v18825_v52 = vand.u32 4294901760, %v10876_v35  ;;  %v10877_v54 = vmax.f32 %v14706_v33, 0.0  ;;  %v14723_v58 = vadd.f32 %v10828_v10, %v20643_v0 }
 0x80e   : > { %v18828_v27 = vsub.f32 %v10875_v46, %v11701_v23  ;;  %v10879_v18 = vmax.f32 %v14722_v25, 0.0  ;;  %v10878_v14 = vmax.f32 %v14707_v21, 0.0  ;;  %v10025_v30 = vpop.f32.mrb[56].mxu0  ;;  %v18832_v26 = vsub.f32 %v10874_v40, %v18819_v43  ;;  %v20646_v46 = vld [vmem:[#allocation55_spill] sm:$0xff] }
 0x80f   : > { %v20119_v57 = vand.u32 4294901760, %v18823_v3  ;;  %v10911_v45 = vand.u32 4294901760, %v10877_v54  ;;  %v10880_v7 = vmax.f32 %v14723_v58, 0.0  ;;  %v10833_v63 = vpop.f32.mrb[56].mxu1  ;;  %v10027_v11 = vpop.f32.mrb[57].mxu0  ;;  %v18836_v60 = vsub.f32 %v10876_v35, %v18825_v52 }
 0x810   : > { %v20118_v59 = vand.u32 4294901760, %v18828_v27  ;;  %v11705_v16 = vand.u32 4294901760, %v10879_v18  ;;  %v18838_v61 = vand.u32 4294901760, %v10878_v14  ;;  %v10835_v13 = vpop.f32.mrb[57].mxu1  ;;  %v14708_v40 = vadd.f32 %v10025_v30, %v20646_v46 }
 0x811   : > { %v18843_v44 = vsub.f32 %v18823_v3, %v20119_v57  ;;  %v18845_v38 = vpack.c.bf16 %v10911_v45, %v10907_v4  ;;  %v18847_v17 = vsub.f32 %v10877_v54, %v10911_v45  ;;  %v18862_v34 = vand.u32 4294901760, %v10880_v7 }
 0x812   : > { %v18852_v8 = vsub.f32 %v18828_v27, %v20118_v59  ;;  %v18854_v50 = vpack.c.bf16 %v11705_v16, %v11701_v23  ;;  %v18856_v12 = vsub.f32 %v10879_v18, %v11705_v16  ;;  %v18859_v24 = vsub.f32 %v10878_v14, %v18838_v61  ;;  %v10032_v1 = vpop.f32.mrb[58].mxu0  ;;  %v20647_v14 = vld [vmem:[#allocation61_spill] sm:$0xff] }
 0x813   : > { %20644 = vst [vmem:[#allocation56_spill] sm:$0xff] %v18845_v38  ;;  %v20120_v20 = vand.u32 4294901760, %v18847_v17  ;;  %v10840_v39 = vpop.f32.mrb[58].mxu1  ;;  %v10034_v4 = vpop.f32.mrb[59].mxu0  ;;  %v14724_v2 = vadd.f32 %v10833_v63, %v20646_v46  ;;  %v10881_v21 = vmax.f32 %v14708_v40, 0.0  ;;  %v14709_v10 = vadd.f32 %v10027_v11, %v20646_v46 }
 0x814   : > { %20645 = vst [vmem:[#allocation66_spill] sm:$0xff] %v18854_v50  ;;  %v20121_v33 = vand.u32 4294901760, %v18856_v12  ;;  %v10842_v53 = vpop.f32.mrb[59].mxu1  ;;  %v14725_v18 = vadd.f32 %v10835_v13, %v20646_v46  ;;  %v14710_v30 = vadd.f32 %v10032_v1, %v20647_v14  ;;  %v18881_v16 = vsub.f32 %v10880_v7, %v18862_v34 }
 0x815   : > { %v10883_v58 = vmax.f32 %v14724_v2, 0.0  ;;  %v18878_v63 = vsub.f32 %v18847_v17, %v20120_v20  ;;  %v10915_v59 = vand.u32 4294901760, %v10881_v21  ;;  %v10882_v40 = vmax.f32 %v14709_v10, 0.0 }
 0x816   : > { %v10039_v45 = vpop.f32.mrb[60].mxu0  ;;  %v18886_v2 = vsub.f32 %v18856_v12, %v20121_v33  ;;  %v10884_v1 = vmax.f32 %v14725_v18, 0.0  ;;  %v10885_v46 = vmax.f32 %v14710_v30, 0.0  ;;  %v14726_v7 = vadd.f32 %v10840_v39, %v20647_v14 }
 0x817   : > { %v10847_v57 = vpop.f32.mrb[60].mxu1  ;;  %v10041_v11 = vpop.f32.mrb[61].mxu0  ;;  %v11709_v13 = vand.u32 4294901760, %v10883_v58  ;;  %v18888_v23 = vsub.f32 %v10881_v21, %v10915_v59  ;;  %v18890_v20 = vand.u32 4294901760, %v10882_v40  ;;  %v14711_v0 = vadd.f32 %v10034_v4, %v20647_v14 }
 0x818   : > { %v10849_v25 = vpop.f32.mrb[61].mxu1  ;;  %v18896_v54 = vand.u32 4294901760, %v10884_v1  ;;  %v10919_v35 = vand.u32 4294901760, %v10885_v46  ;;  %v14727_v33 = vadd.f32 %v10842_v53, %v20647_v14  ;;  %v10887_v21 = vmax.f32 %v14726_v7, 0.0 }
 0x819   : > { %v18894_v10 = vsub.f32 %v10883_v58, %v11709_v13  ;;  %v20128_v18 = vand.u32 4294901760, %v18888_v23  ;;  %v18901_v30 = vsub.f32 %v10882_v40, %v18890_v20  ;;  %v10886_v42 = vmax.f32 %v14711_v0, 0.0 }
 0x81a   : > { %v10046_v9 = vpop.f32.mrb[62].mxu0  ;;  %v18905_v4 = vsub.f32 %v10884_v1, %v18896_v54  ;;  %v18907_v58 = vpack.c.bf16 %v10919_v35, %v10915_v59  ;;  %v18909_v55 = vsub.f32 %v10885_v46, %v10919_v35  ;;  %v11713_v0 = vand.u32 4294901760, %v10887_v21 }
 0x81b   : > { %20648 = vst [vmem:[#allocation76_spill] sm:$0xff] %v18894_v10  ;;  %v10854_v29 = vpop.f32.mrb[62].mxu1  ;;  %v10048_v32 = vpop.f32.mrb[63].mxu0  ;;  %v18915_v40 = vsub.f32 %v18888_v23, %v20128_v18  ;;  %v18917_v7 = vand.u32 4294901760, %v10886_v42  ;;  %v20650_v1 = vand.u32 4294901760, %v18894_v10  ;;  %v10888_v46 = vmax.f32 %v14727_v33, 0.0 }
 0x81c   : > { %20649 = vst [vmem:[#allocation82_spill] sm:$0xff] %v18907_v58  ;;  %v10856_v53 = vpop.f32.mrb[63].mxu1  ;;  %v18929_v48 = vpack.c.bf16 %v11713_v0, %v11709_v13  ;;  %v18931_v18 = vsub.f32 %v10887_v21, %v11713_v0  ;;  %v20653_v33 = vand.u32 4294901760, %v18909_v55  ;;  %v18949_v13 = vpack.c.bf16 %v18838_v61, %v18819_v43 }
 0x81d   : > { %v18923_v59 = vsub.f32 %v18894_v10, %v20650_v1  ;;  %v18934_v36 = vsub.f32 %v10886_v42, %v18917_v7  ;;  %v11711_v0 = vand.u32 4294901760, %v10888_v46  ;;  %v18956_v14 = vpack.c.bf16 %v18862_v34, %v18825_v52  ;;  %v20656_v1 = vld [vmem:[#allocation70_spill] sm:$0xff] }
 0x81e   : > { %v18926_v37 = vpop.f32.mrb[64].mxu0  ;;  %20651 = vst [vmem:[#allocation84_spill] sm:$0xff] %v18929_v48  ;;  %20652 = vst [vmem:[#allocation88_spill] sm:$0xff] %v18931_v18  ;;  %v18945_v5 = vsub.f32 %v18909_v55, %v20653_v33  ;;  %v14712_v35 = vadd.f32 %v10039_v45, %v20656_v1  ;;  %14313 = vmatprep.subr.bf16.mxu0 %v18949_v13  ;;  %v14728_v43 = vadd.f32 %v10847_v57, %v20656_v1  ;;  %v20657_v45 = vld [vmem:[#allocation71_spill] sm:$0xff] }
 0x81f   : > { %v18936_v39 = vpop.f32.mrb[64].mxu1  ;;  %v18938_v51 = vpop.f32.mrb[65].mxu0  ;;  %20654 = vst [vmem:[#allocation83_spill] sm:$0xff] %v18949_v13  ;;  %20655 = vst [vmem:[#allocation74_spill] sm:$0xff] %v18956_v14  ;;  %v14713_v61 = vadd.f32 %v10041_v11, %v20656_v1  ;;  %14409 = vmatprep.subr.bf16.mxu1 %v18956_v14  ;;  %14315 = vmatpush1.bf16.msra.mxu0 %v18845_v38  ;;  %v14729_v34 = vadd.f32 %v10849_v25, %v20656_v1  ;;  %v20658_v57 = vand.u32 4294901760, %v18931_v18 }
 0x820   : > { %v18951_v21 = vpop.f32.mrb[65].mxu1  ;;  %v10889_v52 = vmax.f32 %v14712_v35, 0.0  ;;  %v14714_v28 = vadd.f32 %v10046_v9, %v20657_v45  ;;  %14411 = vmatpush1.bf16.msra.mxu1 %v18854_v50  ;;  %v10891_v11 = vmax.f32 %v14728_v43, 0.0  ;;  %v14730_v42 = vadd.f32 %v10854_v29, %v20657_v45 }
 0x821   : > { %v10890_v22 = vmax.f32 %v14713_v61, 0.0  ;;  %v18980_v38 = vsub.f32 %v10888_v46, %v11711_v0  ;;  %v10892_v25 = vmax.f32 %v14729_v34, 0.0  ;;  %v14715_v6 = vadd.f32 %v10048_v32, %v20657_v45 }
 0x822   : > { %v18964_v15 = vpop.f32.mrb[66].mxu0  ;;  %v10923_v35 = vand.u32 4294901760, %v10889_v52  ;;  %v10893_v1 = vmax.f32 %v14714_v28, 0.0  ;;  %v11717_v9 = vand.u32 4294901760, %v10891_v11  ;;  %v10895_v41 = vmax.f32 %v14730_v42, 0.0 }
 0x823   : > { %v18971_v33 = vpop.f32.mrb[66].mxu1  ;;  %v18973_v62 = vpop.f32.mrb[67].mxu0  ;;  %v18982_v13 = vand.u32 4294901760, %v10890_v22  ;;  %v18988_v43 = vsub.f32 %v18931_v18, %v20658_v57  ;;  %v18992_v29 = vand.u32 4294901760, %v10892_v25  ;;  %v10894_v28 = vmax.f32 %v14715_v6, 0.0 }
 0x824   : > { %v18978_v14 = vpop.f32.mrb[67].mxu1  ;;  %v18990_v61 = vsub.f32 %v10889_v52, %v10923_v35  ;;  %v10927_v46 = vand.u32 4294901760, %v10893_v1  ;;  %v18994_v50 = vsub.f32 %v10891_v11, %v11717_v9  ;;  %v11721_v34 = vand.u32 4294901760, %v10895_v41 }
 0x825   : > { %v14731_v47 = vadd.f32 %v10856_v53, %v20657_v45  ;;  %v18999_v32 = vsub.f32 %v10890_v22, %v18982_v13  ;;  %v19007_v19 = vsub.f32 %v10892_v25, %v18992_v29  ;;  %v19020_v45 = vand.u32 4294901760, %v10894_v28 }
 0x826   : > { %20659 = vst [vmem:[#allocation59_spill] sm:$0xff] %v18990_v61  ;;  %20660 = vst [vmem:[#allocation78_spill] sm:$0xff] %v18994_v50  ;;  %v20151_v42 = vand.u32 4294901760, %v18990_v61  ;;  %v19001_v31 = vpack.c.bf16 %v10927_v46, %v10923_v35  ;;  %v19003_v57 = vsub.f32 %v10893_v1, %v10927_v46  ;;  %v20152_v52 = vand.u32 4294901760, %v18994_v50 }
 0x827   : > { %v19009_v11 = vpack.c.bf16 %v11721_v34, %v11717_v9  ;;  %v19011_v18 = vsub.f32 %v10895_v41, %v11721_v34  ;;  %v10896_v41 = vmax.f32 %v14731_v47, 0.0  ;;  %v19030_v1 = vpack.c.bf16 %v18917_v7, %v18890_v20  ;;  %v20667_v20 = vld [vmem:[#allocation79_spill] sm:$0xff]  ;;  %v20668_v9 = vld [vmem:[#allocation81_spill] sm:$0xff] }
 0x828   : > { %20661 = vst [vmem:[#allocation89_spill] sm:$0xff] %v19001_v31  ;;  %20662 = vst [vmem:[#allocation90_spill] sm:$0xff] %v19003_v57  ;;  %v19017_v22 = vsub.f32 %v18990_v61, %v20151_v42  ;;  %v20153_v53 = vand.u32 4294901760, %v19003_v57  ;;  %v19025_v35 = vsub.f32 %v18994_v50, %v20152_v52  ;;  %v19040_v42 = vpack.c.bf16 %v11711_v0, %v18896_v54 }
 0x829   : > { %20663 = vst [vmem:[#allocation80_spill] sm:$0xff] %v19009_v11  ;;  %20664 = vst [vmem:[#allocation64_spill] sm:$0xff] %v19011_v18  ;;  %v20154_v25 = vand.u32 4294901760, %v19011_v18  ;;  %v19045_v6 = vsub.f32 %v10894_v28, %v19020_v45  ;;  %14317 = vmatprep.subr.bf16.mxu0 %v19030_v1  ;;  %v14716_v7 = vadd.f32 %v18926_v37, %v20667_v20  ;;  %v11719_v37 = vand.u32 4294901760, %v10896_v41 }
 0x82a   : > { %20665 = vst [vmem:[#allocation92_spill] sm:$0xff] %v19030_v1  ;;  %v19037_v34 = vsub.f32 %v19003_v57, %v20153_v53  ;;  %20666 = vst [vmem:[#allocation85_spill] sm:$0xff] %v19040_v42  ;;  %14413 = vmatprep.subr.bf16.mxu1 %v19040_v42  ;;  %14319 = vmatpush1.bf16.msra.mxu0 %v18907_v58  ;;  %v14732_v54 = vadd.f32 %v18936_v39, %v20667_v20 }
 0x82b   : > { %v19054_v53 = vsub.f32 %v19011_v18, %v20154_v25  ;;  %v14717_v0 = vadd.f32 %v18938_v51, %v20667_v20  ;;  %14415 = vmatpush1.bf16.msra.mxu1 %v18929_v48  ;;  %v10897_v46 = vmax.f32 %v14716_v7, 0.0  ;;  %v14733_v25 = vadd.f32 %v18951_v21, %v20667_v20 }
 0x82c   : > { %v10899_v52 = vmax.f32 %v14732_v54, 0.0  ;;  %v14718_v58 = vadd.f32 %v18964_v15, %v20668_v9  ;;  %v14734_v39 = vadd.f32 %v18971_v33, %v20668_v9  ;;  %v14719_v28 = vadd.f32 %v18973_v62, %v20668_v9 }
 0x82d   : > { %v10898_v47 = vmax.f32 %v14717_v0, 0.0  ;;  %v10931_v51 = vand.u32 4294901760, %v10897_v46  ;;  %v10900_v1 = vmax.f32 %v14733_v25, 0.0  ;;  %v14735_v15 = vadd.f32 %v18978_v14, %v20668_v9 }
 0x82e   : > { %v11725_v48 = vand.u32 4294901760, %v10899_v52  ;;  %v10901_v18 = vmax.f32 %v14718_v58, 0.0  ;;  %v10903_v50 = vmax.f32 %v14734_v39, 0.0  ;;  %v10902_v54 = vmax.f32 %v14719_v28, 0.0 }
 0x82f   : > { %v10929_v7 = vand.u32 4294901760, %v10898_v47  ;;  %v19073_v21 = vsub.f32 %v10897_v46, %v10931_v51  ;;  %v11723_v20 = vand.u32 4294901760, %v10900_v1  ;;  %v19077_v0 = vsub.f32 %v10896_v41, %v11719_v37 }
 0x830   : > { %v19079_v33 = vsub.f32 %v10899_v52, %v11725_v48  ;;  %v10935_v42 = vand.u32 4294901760, %v10901_v18  ;;  %v11729_v25 = vand.u32 4294901760, %v10903_v50  ;;  %v10933_v61 = vand.u32 4294901760, %v10902_v54 }
 0x831   : > { %v20173_v57 = vand.u32 4294901760, %v19073_v21  ;;  %v19082_v62 = vsub.f32 %v10898_v47, %v10929_v7  ;;  %v10904_v58 = vmax.f32 %v14735_v15, 0.0  ;;  %v19085_v39 = vsub.f32 %v10900_v1, %v11723_v20 }
 0x832   : > { %v20174_v46 = vand.u32 4294901760, %v19079_v33  ;;  %v19087_v28 = vpack.c.bf16 %v10935_v42, %v10931_v51  ;;  %v19089_v10 = vsub.f32 %v10901_v18, %v10935_v42  ;;  %v19097_v41 = vpack.c.bf16 %v11729_v25, %v11725_v48 }
 0x833   : > { %v19095_v52 = vsub.f32 %v19073_v21, %v20173_v57  ;;  %v19099_v9 = vsub.f32 %v10903_v50, %v11729_v25  ;;  %v19103_v15 = vsub.f32 %v10902_v54, %v10933_v61  ;;  %v11727_v51 = vand.u32 4294901760, %v10904_v58 }
 0x834   : > { %20669 = vst [vmem:[#allocation87_spill] sm:$0xff] %v19087_v28  ;;  %v20175_v1 = vand.u32 4294901760, %v19089_v10  ;;  %v19109_v14 = vpack.c.bf16 %v19020_v45, %v18982_v13  ;;  %v19112_v48 = vpack.c.bf16 %v11719_v37, %v18992_v29  ;;  %v19117_v50 = vsub.f32 %v19079_v33, %v20174_v46 }
 0x835   : > { %v20176_v42 = vand.u32 4294901760, %v19099_v9  ;;  %v19125_v57 = vsub.f32 %v10904_v58, %v11727_v51  ;;  %v19131_v29 = vpack.c.bf16 %v10933_v61, %v10929_v7  ;;  %v19133_v37 = vpack.c.bf16 %v11727_v51, %v11723_v20 }
 0x836   : > { %20670 = vst [vmem:[#allocation93_spill] sm:$0xff] %v19112_v48  ;;  %v19123_v25 = vsub.f32 %v19089_v10, %v20175_v1  ;;  %14321 = vmatprep.subr.bf16.mxu0 %v19109_v14  ;;  %14417 = vmatprep.subr.bf16.mxu1 %v19112_v48  ;;  %v20673_v58 = vand.u32 4294901760, %v18832_v26  ;;  %v20674_v61 = vand.u32 4294901760, %v18859_v24  ;;  %v20675_v51 = vand.u32 4294901760, %v18836_v60 }
 0x837   : > { %20671 = vst [vmem:[#allocation94_spill] sm:$0xff] %v19131_v29  ;;  %20672 = vst [vmem:[#allocation91_spill] sm:$0xff] %v19133_v37  ;;  %v19139_v1 = vsub.f32 %v19099_v9, %v20176_v42  ;;  %14323 = vmatpush1.bf16.msra.mxu0 %v19001_v31  ;;  %14419 = vmatpush1.bf16.msra.mxu1 %v19009_v11  ;;  %v20676_v46 = vand.u32 4294901760, %v18881_v16  ;;  %v20678_v45 = vand.u32 4294901760, %v18878_v63  ;;  %v20679_v20 = vand.u32 4294901760, %v18852_v8 }
 0x838   : > { %v11033_v13 = vsub.f32 %v18832_v26, %v20673_v58  ;;  %v11045_v7 = vsub.f32 %v18859_v24, %v20674_v61  ;;  %14325 = vmatprep.subr.bf16.mxu0 %v19131_v29  ;;  %14421 = vmatprep.subr.bf16.mxu1 %v19133_v37  ;;  %v11827_v42 = vsub.f32 %v18836_v60, %v20675_v51  ;;  %v20677_v58 = vand.u32 4294901760, %v18843_v44 }
 0x839   : > { %v11839_v54 = vsub.f32 %v18881_v16, %v20676_v46  ;;  %v20680_v29 = vand.u32 4294901760, %v18886_v2  ;;  %v20681_v11 = vand.u32 4294901760, %v18901_v30  ;;  %v20682_v46 = vand.u32 4294901760, %v18934_v36 }
 0x83a   : > { %v14330_v18 = vpack.c.bf16 %v20678_v45, %v20677_v58  ;;  %v11034_v61 = vand.u32 4294901760, %v11033_v13  ;;  %v11046_v47 = vand.u32 4294901760, %v11045_v7  ;;  %v11828_v31 = vand.u32 4294901760, %v11827_v42 }
 0x83b   : > { %v14426_v37 = vpack.c.bf16 %v20680_v29, %v20679_v20  ;;  %v11057_v51 = vsub.f32 %v18901_v30, %v20681_v11  ;;  %v11840_v48 = vand.u32 4294901760, %v11839_v54  ;;  %v11069_v44 = vsub.f32 %v18934_v36, %v20682_v46  ;;  %14327 = vmatpush1.bf16.msra.mxu0 %v19087_v28  ;;  %14423 = vmatpush1.bf16.msra.mxu1 %v19097_v41 }
 0x83c   : > { %v20683_v63 = vand.u32 4294901760, %v18905_v4  ;;  %v14328_v8 = vpack.c.bf16 %v11046_v47, %v11034_v61  ;;  %v20684_v45 = vand.u32 4294901760, %v18980_v38  ;;  %v20685_v42 = vand.u32 4294901760, %v18915_v40 }
 0x83d   : > { %v11058_v2 = vand.u32 4294901760, %v11057_v51  ;;  %v20686_v54 = vand.u32 4294901760, %v18945_v5  ;;  %v14424_v7 = vpack.c.bf16 %v11840_v48, %v11828_v31  ;;  %v11070_v20 = vand.u32 4294901760, %v11069_v44 }
 0x83e   : > { %v11851_v13 = vsub.f32 %v18905_v4, %v20683_v63  ;;  %v11863_v11 = vsub.f32 %v18980_v38, %v20684_v45  ;;  %v20687_v46 = vand.u32 4294901760, %v18923_v59  ;;  %v20688_v63 = vand.u32 4294901760, %v18988_v43  ;;  %14329 = vmatprep.subr.bf16.mxu0 %v14328_v8  ;;  %10991 = vmatmul.mubr.f32.vlgmr.msra.gmra.mrb[68].mxu0 %v20499_v49 }
 0x83f   : > { %v14334_v29 = vpack.c.bf16 %v20686_v54, %v20685_v42  ;;  %v20689_v61 = vand.u32 4294901760, %v18999_v32  ;;  %v20690_v45 = vand.u32 4294901760, %v19045_v6  ;;  %v20691_v5 = vand.u32 4294901760, %v19007_v19  ;;  %14425 = vmatprep.subr.bf16.mxu1 %v14424_v7  ;;  %11785 = vmatmul.mubr.f32.vlgmr.msra.gmra.mrb[68].mxu1 %v20499_v49 }
 0x840   : > { %v11852_v58 = vand.u32 4294901760, %v11851_v13  ;;  %v14430_v28 = vpack.c.bf16 %v20688_v63, %v20687_v46  ;;  %v11864_v47 = vand.u32 4294901760, %v11863_v11  ;;  %v11918_v48 = vand.u32 4294901760, %v19139_v1  ;;  %14331 = vmatpush1.bf16.msra.mxu0 %v14330_v18  ;;  %14427 = vmatpush1.bf16.msra.mxu1 %v14426_v37 }
 0x841   : > { %v11081_v51 = vsub.f32 %v18999_v32, %v20689_v61  ;;  %v11093_v40 = vsub.f32 %v19045_v6, %v20690_v45  ;;  %v11875_v31 = vsub.f32 %v19007_v19, %v20691_v5  ;;  %v14332_v59 = vpack.c.bf16 %v11070_v20, %v11058_v2  ;;  %10996 = vmatprep.mubr.f32.mxu0 %v20306_v56 }
 0x842   : > { %v20692_v43 = vand.u32 4294901760, %v19077_v0  ;;  %v20693_v13 = vand.u32 4294901760, %v19017_v22  ;;  %v20694_v8 = vand.u32 4294901760, %v19037_v34  ;;  %v14428_v42 = vpack.c.bf16 %v11864_v47, %v11852_v58  ;;  %11790 = vmatprep.mubr.f32.mxu1 %v20306_v56 }
 0x843   : > { %v11082_v54 = vand.u32 4294901760, %v11081_v51  ;;  %v11094_v46 = vand.u32 4294901760, %v11093_v40  ;;  %v11876_v1 = vand.u32 4294901760, %v11875_v31  ;;  %14333 = vmatprep.subr.bf16.mxu0 %v14332_v59  ;;  %v20695_v2 = vand.u32 4294901760, %v19025_v35  ;;  %v20701_v51 = vld [vmem:[#allocation58_spill] sm:$0xff] }
 0x844   : > { %v11887_v44 = vsub.f32 %v19077_v0, %v20692_v43  ;;  %v14338_v11 = vpack.c.bf16 %v20694_v8, %v20693_v13  ;;  %v20696_v20 = vand.u32 4294901760, %v19054_v53  ;;  %v20697_v22 = vand.u32 4294901760, %v19082_v62  ;;  %14429 = vmatprep.subr.bf16.mxu1 %v14428_v42  ;;  %11002 = vmatmul.mubr.f32.gmra.mrb[70].mxu0 %v20701_v51 }
 0x845   : > { %v20698_v61 = vand.u32 4294901760, %v19103_v15  ;;  %v11906_v18 = vand.u32 4294901760, %v19117_v50  ;;  %v14336_v37 = vpack.c.bf16 %v11094_v46, %v11082_v54  ;;  %v20699_v58 = vand.u32 4294901760, %v19085_v39  ;;  %11796 = vmatmul.mubr.f32.gmra.mrb[70].mxu1 %v20701_v51  ;;  %14335 = vmatpush1.bf16.msra.mxu0 %v14334_v29 }
 0x846   : > { %v11888_v7 = vand.u32 4294901760, %v11887_v44  ;;  %v14434_v63 = vpack.c.bf16 %v20696_v20, %v20695_v2  ;;  %v11105_v34 = vsub.f32 %v19082_v62, %v20697_v22  ;;  %v20700_v53 = vand.u32 4294901760, %v19125_v57  ;;  %14431 = vmatpush1.bf16.msra.mxu1 %v14430_v28  ;;  %11007 = vmatprep.mubr.f32.mxu0 %v20306_v56  ;;  %v20704_v28 = vld [vmem:[#allocation60_spill] sm:$0xff] }
 0x847   : > { %v11117_v49 = vsub.f32 %v19103_v15, %v20698_v61  ;;  %v11899_v35 = vsub.f32 %v19085_v39, %v20699_v58  ;;  %v20702_v50 = vand.u32 4294901760, %v19095_v52  ;;  %v20703_v31 = vand.u32 4294901760, %v19123_v25  ;;  %14337 = vmatprep.subr.bf16.mxu0 %v14336_v37  ;;  %11801 = vmatprep.mubr.f32.mxu1 %v20306_v56  ;;  %v20706_v2 = vld [vmem:[#allocation88_spill] sm:$0xff]  ;;  %v20707_v61 = vld [vmem:[#allocation59_spill] sm:$0xff]  ;;  %v20709_v37 = vld [vmem:[#allocation78_spill] sm:$0xff] }
 0x848   : > { %v11911_v47 = vsub.f32 %v19125_v57, %v20700_v53  ;;  %v14432_v45 = vpack.c.bf16 %v11888_v7, %v11876_v1  ;;  %v11106_v40 = vand.u32 4294901760, %v11105_v34  ;;  %v14438_v13 = vpack.c.bf16 %v11918_v48, %v11906_v18  ;;  %11013 = vmatmul.mubr.f32.gmra.mrb[72].mxu0 %v20704_v28  ;;  %v20705_v7 = vld [vmem:[#allocation76_spill] sm:$0xff] }
 0x849   : > { %v11118_v5 = vand.u32 4294901760, %v11117_v49  ;;  %v14342_v59 = vpack.c.bf16 %v20703_v31, %v20702_v50  ;;  %v11900_v43 = vand.u32 4294901760, %v11899_v35  ;;  %v14344_v8 = vpack.c.bf16 %v18859_v24, %v18832_v26  ;;  %11807 = vmatmul.mubr.f32.gmra.mrb[72].mxu1 %v20704_v28  ;;  %14339 = vmatpush1.bf16.msra.mxu0 %v14338_v11  ;;  %v20708_v49 = vld [vmem:[#allocation90_spill] sm:$0xff]  ;;  %v20710_v58 = vld [vmem:[#allocation64_spill] sm:$0xff] }
 0x84a   : > { %v11912_v44 = vand.u32 4294901760, %v11911_v47  ;;  %v14440_v54 = vpack.c.bf16 %v18881_v16, %v18836_v60  ;;  %v14346_v52 = vpack.c.bf16 %v18847_v17, %v18823_v3  ;;  %14433 = vmatprep.subr.bf16.mxu1 %v14432_v45  ;;  %v14442_v29 = vpack.c.bf16 %v18856_v12, %v18828_v27  ;;  %11018 = vmatprep.mubr.f32.mxu0 %v20306_v56 }
 0x84b   : > { %v14340_v42 = vpack.c.bf16 %v11118_v5, %v11106_v40  ;;  %v14348_v48 = vpack.c.bf16 %v18934_v36, %v18901_v30  ;;  %v14444_v46 = vpack.c.bf16 %v18980_v38, %v18905_v4  ;;  %v14350_v1 = vpack.c.bf16 %v18909_v55, %v18888_v23  ;;  %14435 = vmatpush1.bf16.msra.mxu1 %v14434_v63  ;;  %v20713_v5 = vld [vmem:[#allocation86_spill] sm:$0xff] }
 0x84c   : > { %v14436_v25 = vpack.c.bf16 %v11912_v44, %v11900_v43  ;;  %v14446_v20 = vpack.c.bf16 %v20706_v2, %v20705_v7  ;;  %v14352_v22 = vpack.c.bf16 %v19045_v6, %v18999_v32  ;;  %v14448_v34 = vpack.c.bf16 %v19077_v0, %v19007_v19  ;;  %11812 = vmatprep.mubr.f32.mxu1 %v20306_v56 }
 0x84d   : > { %v14354_v18 = vpack.c.bf16 %v20708_v49, %v20707_v61  ;;  %14341 = vmatprep.subr.bf16.mxu0 %v14340_v42  ;;  %v14450_v35 = vpack.c.bf16 %v20710_v58, %v20709_v37  ;;  %v14356_v53 = vpack.c.bf16 %v19103_v15, %v19082_v62  ;;  %v14452_v11 = vpack.c.bf16 %v19125_v57, %v19085_v39 }
 0x84e   : > { %14437 = vmatprep.subr.bf16.mxu1 %v14436_v25  ;;  %v14358_v47 = vpack.c.bf16 %v19089_v10, %v19073_v21  ;;  %v14454_v51 = vpack.c.bf16 %v19099_v9, %v19079_v33  ;;  %v20711_v63 = vand.u32 4294901760, %v18832_v26  ;;  %v20712_v45 = vand.u32 4294901760, %v18859_v24  ;;  %11024 = vmatmul.mubr.f32.gmra.mrb[74].mxu0 %v20713_v5 }
 0x84f   : > { %v20714_v50 = vand.u32 4294901760, %v18836_v60  ;;  %v20715_v31 = vand.u32 4294901760, %v18881_v16  ;;  %v20716_v44 = vand.u32 4294901760, %v18823_v3  ;;  %v20717_v42 = vand.u32 4294901760, %v18847_v17  ;;  %11818 = vmatmul.mubr.f32.gmra.mrb[74].mxu1 %v20713_v5  ;;  %14343 = vmatpush1.bf16.msra.mxu0 %v14342_v59 }
 0x850   : > { %v19273_v40 = vpack.c.bf16 %v20712_v45, %v20711_v63  ;;  %v20718_v26 = vand.u32 4294901760, %v18828_v27  ;;  %v20719_v24 = vand.u32 4294901760, %v18856_v12  ;;  %v20720_v60 = vand.u32 4294901760, %v18901_v30  ;;  %14439 = vmatpush1.bf16.msra.mxu1 %v14438_v13  ;;  %14345 = vmatprep.subr.bf16.mxu0 %v14344_v8 }
 0x851   : > { %v19281_v43 = vpack.c.bf16 %v20715_v31, %v20714_v50  ;;  %v19287_v25 = vpack.c.bf16 %v20717_v42, %v20716_v44  ;;  %v20721_v16 = vand.u32 4294901760, %v18934_v36  ;;  %v20722_v3 = vand.u32 4294901760, %v18905_v4  ;;  %14441 = vmatprep.subr.bf16.mxu1 %v14440_v54  ;;  %11174 = vmatprep.mubr.f32.mxu0 %v20306_v56  ;;  %v20738_v54 = vld [vmem:[#allocation41_spill] sm:$0xff] }
 0x852   : > { %v19293_v28 = vpack.c.bf16 %v20719_v24, %v20718_v26  ;;  %v20723_v17 = vand.u32 4294901760, %v18980_v38  ;;  %v20724_v27 = vand.u32 4294901760, %v18888_v23  ;;  %v20725_v12 = vand.u32 4294901760, %v18909_v55  ;;  %11968 = vmatprep.mubr.f32.mxu1 %v20306_v56  ;;  %11176 = vmatmul.mubr.f32.vlgmr.msra.gmra.mrb[68].mxu0 %v20738_v54 }
 0x853   : > { %v19300_v63 = vpack.c.bf16 %v20721_v16, %v20720_v60  ;;  %v20726_v30 = vand.u32 4294901760, %v20705_v7  ;;  %v20727_v36 = vand.u32 4294901760, %v20706_v2  ;;  %v20728_v4 = vand.u32 4294901760, %v18999_v32  ;;  %11970 = vmatmul.mubr.f32.vlgmr.msra.gmra.mrb[68].mxu1 %v20738_v54  ;;  %14347 = vmatpush1.bf16.msra.mxu0 %v14346_v52  ;;  %v20751_v52 = vld [vmem:[#allocation56_spill] sm:$0xff]  ;;  %v20765_v60 = vld [vmem:[#allocation87_spill] sm:$0xff]  ;;  %v20766_v16 = vld [vmem:[#allocation49_spill] sm:$0xff] }
 0x854   : > { %v19306_v45 = vpack.c.bf16 %v20723_v17, %v20722_v3  ;;  %v19312_v50 = vpack.c.bf16 %v20725_v12, %v20724_v27  ;;  %v20729_v38 = vand.u32 4294901760, %v19045_v6  ;;  %v20730_v23 = vand.u32 4294901760, %v19007_v19  ;;  %14443 = vmatpush1.bf16.msra.mxu1 %v14442_v29  ;;  %14349 = vmatprep.subr.bf16.mxu0 %v14348_v48  ;;  %v20752_v29 = vld [vmem:[#allocation66_spill] sm:$0xff]  ;;  %v20753_v48 = vld [vmem:[#allocation92_spill] sm:$0xff] }
 0x855   : > { %v19318_v59 = vpack.c.bf16 %v20727_v36, %v20726_v30  ;;  %v20731_v55 = vand.u32 4294901760, %v19077_v0  ;;  %v20732_v13 = vand.u32 4294901760, %v20707_v61  ;;  %v20733_v8 = vand.u32 4294901760, %v20708_v49  ;;  %14445 = vmatprep.subr.bf16.mxu1 %v14444_v46  ;;  %11181 = vmatprep.mubr.f32.mxu0 %v20306_v56  ;;  %v20754_v46 = vld [vmem:[#allocation85_spill] sm:$0xff] }
 0x856   : > { %v19324_v5 = vpack.c.bf16 %v20729_v38, %v20728_v4  ;;  %v20734_v32 = vand.u32 4294901760, %v20709_v37  ;;  %v20735_v6 = vand.u32 4294901760, %v20710_v58  ;;  %v20736_v19 = vand.u32 4294901760, %v19082_v62  ;;  %11975 = vmatprep.mubr.f32.mxu1 %v20306_v56 }
 0x857   : > { %v19330_v31 = vpack.c.bf16 %v20731_v55, %v20730_v23  ;;  %v19337_v7 = vpack.c.bf16 %v20733_v8, %v20732_v13  ;;  %v20737_v0 = vand.u32 4294901760, %v19103_v15  ;;  %v20739_v61 = vand.u32 4294901760, %v19085_v39  ;;  %14351 = vmatpush1.bf16.msra.mxu0 %v14350_v1  ;;  %v20749_v39 = vld [vmem:[#allocation74_spill] sm:$0xff]  ;;  %v20755_v1 = vld [vmem:[#allocation45_spill] sm:$0xff] }
 0x858   : > { %v19343_v2 = vpack.c.bf16 %v20735_v6, %v20734_v32  ;;  %v20740_v49 = vand.u32 4294901760, %v19125_v57  ;;  %v20741_v37 = vand.u32 4294901760, %v19073_v21  ;;  %v20742_v58 = vand.u32 4294901760, %v19089_v10  ;;  %v20745_v57 = vld [vmem:[#allocation42_spill] sm:$0xff]  ;;  %14447 = vmatpush1.bf16.msra.mxu1 %v14446_v20  ;;  %14353 = vmatprep.subr.bf16.mxu0 %v14352_v22  ;;  %v20746_v10 = vld [vmem:[#allocation43_spill] sm:$0xff]  ;;  %v20757_v22 = vld [vmem:[#allocation84_spill] sm:$0xff] }
 0x859   : > { %v19349_v44 = vpack.c.bf16 %v20737_v0, %v20736_v19  ;;  %v20743_v62 = vand.u32 4294901760, %v19079_v33  ;;  %v20744_v15 = vand.u32 4294901760, %v19099_v9  ;;  %11183 = vmatmul.mubr.f32.gmra.mrb[70].mxu0 %v20745_v57  ;;  %11977 = vmatmul.mubr.f32.gmra.mrb[70].mxu1 %v20745_v57  ;;  %v20747_v21 = vld [vmem:[#allocation47_spill] sm:$0xff]  ;;  %v20750_v9 = vld [vmem:[#allocation44_spill] sm:$0xff]  ;;  %v20756_v20 = vld [vmem:[#allocation82_spill] sm:$0xff] }
 0x85a   : > { %v19357_v42 = vpack.c.bf16 %v20740_v49, %v20739_v61  ;;  %v19363_v26 = vpack.c.bf16 %v20742_v58, %v20741_v37  ;;  %14449 = vmatprep.subr.bf16.mxu1 %v14448_v34  ;;  %11188 = vmatprep.mubr.f32.mxu0 %v20306_v56  ;;  %v20748_v33 = vld [vmem:[#allocation83_spill] sm:$0xff]  ;;  %v20758_v34 = vld [vmem:[#allocation93_spill] sm:$0xff] }
 0x85b   : > { %v19369_v24 = vpack.c.bf16 %v20744_v15, %v20743_v62  ;;  %11982 = vmatprep.mubr.f32.mxu1 %v20306_v56  ;;  %14355 = vmatpush1.bf16.msra.mxu0 %v14354_v18  ;;  %v20759_v18 = vld [vmem:[#allocation46_spill] sm:$0xff] }
 0x85c   : > { %14451 = vmatpush1.bf16.msra.mxu1 %v14450_v35  ;;  %14357 = vmatprep.subr.bf16.mxu0 %v14356_v53  ;;  %v20760_v35 = vld [vmem:[#allocation89_spill] sm:$0xff]  ;;  %v20761_v53 = vld [vmem:[#allocation80_spill] sm:$0xff] }
 0x85d   : > { %11190 = vmatmul.mubr.f32.gmra.mrb[72].mxu0 %v20746_v10  ;;  %11984 = vmatmul.mubr.f32.gmra.mrb[72].mxu1 %v20746_v10 }
 0x85e   : > { %14453 = vmatprep.subr.bf16.mxu1 %v14452_v11  ;;  %11195 = vmatprep.mubr.f32.mxu0 %v20306_v56  ;;  %v20762_v11 = vld [vmem:[#allocation94_spill] sm:$0xff] }
 0x85f   : > { %11989 = vmatprep.mubr.f32.mxu1 %v20306_v56  ;;  %14359 = vmatpush1.bf16.msra.mxu0 %v14358_v47  ;;  %v20763_v47 = vld [vmem:[#allocation91_spill] sm:$0xff] }
 0x860   : > { %14455 = vmatpush1.bf16.msra.mxu1 %v14454_v51  ;;  %14361 = vmatprep.subr.bf16.mxu0 %v20748_v33  ;;  %v20764_v51 = vld [vmem:[#allocation52_spill] sm:$0xff] }
 0x861   : > { %11197 = vmatmul.mubr.f32.gmra.mrb[74].mxu0 %v20747_v21  ;;  %11991 = vmatmul.mubr.f32.gmra.mrb[74].mxu1 %v20747_v21 }
 0x862   : > { %14457 = vmatprep.subr.bf16.mxu1 %v20749_v39  ;;  %11299 = vmatprep.mubr.f32.mxu0 %v20306_v56 }
 0x863   : > { %12093 = vmatprep.mubr.f32.mxu1 %v20306_v56 }
 0x865   : > { %11302 = vmatmul.mubr.f32.vlgmr.msra.gmra.mrb[68].mxu0 %v20750_v9  ;;  %12096 = vmatmul.mubr.f32.vlgmr.msra.gmra.mrb[68].mxu1 %v20750_v9 }
 0x866   : > { %14363 = vmatpush1.bf16.msra.mxu0 %v20751_v52  ;;  %14459 = vmatpush1.bf16.msra.mxu1 %v20752_v29 }
 0x867   : > { %14365 = vmatprep.subr.bf16.mxu0 %v20753_v48  ;;  %14461 = vmatprep.subr.bf16.mxu1 %v20754_v46 }
 0x868   : > { %11307 = vmatprep.mubr.f32.mxu0 %v20306_v56  ;;  %12101 = vmatprep.mubr.f32.mxu1 %v20306_v56 }
 0x869   : > { %11310 = vmatmul.mubr.f32.gmra.mrb[70].mxu0 %v20755_v1  ;;  %12104 = vmatmul.mubr.f32.gmra.mrb[70].mxu1 %v20755_v1 }
 0x86a   : > { %14367 = vmatpush1.bf16.msra.mxu0 %v20756_v20  ;;  %14463 = vmatpush1.bf16.msra.mxu1 %v20757_v22 }
 0x86b   : > { %14369 = vmatprep.subr.bf16.mxu0 %v19109_v14  ;;  %14465 = vmatprep.subr.bf16.mxu1 %v20758_v34 }
 0x86c   : > { %11315 = vmatprep.mubr.f32.mxu0 %v20306_v56  ;;  %12109 = vmatprep.mubr.f32.mxu1 %v20306_v56 }
 0x86d   : > { %11318 = vmatmul.mubr.f32.gmra.mrb[72].mxu0 %v20759_v18  ;;  %12112 = vmatmul.mubr.f32.gmra.mrb[72].mxu1 %v20759_v18 }
 0x86e   : > { %14371 = vmatpush1.bf16.msra.mxu0 %v20760_v35  ;;  %14467 = vmatpush1.bf16.msra.mxu1 %v20761_v53 }
 0x86f   : > { %14373 = vmatprep.subr.bf16.mxu0 %v20762_v11  ;;  %14469 = vmatprep.subr.bf16.mxu1 %v20763_v47 }
 0x870   : > { %11323 = vmatprep.mubr.f32.mxu0 %v20306_v56  ;;  %12117 = vmatprep.mubr.f32.mxu1 %v20306_v56 }
 0x871   : > { %11326 = vmatmul.mubr.f32.gmra.mrb[74].mxu0 %v20764_v51  ;;  %12120 = vmatmul.mubr.f32.gmra.mrb[74].mxu1 %v20764_v51 }
 0x872   : > { %14375 = vmatpush1.bf16.msra.mxu0 %v20765_v60  ;;  %14471 = vmatpush1.bf16.msra.mxu1 %v19097_v41 }
 0x873   : > { %14377 = vmatprep.subr.bf16.mxu0 %v19273_v40  ;;  %14473 = vmatprep.subr.bf16.mxu1 %v19281_v43  ;;  %v20767_v40 = vld [vmem:[#allocation50_spill] sm:$0xff]  ;;  %v20768_v43 = vld [vmem:[#allocation51_spill] sm:$0xff] }
 0x874   : > { %11412 = vmatprep.mubr.f32.mxu0 %v20306_v56  ;;  %12206 = vmatprep.mubr.f32.mxu1 %v20306_v56 }
 0x875   : > { %11416 = vmatmul.mubr.f32.vlgmr.msra.gmra.mrb[68].mxu0 %v20766_v16  ;;  %12210 = vmatmul.mubr.f32.vlgmr.msra.gmra.mrb[68].mxu1 %v20766_v16 }
 0x876   : > { %14379 = vmatpush1.bf16.msra.mxu0 %v19287_v25  ;;  %14475 = vmatpush1.bf16.msra.mxu1 %v19293_v28  ;;  %v20769_v25 = vld [vmem:[#allocation54_spill] sm:$0xff] }
 0x877   : > { %14381 = vmatprep.subr.bf16.mxu0 %v19300_v63  ;;  %14477 = vmatprep.subr.bf16.mxu1 %v19306_v45 }
 0x878   : > { %11421 = vmatprep.mubr.f32.mxu0 %v20306_v56  ;;  %12215 = vmatprep.mubr.f32.mxu1 %v20306_v56 }
 0x879   : > { %11425 = vmatmul.mubr.f32.gmra.mrb[70].mxu0 %v20767_v40  ;;  %12219 = vmatmul.mubr.f32.gmra.mrb[70].mxu1 %v20767_v40 }
 0x87a   : > { %14383 = vmatpush1.bf16.msra.mxu0 %v19312_v50  ;;  %14479 = vmatpush1.bf16.msra.mxu1 %v19318_v59 }
 0x87b   : > { %14385 = vmatprep.subr.bf16.mxu0 %v19324_v5  ;;  %14481 = vmatprep.subr.bf16.mxu1 %v19330_v31  ;;  %v20771_v5 = vld [vmem:[#allocation72_spill] sm:$0xff] }
 0x87c   : > { %11430 = vmatprep.mubr.f32.mxu0 %v20306_v56  ;;  %12224 = vmatprep.mubr.f32.mxu1 %v20306_v56 }
 0x87d   : > { %11434 = vmatmul.mubr.f32.gmra.mrb[72].mxu0 %v20768_v43  ;;  %12228 = vmatmul.mubr.f32.gmra.mrb[72].mxu1 %v20768_v43 }
 0x87e   : > { %14387 = vmatpush1.bf16.msra.mxu0 %v19337_v7  ;;  %14483 = vmatpush1.bf16.msra.mxu1 %v19343_v2 }
 0x87f   : > { %14389 = vmatprep.subr.bf16.mxu0 %v19349_v44  ;;  %14485 = vmatprep.subr.bf16.mxu1 %v19357_v42 }
 0x880   : > { %11439 = vmatprep.mubr.f32.mxu0 %v20306_v56  ;;  %12233 = vmatprep.mubr.f32.mxu1 %v20306_v56 }
 0x881   : > { %11443 = vmatmul.mubr.f32.gmra.mrb[74].mxu0 %v20769_v25  ;;  %12237 = vmatmul.mubr.f32.gmra.mrb[74].mxu1 %v20769_v25 }
 0x882   : > { %14391 = vmatpush1.bf16.msra.mxu0 %v19363_v26  ;;  %14487 = vmatpush1.bf16.msra.mxu1 %v19369_v24 }
 0x883   : > { %14393 = vmatprep.subr.bf16.mxu0 %v20748_v33  ;;  %14489 = vmatprep.subr.bf16.mxu1 %v20749_v39 }
 0x884   : > { %11561 = vmatprep.mubr.f32.mxu0 %v20306_v56  ;;  %12355 = vmatprep.mubr.f32.mxu1 %v20306_v56 }
 0x885   : > { %11563 = vmatmul.mubr.f32.vlgmr.msra.gmra.mrb[68].mxu0 %v20738_v54  ;;  %12357 = vmatmul.mubr.f32.vlgmr.msra.gmra.mrb[68].mxu1 %v20738_v54 }
 0x886   : > { %14395 = vmatpush1.bf16.msra.mxu0 %v20751_v52  ;;  %14491 = vmatpush1.bf16.msra.mxu1 %v20752_v29 }
 0x887   : > { %14397 = vmatprep.subr.bf16.mxu0 %v20753_v48  ;;  %14493 = vmatprep.subr.bf16.mxu1 %v20754_v46 }
 0x888   : > { %11568 = vmatprep.mubr.f32.mxu0 %v20306_v56  ;;  %12362 = vmatprep.mubr.f32.mxu1 %v20306_v56 }
 0x889   : > { %11570 = vmatmul.mubr.f32.gmra.mrb[70].mxu0 %v20745_v57  ;;  %12364 = vmatmul.mubr.f32.gmra.mrb[70].mxu1 %v20745_v57 }
 0x88a   : > { %14399 = vmatpush1.bf16.msra.mxu0 %v20756_v20  ;;  %14495 = vmatpush1.bf16.msra.mxu1 %v20757_v22 }
 0x88b   : > { %14401 = vmatprep.subr.bf16.mxu0 %v19109_v14  ;;  %14497 = vmatprep.subr.bf16.mxu1 %v20758_v34 }
 0x88c   : > { %11575 = vmatprep.mubr.f32.mxu0 %v20306_v56  ;;  %12369 = vmatprep.mubr.f32.mxu1 %v20306_v56 }
 0x88d   : > { %11577 = vmatmul.mubr.f32.gmra.mrb[72].mxu0 %v20746_v10  ;;  %12371 = vmatmul.mubr.f32.gmra.mrb[72].mxu1 %v20746_v10 }
 0x88e   : > { %14403 = vmatpush1.bf16.msra.mxu0 %v20760_v35  ;;  %14499 = vmatpush1.bf16.msra.mxu1 %v20761_v53 }
 0x88f   : > { %14405 = vmatprep.subr.bf16.mxu0 %v20762_v11  ;;  %14501 = vmatprep.subr.bf16.mxu1 %v20763_v47  ;;  %v20772_v11 = vld [vmem:[#allocation73_spill] sm:$0xff] }
 0x890   : > { %11582 = vmatprep.mubr.f32.mxu0 %v20306_v56  ;;  %12376 = vmatprep.mubr.f32.mxu1 %v20306_v56 }
 0x891   : > { %11584 = vmatmul.mubr.f32.gmra.mrb[74].mxu0 %v20747_v21  ;;  %12378 = vmatmul.mubr.f32.gmra.mrb[74].mxu1 %v20747_v21 }
 0x892   : > { %14407 = vmatpush1.bf16.msra.mxu0 %v20765_v60  ;;  %14503 = vmatpush1.bf16.msra.mxu1 %v19097_v41  ;;  %v20770_v41 = vld [vmem:[#allocation63_spill] sm:$0xff] }
 0x893   : > { %11670 = vmatprep.mubr.f32.mxu0 %v20306_v56  ;;  %12464 = vmatprep.mubr.f32.mxu1 %v20306_v56 }
 0x895   : > { %11672 = vmatmul.mubr.f32.vlgmr.msra.gmra.mrb[68].mxu0 %v20738_v54  ;;  %12466 = vmatmul.mubr.f32.vlgmr.msra.gmra.mrb[68].mxu1 %v20738_v54 }
 0x896   : > { %11677 = vmatprep.mubr.f32.mxu0 %v20306_v56  ;;  %12471 = vmatprep.mubr.f32.mxu1 %v20306_v56 }
 0x899   : > { %11679 = vmatmul.mubr.f32.gmra.mrb[70].mxu0 %v20745_v57  ;;  %12473 = vmatmul.mubr.f32.gmra.mrb[70].mxu1 %v20745_v57 }
 0x89a   : > { %11684 = vmatprep.mubr.f32.mxu0 %v20306_v56  ;;  %12478 = vmatprep.mubr.f32.mxu1 %v20306_v56 }
 0x89d   : > { %11686 = vmatmul.mubr.f32.gmra.mrb[72].mxu0 %v20746_v10  ;;  %12480 = vmatmul.mubr.f32.gmra.mrb[72].mxu1 %v20746_v10 }
 0x89e   : > { %11691 = vmatprep.mubr.f32.mxu0 %v20306_v56  ;;  %12485 = vmatprep.mubr.f32.mxu1 %v20306_v56 }
 0x8a1   : > { %11693 = vmatmul.mubr.f32.gmra.mrb[74].mxu0 %v20747_v21  ;;  %12487 = vmatmul.mubr.f32.gmra.mrb[74].mxu1 %v20747_v21 }
 0x8a2   : > { %12581 = vmatprep.mubr.f32.mxu0 %v20306_v56  ;;  %13124 = vmatprep.mubr.f32.mxu1 %v20306_v56 }
 0x968   : > { %v11673_v14 = vpop.f32.mrb[68].mxu0  ;;  %v12467_v63 = vpop.f32.mrb[68].mxu1 }
 0x969   : > { %v14736_v28 = vadd.f32 %v11673_v14, %v20770_v41  ;;  %v11675_v3 = vpop.f32.mrb[69].mxu0  ;;  %v14744_v17 = vadd.f32 %v12467_v63, %v20770_v41  ;;  %v12469_v27 = vpop.f32.mrb[69].mxu1 }
 0x96a   : > { %v14737_v45 = vadd.f32 %v11675_v3, %v20770_v41  ;;  %v14745_v50 = vadd.f32 %v12469_v27, %v20770_v41 }
 0x96b   : > { %v12493_v12 = vmax.f32 %v14736_v28, 0.0  ;;  %v12495_v30 = vmax.f32 %v14744_v17, 0.0 }
 0x96c   : > { %v12494_v36 = vmax.f32 %v14737_v45, 0.0  ;;  %v11680_v59 = vpop.f32.mrb[70].mxu0  ;;  %v12496_v38 = vmax.f32 %v14745_v50, 0.0  ;;  %v12474_v55 = vpop.f32.mrb[70].mxu1 }
 0x96d   : > { %v12511_v4 = vand.u32 4294901760, %v12493_v12  ;;  %v14738_v23 = vadd.f32 %v11680_v59, %v20771_v5  ;;  %v11682_v31 = vpop.f32.mrb[71].mxu0  ;;  %v13054_v13 = vand.u32 4294901760, %v12495_v30  ;;  %v14746_v7 = vadd.f32 %v12474_v55, %v20771_v5  ;;  %v12476_v6 = vpop.f32.mrb[71].mxu1 }
 0x96e   : > { %v19503_v8 = vand.u32 4294901760, %v12494_v36  ;;  %v14739_v32 = vadd.f32 %v11682_v31, %v20771_v5  ;;  %v19509_v19 = vand.u32 4294901760, %v12496_v38  ;;  %v14747_v44 = vadd.f32 %v12476_v6, %v20771_v5 }
 0x96f   : > { %v19507_v2 = vsub.f32 %v12493_v12, %v12511_v4  ;;  %v12497_v0 = vmax.f32 %v14738_v23, 0.0  ;;  %v19512_v54 = vsub.f32 %v12495_v30, %v13054_v13  ;;  %v12499_v49 = vmax.f32 %v14746_v7, 0.0  ;;  %v20773_v12 = vld [vmem:[#allocation77_spill] sm:$0xff] }
 0x970   : > { %v19515_v61 = vsub.f32 %v12494_v36, %v19503_v8  ;;  %v12498_v42 = vmax.f32 %v14739_v32, 0.0  ;;  %v11687_v37 = vpop.f32.mrb[72].mxu0  ;;  %v19519_v26 = vsub.f32 %v12496_v38, %v19509_v19  ;;  %v12500_v15 = vmax.f32 %v14747_v44, 0.0  ;;  %v12481_v24 = vpop.f32.mrb[72].mxu1 }
 0x971   : > { %v12601_v58 = vand.u32 4294901760, %v19507_v2  ;;  %v12515_v62 = vand.u32 4294901760, %v12497_v0  ;;  %v11689_v57 = vpop.f32.mrb[73].mxu0  ;;  %v13144_v10 = vand.u32 4294901760, %v19512_v54  ;;  %v13058_v21 = vand.u32 4294901760, %v12499_v49  ;;  %v12483_v39 = vpop.f32.mrb[73].mxu1 }
 0x972   : > { %v19522_v33 = vand.u32 4294901760, %v12498_v42  ;;  %v12595_v52 = vand.u32 4294901760, %v19515_v61  ;;  %v13138_v18 = vand.u32 4294901760, %v19519_v26  ;;  %v13056_v53 = vand.u32 4294901760, %v12500_v15 }
 0x973   : > { %v19527_v9 = vsub.f32 %v19507_v2, %v12601_v58  ;;  %v19530_v29 = vpack.c.bf16 %v12515_v62, %v12511_v4  ;;  %v19532_v48 = vsub.f32 %v12497_v0, %v12515_v62  ;;  %v19537_v46 = vsub.f32 %v19512_v54, %v13144_v10 }
 0x974   : > { %v19539_v1 = vpack.c.bf16 %v13058_v21, %v13054_v13  ;;  %v19541_v20 = vsub.f32 %v12499_v49, %v13058_v21  ;;  %v19544_v22 = vsub.f32 %v12498_v42, %v19522_v33  ;;  %v11694_v34 = vpop.f32.mrb[74].mxu0  ;;  %v14740_v47 = vadd.f32 %v11687_v37, %v20772_v11  ;;  %v12488_v51 = vpop.f32.mrb[74].mxu1 }
 0x975   : > { %v12613_v35 = vand.u32 4294901760, %v19532_v48  ;;  %v11696_v60 = vpop.f32.mrb[75].mxu0  ;;  %v12603_v16 = vand.u32 4294901760, %v19527_v9  ;;  %v13146_v40 = vand.u32 4294901760, %v19537_v46  ;;  %v14748_v25 = vadd.f32 %v12481_v24, %v20772_v11  ;;  %v12490_v14 = vpop.f32.mrb[75].mxu1 }
 0x976   : > { %v13156_v43 = vand.u32 4294901760, %v19541_v20  ;;  %v19558_v28 = vsub.f32 %v12500_v15, %v13056_v53  ;;  %v12501_v63 = vmax.f32 %v14740_v47, 0.0  ;;  %v14741_v3 = vadd.f32 %v11689_v57, %v20772_v11 }
 0x977   : > { %v19556_v41 = vsub.f32 %v19532_v48, %v12613_v35  ;;  %v12607_v17 = vand.u32 4294901760, %v19544_v22  ;;  %v12503_v45 = vmax.f32 %v14748_v25, 0.0  ;;  %v14749_v27 = vadd.f32 %v12483_v39, %v20772_v11 }
 0x978   : > { %v14742_v50 = vadd.f32 %v11694_v34, %v20773_v12  ;;  %v19568_v36 = vsub.f32 %v19541_v20, %v13156_v43  ;;  %v12519_v59 = vand.u32 4294901760, %v12501_v63  ;;  %v12502_v4 = vmax.f32 %v14741_v3, 0.0 }
 0x979   : > { %v12615_v30 = vand.u32 4294901760, %v19556_v41  ;;  %v13150_v38 = vand.u32 4294901760, %v19558_v28  ;;  %v13062_v5 = vand.u32 4294901760, %v12503_v45  ;;  %v12504_v23 = vmax.f32 %v14749_v27, 0.0 }
 0x97a   : > { %v12505_v55 = vmax.f32 %v14742_v50, 0.0  ;;  %v19571_v31 = vsub.f32 %v12501_v63, %v12519_v59  ;;  %v12517_v13 = vand.u32 4294901760, %v12502_v4  ;;  %v14750_v7 = vadd.f32 %v12488_v51, %v20773_v12 }
 0x97b   : > { %v14743_v32 = vadd.f32 %v11696_v60, %v20773_v12  ;;  %v19575_v6 = vsub.f32 %v12503_v45, %v13062_v5  ;;  %v13060_v0 = vand.u32 4294901760, %v12504_v23  ;;  %v14751_v49 = vadd.f32 %v12490_v14, %v20773_v12 }
 0x97c   : > { %v12523_v44 = vand.u32 4294901760, %v12505_v55  ;;  %v12625_v42 = vand.u32 4294901760, %v19571_v31  ;;  %v19579_v37 = vsub.f32 %v12502_v4, %v12517_v13  ;;  %v12507_v62 = vmax.f32 %v14750_v7, 0.0 }
 0x97d   : > { %v12506_v15 = vmax.f32 %v14743_v32, 0.0  ;;  %v13168_v24 = vand.u32 4294901760, %v19575_v6  ;;  %v19582_v57 = vsub.f32 %v12504_v23, %v13060_v0  ;;  %v13158_v34 = vand.u32 4294901760, %v19568_v36 }
 0x97e   : > { %v19584_v21 = vpack.c.bf16 %v12523_v44, %v12519_v59  ;;  %v19586_v39 = vsub.f32 %v12505_v55, %v12523_v44  ;;  %v12626_v11 = vsub.f32 %v19571_v31, %v12625_v42  ;;  %v13066_v47 = vand.u32 4294901760, %v12507_v62 }
 0x97f   : > { %v12521_v51 = vand.u32 4294901760, %v12506_v15  ;;  %v13169_v60 = vsub.f32 %v19575_v6, %v13168_v24  ;;  %v12619_v25 = vand.u32 4294901760, %v19579_v37  ;;  %v12508_v41 = vmax.f32 %v14751_v49, 0.0 }
 0x980   : > { %v12637_v14 = vand.u32 4294901760, %v19586_v39  ;;  %v13162_v63 = vand.u32 4294901760, %v19582_v57  ;;  %v19598_v3 = vpack.c.bf16 %v13066_v47, %v13062_v5  ;;  %v19600_v45 = vsub.f32 %v12507_v62, %v13066_v47 }
 0x981   : > { %v19602_v27 = vsub.f32 %v12506_v15, %v12521_v51  ;;  %v12627_v12 = vand.u32 4294901760, %v12626_v11  ;;  %v13064_v36 = vand.u32 4294901760, %v12508_v41  ;;  %v19609_v59 = vpack.c.bf16 %v19522_v33, %v19503_v8 }
 0x982   : > { %v12638_v50 = vsub.f32 %v19586_v39, %v12637_v14  ;;  %v13170_v4 = vand.u32 4294901760, %v13169_v60  ;;  %v20189_v23 = vand.u32 4294901760, %v19600_v45  ;;  %v19613_v5 = vpack.c.bf16 %v13056_v53, %v19509_v19 }
 0x983   : > { %v19615_v55 = vpack.c.bf16 %v12521_v51, %v12517_v13  ;;  %v12631_v7 = vand.u32 4294901760, %v19602_v27  ;;  %v19618_v32 = vsub.f32 %v12508_v41, %v13064_v36  ;;  %14505 = vmatprep.subr.bf16.mxu0 %v19609_v59  ;;  %v19621_v44 = vpack.c.bf16 %v13064_v36, %v13060_v0 }
 0x984   : > { %v12596_v8 = vsub.f32 %v19515_v61, %v12595_v52  ;;  %v12639_v33 = vand.u32 4294901760, %v12638_v50  ;;  %v13181_v19 = vsub.f32 %v19600_v45, %v20189_v23  ;;  %14553 = vmatprep.subr.bf16.mxu1 %v19613_v5  ;;  %14507 = vmatpush1.bf16.msra.mxu0 %v19530_v29  ;;  %v12608_v53 = vsub.f32 %v19544_v22, %v12607_v17 }
 0x985   : > { %v13139_v13 = vsub.f32 %v19519_v26, %v13138_v18  ;;  %v13174_v0 = vand.u32 4294901760, %v19618_v32  ;;  %14555 = vmatpush1.bf16.msra.mxu1 %v19539_v1  ;;  %14509 = vmatprep.subr.bf16.mxu0 %v19615_v55  ;;  %v13151_v62 = vsub.f32 %v19558_v28, %v13150_v38  ;;  %v14514_v15 = vpack.c.bf16 %v12615_v30, %v12603_v16 }
 0x986   : > { %v12597_v49 = vand.u32 4294901760, %v12596_v8  ;;  %v13182_v11 = vand.u32 4294901760, %v13181_v19  ;;  %14557 = vmatprep.subr.bf16.mxu1 %v19621_v44  ;;  %v12609_v47 = vand.u32 4294901760, %v12608_v53  ;;  %v14562_v60 = vpack.c.bf16 %v13158_v34, %v13146_v40 }
 0x987   : > { %v13140_v51 = vand.u32 4294901760, %v13139_v13  ;;  %v13152_v41 = vand.u32 4294901760, %v13151_v62  ;;  %v12620_v50 = vsub.f32 %v19579_v37, %v12619_v25  ;;  %v12632_v36 = vsub.f32 %v19602_v27, %v12631_v7 }
 0x988   : > { %v13163_v9 = vsub.f32 %v19582_v57, %v13162_v63  ;;  %14511 = vmatpush1.bf16.msra.mxu0 %v19584_v21  ;;  %v14512_v16 = vpack.c.bf16 %v12609_v47, %v12597_v49  ;;  %v13175_v30 = vsub.f32 %v19618_v32, %v13174_v0  ;;  %v14518_v8 = vpack.c.bf16 %v12639_v33, %v12627_v12  ;;  %v20774_v12 = vld [vmem:[#allocation75_spill] sm:$0xff] }
 0x989   : > { %v14566_v19 = vpack.c.bf16 %v13182_v11, %v13170_v4  ;;  %14559 = vmatpush1.bf16.msra.mxu1 %v19598_v3  ;;  %v14560_v46 = vpack.c.bf16 %v13152_v41, %v13140_v51  ;;  %v12621_v40 = vand.u32 4294901760, %v12620_v50  ;;  %v12633_v34 = vand.u32 4294901760, %v12632_v36 }
 0x98a   : > { %v13164_v53 = vand.u32 4294901760, %v13163_v9  ;;  %14513 = vmatprep.subr.bf16.mxu0 %v14512_v16  ;;  %v13176_v13 = vand.u32 4294901760, %v13175_v30  ;;  %v14520_v62 = vpack.c.bf16 %v19544_v22, %v19515_v61  ;;  %v14568_v23 = vpack.c.bf16 %v19558_v28, %v19519_v26 }
 0x98b   : > { %v14522_v49 = vpack.c.bf16 %v19532_v48, %v19507_v2  ;;  %14561 = vmatprep.subr.bf16.mxu1 %v14560_v46  ;;  %12587 = vmatmul.mubr.f32.vlgmr.msra.gmra.mrb[76].mxu0 %v20774_v12  ;;  %v14516_v4 = vpack.c.bf16 %v12633_v34, %v12621_v40  ;;  %v14570_v33 = vpack.c.bf16 %v19541_v20, %v19512_v54  ;;  %v20775_v54 = vand.u32 4294901760, %v19600_v45  ;;  %v20777_v48 = vld [vmem:[#allocation65_spill] sm:$0xff]  ;;  %v20778_v20 = vld [vmem:[#allocation67_spill] sm:$0xff] }
 0x98c   : > { %v14524_v11 = vpack.c.bf16 %v19602_v27, %v19579_v37  ;;  %13130 = vmatmul.mubr.f32.vlgmr.msra.gmra.mrb[76].mxu1 %v20774_v12  ;;  %14515 = vmatpush1.bf16.msra.mxu0 %v14514_v15  ;;  %v14564_v47 = vpack.c.bf16 %v13176_v13, %v13164_v53  ;;  %v14572_v51 = vpack.c.bf16 %v19618_v32, %v19582_v57 }
 0x98d   : > { %v14526_v41 = vpack.c.bf16 %v19586_v39, %v19571_v31  ;;  %14563 = vmatpush1.bf16.msra.mxu1 %v14562_v60  ;;  %14517 = vmatprep.subr.bf16.mxu0 %v14516_v4  ;;  %v14574_v50 = vpack.c.bf16 %v19600_v45, %v19575_v6  ;;  %v14536_v27 = vpack.c.bf16 %v12607_v17, %v12595_v52 }
 0x98e   : > { %v14584_v15 = vpack.c.bf16 %v13150_v38, %v13138_v18  ;;  %14565 = vmatprep.subr.bf16.mxu1 %v14564_v47  ;;  %12697 = vmatprep.mubr.f32.mxu0 %v20306_v56  ;;  %v14538_v32 = vpack.c.bf16 %v12613_v35, %v12601_v58  ;;  %v14586_v61 = vpack.c.bf16 %v13156_v43, %v13144_v10  ;;  %v20776_v10 = vld [vmem:[#allocation62_spill] sm:$0xff] }
 0x98f   : > { %v14540_v52 = vpack.c.bf16 %v12631_v7, %v12619_v25  ;;  %13240 = vmatprep.mubr.f32.mxu1 %v20306_v56  ;;  %v14588_v26 = vpack.c.bf16 %v13174_v0, %v13162_v63  ;;  %v14542_v2 = vpack.c.bf16 %v12637_v14, %v12625_v42  ;;  %v14590_v58 = vpack.c.bf16 %v20775_v54, %v13168_v24  ;;  %v20780_v7 = vld [vmem:[#allocation69_spill] sm:$0xff] }
 0x990   : > { %14519 = vmatpush1.bf16.msra.mxu0 %v14518_v8 }
 0x991   : > { %14567 = vmatpush1.bf16.msra.mxu1 %v14566_v19  ;;  %14521 = vmatprep.subr.bf16.mxu0 %v14520_v62 }
 0x992   : > { %14569 = vmatprep.subr.bf16.mxu1 %v14568_v23 }
 0x993   : > { %12699 = vmatmul.mubr.f32.vlgmr.msra.gmra.mrb[76].mxu0 %v20776_v10 }
 0x994   : > { %13242 = vmatmul.mubr.f32.vlgmr.msra.gmra.mrb[76].mxu1 %v20776_v10  ;;  %14523 = vmatpush1.bf16.msra.mxu0 %v14522_v49 }
 0x995   : > { %14571 = vmatpush1.bf16.msra.mxu1 %v14570_v33  ;;  %14525 = vmatprep.subr.bf16.mxu0 %v14524_v11 }
 0x996   : > { %14573 = vmatprep.subr.bf16.mxu1 %v14572_v51  ;;  %12785 = vmatprep.mubr.f32.mxu0 %v20306_v56 }
 0x997   : > { %13328 = vmatprep.mubr.f32.mxu1 %v20306_v56 }
 0x998   : > { %14527 = vmatpush1.bf16.msra.mxu0 %v14526_v41 }
 0x999   : > { %14575 = vmatpush1.bf16.msra.mxu1 %v14574_v50  ;;  %14529 = vmatprep.subr.bf16.mxu0 %v19609_v59 }
 0x99a   : > { %14577 = vmatprep.subr.bf16.mxu1 %v19613_v5 }
 0x99b   : > { %12788 = vmatmul.mubr.f32.vlgmr.msra.gmra.mrb[76].mxu0 %v20777_v48 }
 0x99c   : > { %13331 = vmatmul.mubr.f32.vlgmr.msra.gmra.mrb[76].mxu1 %v20777_v48  ;;  %14531 = vmatpush1.bf16.msra.mxu0 %v19530_v29 }
 0x99d   : > { %14579 = vmatpush1.bf16.msra.mxu1 %v19539_v1  ;;  %14533 = vmatprep.subr.bf16.mxu0 %v19615_v55 }
 0x99e   : > { %14581 = vmatprep.subr.bf16.mxu1 %v19621_v44  ;;  %12866 = vmatprep.mubr.f32.mxu0 %v20306_v56 }
 0x99f   : > { %13409 = vmatprep.mubr.f32.mxu1 %v20306_v56 }
 0x9a0   : > { %14535 = vmatpush1.bf16.msra.mxu0 %v19584_v21 }
 0x9a1   : > { %14583 = vmatpush1.bf16.msra.mxu1 %v19598_v3  ;;  %14537 = vmatprep.subr.bf16.mxu0 %v14536_v27 }
 0x9a2   : > { %14585 = vmatprep.subr.bf16.mxu1 %v14584_v15 }
 0x9a3   : > { %12870 = vmatmul.mubr.f32.vlgmr.msra.gmra.mrb[76].mxu0 %v20778_v20 }
 0x9a4   : > { %13413 = vmatmul.mubr.f32.vlgmr.msra.gmra.mrb[76].mxu1 %v20778_v20  ;;  %14539 = vmatpush1.bf16.msra.mxu0 %v14538_v32 }
 0x9a5   : > { %14587 = vmatpush1.bf16.msra.mxu1 %v14586_v61  ;;  %14541 = vmatprep.subr.bf16.mxu0 %v14540_v52 }
 0x9a6   : > { %14589 = vmatprep.subr.bf16.mxu1 %v14588_v26  ;;  %12964 = vmatprep.mubr.f32.mxu0 %v20306_v56 }
 0x9a7   : > { %13507 = vmatprep.mubr.f32.mxu1 %v20306_v56 }
 0x9a8   : > { %14543 = vmatpush1.bf16.msra.mxu0 %v14542_v2 }
 0x9a9   : > { %14591 = vmatpush1.bf16.msra.mxu1 %v14590_v58  ;;  %14545 = vmatprep.subr.bf16.mxu0 %v19609_v59 }
 0x9aa   : > { %14593 = vmatprep.subr.bf16.mxu1 %v19613_v5 }
 0x9ab   : > { %12966 = vmatmul.mubr.f32.vlgmr.msra.gmra.mrb[76].mxu0 %v20776_v10 }
 0x9ac   : > { %13509 = vmatmul.mubr.f32.vlgmr.msra.gmra.mrb[76].mxu1 %v20776_v10  ;;  %14547 = vmatpush1.bf16.msra.mxu0 %v19530_v29  ;;  %v20779_v29 = vld [vmem:[#allocation68_spill] sm:$0xff] }
 0x9ad   : > { %14595 = vmatpush1.bf16.msra.mxu1 %v19539_v1  ;;  %14549 = vmatprep.subr.bf16.mxu0 %v19615_v55 }
 0x9ae   : > { %14597 = vmatprep.subr.bf16.mxu1 %v19621_v44  ;;  %13044 = vmatprep.mubr.f32.mxu0 %v20306_v56 }
 0x9af   : > { %13587 = vmatprep.mubr.f32.mxu1 %v20306_v56 }
 0x9b0   : > { %14551 = vmatpush1.bf16.msra.mxu0 %v19584_v21 }
 0x9b1   : > { %14599 = vmatpush1.bf16.msra.mxu1 %v19598_v3 }
 0x9b3   : > { %13046 = vmatmul.mubr.f32.vlgmr.msra.gmra.mrb[76].mxu0 %v20776_v10 }
 0x9b4   : > { %13589 = vmatmul.mubr.f32.vlgmr.msra.gmra.mrb[76].mxu1 %v20776_v10 }
 0xa86   : > { %v13047_v22 = vpop.f32.mrb[76].mxu0 }
 0xa87   : > { %v14752_v18 = vadd.f32 %v13047_v22, %v20779_v29  ;;  %v13590_v1 = vpop.f32.mrb[76].mxu1  ;;  %v13049_v35 = vpop.f32.mrb[77].mxu0 }
 0xa88   : > { %v14754_v43 = vadd.f32 %v13590_v1, %v20779_v29  ;;  %v14753_v28 = vadd.f32 %v13049_v35, %v20779_v29  ;;  %v13592_v17 = vpop.f32.mrb[77].mxu1 }
 0xa89   : > { %v13595_v38 = vmul.f32 0.5, %v14752_v18  ;;  %v14755_v56 = vadd.f32 %v13592_v17, %v20779_v29 }
 0xa8a   : > { %v13597_v31 = vmul.f32 0.5, %v14754_v43  ;;  %v13596_v6 = vmul.f32 0.5, %v14753_v28 }
 0xa8b   : > { %15606 = vtanh.f32 %v13595_v38  ;;  %v13598_v42 = vmul.f32 0.5, %v14755_v56 }
 0xa8c   : > { %15608 = vtanh.f32 %v13597_v31 }
 0xa8d   : > { %15610 = vtanh.f32 %v13596_v6 }
 0xa8e   : > { %15612 = vtanh.f32 %v13598_v42 }
 0xa95   : > { %v15607_v37 = vpop.eup %15606 }
 0xa96   : > { %v15609_v24 = vpop.eup %15608  ;;  %v13603_v57 = vadd.f32 1.0, %v15607_v37 }
 0xa97   : > { %v15611_v21 = vpop.eup %15610  ;;  %v13605_v39 = vadd.f32 1.0, %v15609_v24 }
 0xa98   : > { %v15613_v25 = vpop.eup %15612  ;;  %v13607_v14 = vmul.f32 0.5, %v13603_v57  ;;  %v13604_v63 = vadd.f32 1.0, %v15611_v21 }
 0xa99   : > { %v13609_v3 = vmul.f32 0.5, %v13605_v39  ;;  %v13606_v45 = vadd.f32 1.0, %v15613_v25 }
 0xa9a   : > { %v13608_v59 = vmul.f32 0.5, %v13604_v63 }
 0xa9b   : > { %v13610_v23 = vmul.f32 0.5, %v13606_v45 }
 0xa9c   : > { %v13615_v5 = vcombine.low %v13607_v14, %v13608_v59 }
 0xa9d   : > { %v13616_v55 = vcombine.low %v13609_v3, %v13610_v23 }
 0xa9e   : > { %v13623_v44 = vrot.slane %v13615_v5, %v20780_v7 }
 0xa9f   : > { %v13630_v0 = vrot.slane %v13616_v55, %v20780_v7 }
 0xaa1   : > { %v13631_v60 = vcombine.low %v13623_v44, %v13630_v0 }
 0xaa3   : > { %v13638_v36 = vrot.slane %v13631_v60, %v20780_v7 }
 0xaa5   : > { %13640 = vst.msk [vmem:[%s17611_s9 + $0x8] sm:$0xf] %vm17606_vm4, %v13638_v36 }
 0xaa6   : > { %15657 = shalt.err (!%p15654_p4)
}
 0xaa7   : > { %s15658_s25 = scalar_lea.hbm %s19752_s23, 192  ;;  %s15662_s22 = scalar_lea.hbm %s19806_s7, 384 }
 0xaa8   : > { %p15659_p7 = scmp.ne.s32.totalorder %s19752_s23, %s15658_s25  ;;  %p15663_p0 = scmp.lt.u32.totalorder %s19752_s23, %s19806_s7 }
 0xaa9   : > { %p15664_p1 = scmp.lt.u32.totalorder %s15662_s22, %s15658_s25  ;;  %p15666_p6 = scmp.lt.u32.totalorder %s15658_s25, %s19752_s23 }
 0xaaa   : > { %p15660_p8 = pnand %p15659_p7, %p20782_p11 }
 0xaab   : > { %p15665_p3 = por %p15664_p1, %p15663_p0 }
 0xaac   : > { %p15661_p9 = pneg %p15660_p8 }
 0xaad   : > { %p15667_p12 = por %p15666_p6, %p15665_p3 }
 0xaaf   : > { %p15668_p13 = pnand %p15667_p12, %p15661_p9 }
 0xab1   : > { %15671 = shalt.err (!%p15668_p13)
}
 0xab2   : > { %15541 = dma.vmem_to_hbm [thread:$0]  (%p20782_p11), %s19754_s12, 192, %s19752_s23, %s13642_s24  }
 0xab3 PF: > { %s13668_s10 = sand.u32 1, %s15698_s26   ;;  %p20783_p5 = scmp.ne.s32.totalorder %s20192_s14, 0 }
 0xab4   : > { %p20784_p10 = scmp.ge.s32.totalorder %s15710_s29, 2  ;;  %s13669_s20 = scalar_lea.sflag [#allocation5], %s13668_s10 }
 0xab6   : > { %p15548_p2 = pnand %p20784_p10, %p20783_p5 }
 0xab8   : > { %15693 = dma.done.wait (!%p15548_p2), %s13669_s20, 192  }
 0xab9   : > { %15695 = vsyncadd (!%p15548_p2), %s13669_s20, 4294967104  ;;  %p22_p4 = scmp.ge.s32.totalorder %s15785_s8, 4   ;;  %s20785_s26 = smov %s15702_s27 }
 0xaba   : > { %s20786_s27 = smov %s15706_s28  ;;  %s20787_s28 = smov %s15797_s11 }
 0xabb   : > { %s20788_s29 = smov %s15785_s8  ;;  %24 = sbr.rel (!%p22_p4) target bundleno = 8 (0x8), region = 93 }
 0xac2   :  { %13674 = vsyncpa [#allocation4], 1 }
 0xac3   :  { %13676 = vsyncpa [#allocation4 + $0x1], 1 }
 0xac4   :  { %13677 = vsyncpa [#allocation5], 1 }
 0xac5   :  { %13679 = vsyncpa [#allocation5 + $0x1], 1 }

</bundles_post_ra>
